<compile_context>
chip_gen: v5e
topology: v5e:2x2
jax: 0.10.0
libtpu: 0.0.40
codegen_flags: <defaults>
</compile_context>

<pallas_src>
from functools import partial

import numpy as np
import jax
import jax.numpy as jnp
from jax.experimental import pallas as pl
from jax.experimental.pallas import tpu as pltpu

_VMEM_LIMIT = 48 * 1024 * 1024   # fits v7x (64 MiB physical), raises v5e/v6e scoped default


def _cparams():
    return pltpu.CompilerParams(dimension_semantics=("parallel",),
                                vmem_limit_bytes=_VMEM_LIMIT)


def _pick_block_n(total, hw, per_img_bytes, budget_bytes=12 * 1024 * 1024, m_target=256):
    """Images per grid step: largest divisor of `total` that keeps the double-buffered
    block under budget (v7x: 64 MiB VMEM) and leaves >=2 grid steps when possible
    (v7x dual TC / pipelining), stopping once block_n*H*W fills the 256-row MXU."""
    best = 1
    for d in range(1, total + 1):
        if total % d:
            continue
        if 2 * d * per_img_bytes > budget_bytes:
            break
        if total >= 2 and total // d < 2:
            break
        best = d
        if d * hw >= m_target:
            break
    return best


def _softplus(x):
    return jnp.log1p(jnp.exp(-jnp.abs(x))) + jnp.maximum(x, 0.0)


def _conv3x3(src_ref, w_ref, H, W, k_off=0, acc=None):
    """Accumulate the 9 taps of a 3x3 SAME conv: sum_t window_t @ w_ref[t, k_off:k_off+C].
    src_ref: [bn, H+2, W+2, C] bf16 with a zero halo.  Windows are sliced directly off the
    bf16 ref (no f32 up-cast); bf16 MXU matmuls, f32 accumulation."""
    bn = src_ref.shape[0]
    C = src_ref.shape[-1]
    M = bn * H * W
    for dy in range(3):
        for dx in range(3):
            xt = src_ref[:, dy:dy + H, dx:dx + W, :].reshape(M, C)
            p = jnp.dot(xt, w_ref[dy * 3 + dx, k_off:k_off + C, :],
                        preferred_element_type=jnp.float32)
            acc = p if acc is None else acc + p
    return acc


# ---------------------------------------------------------------------------
# Fused encoder: (1x1 conv, relu) -> (3x3 conv, relu); intermediate stays in VMEM,
# output is written halo-padded so the GRU needs no XLA pad.
# ---------------------------------------------------------------------------
def _enc_kernel(x_ref, w0_ref, b0_ref, w1_ref, b1_ref, o_ref, mid_ref, *, H, W):
    bn = x_ref.shape[0]
    M = bn * H * W
    x = x_ref[...].reshape(M, x_ref.shape[-1])                       # [M, C0] bf16
    c0 = jnp.dot(x, w0_ref[0], preferred_element_type=jnp.float32)
    c0 = jnp.maximum(c0 + b0_ref[...], 0.0)                          # [M, C1] f32

    @pl.when(pl.program_id(0) == 0)
    def _():                                                         # halo stays zero afterwards
        mid_ref[...] = jnp.zeros_like(mid_ref)

    mid_ref[:, 1:1 + H, 1:1 + W, :] = c0.astype(jnp.bfloat16).reshape(bn, H, W, c0.shape[-1])
    y = jnp.maximum(_conv3x3(mid_ref, w1_ref, H, W) + b1_ref[...], 0.0)
    o_ref[...] = jnp.zeros_like(o_ref)
    o_ref[:, 1:1 + H, 1:1 + W, :] = y.reshape(bn, H, W, y.shape[-1]).astype(o_ref.dtype)


def encoder(x, w0, b0, w1, b1):
    BN, H, W, C0 = x.shape
    C1, C2 = w0.shape[-1], w1.shape[-1]
    Hp, Wp = H + 2, W + 2
    per_img = 2 * (H * W * C0 + Hp * Wp * C2) + 2 * Hp * Wp * C1
    bn = _pick_block_n(BN, H * W, per_img)
    return pl.pallas_call(
        partial(_enc_kernel, H=H, W=W),
        out_shape=jax.ShapeDtypeStruct((BN, Hp, Wp, C2), jnp.bfloat16),
        grid=(BN // bn,),
        in_specs=[
            pl.BlockSpec((bn, H, W, C0), lambda i: (i, 0, 0, 0)),
            pl.BlockSpec((1, C0, C1), lambda i: (0, 0, 0)),
            pl.BlockSpec((1, C1), lambda i: (0, 0)),
            pl.BlockSpec((9, C1, C2), lambda i: (0, 0, 0)),
            pl.BlockSpec((1, C2), lambda i: (0, 0)),
        ],
        out_specs=pl.BlockSpec((bn, Hp, Wp, C2), lambda i: (i, 0, 0, 0)),
        scratch_shapes=[pltpu.VMEM((bn, Hp, Wp, C1), jnp.bfloat16)],
        compiler_params=_cparams(),
    )(x, w0, b0, w1, b1)


# ---------------------------------------------------------------------------
# Fused ConvGRU: convz+convr (one weight), convq and the gate mix in ONE kernel.
# Sources (net | inp | corr | flow) stay un-concatenated; each contributes one matmul per
# tap.  r*h is staged in the halo-padded bf16 output block, which finally holds net_new.
# ---------------------------------------------------------------------------
_SRC_OFFS = (0, 128, 256, 384)   # [net | inp | corr | flow] Cin offsets in the GRU weights


def _gru_kernel(netp_ref, inpp_ref, cp_ref, fp_ref, wzr_ref, bzr_ref, wq_ref, bq_ref,
                net_ref, netp16_ref, *, H, W):
    bn = net_ref.shape[0]
    M = bn * H * W
    acc = None
    for src, off in zip((netp_ref, inpp_ref, cp_ref, fp_ref), _SRC_OFFS):
        acc = _conv3x3(src, wzr_ref, H, W, k_off=off, acc=acc)
    zr = jax.nn.sigmoid(acc + bzr_ref[...])                          # [M, 256]
    z, r = zr[:, :128], zr[:, 128:]
    net_prev = netp_ref[:, 1:1 + H, 1:1 + W, :].reshape(M, 128).astype(jnp.float32)

    netp16_ref[...] = jnp.zeros_like(netp16_ref)                     # zero halo each step
    netp16_ref[:, 1:1 + H, 1:1 + W, :] = (r * net_prev).astype(jnp.bfloat16).reshape(bn, H, W, 128)
    acc = None
    for src, off in zip((netp16_ref, inpp_ref, cp_ref, fp_ref), _SRC_OFFS):
        acc = _conv3x3(src, wq_ref, H, W, k_off=off, acc=acc)
    q = jnp.tanh(acc + bq_ref[...])
    h = (1.0 - z) * net_prev + z * q                                 # [M, 128] f32
    h4 = h.reshape(bn, H, W, 128)
    net_ref[...] = h4
    netp16_ref[:, 1:1 + H, 1:1 + W, :] = h4.astype(jnp.bfloat16)     # padded bf16 copy for dwa


def conv_gru(net_p, inp_p, c_p, f_p, wzr, bzr, wq, bq):
    BN, Hp, Wp, _ = net_p.shape
    H, W = Hp - 2, Wp - 2
    per_img = 2 * Hp * Wp * (3 * 128 + 64) + 4 * H * W * 128 + 2 * Hp * Wp * 128
    bn = _pick_block_n(BN, H * W, per_img)
    return pl.pallas_call(
        partial(_gru_kernel, H=H, W=W),
        out_shape=(jax.ShapeDtypeStruct((BN, H, W, 128), jnp.float32),
                   jax.ShapeDtypeStruct((BN, Hp, Wp, 128), jnp.bfloat16)),
        grid=(BN // bn,),
        in_specs=[
            pl.BlockSpec((bn, Hp, Wp, 128), lambda i: (i, 0, 0, 0)),
            pl.BlockSpec((bn, Hp, Wp, 128), lambda i: (i, 0, 0, 0)),
            pl.BlockSpec((bn, Hp, Wp, 128), lambda i: (i, 0, 0, 0)),
            pl.BlockSpec((bn, Hp, Wp, 64), lambda i: (i, 0, 0, 0)),
            pl.BlockSpec((9, 448, 256), lambda i: (0, 0, 0)),
            pl.BlockSpec((1, 256), lambda i: (0, 0)),
            pl.BlockSpec((9, 448, 128), lambda i: (0, 0, 0)),
            pl.BlockSpec((1, 128), lambda i: (0, 0)),
        ],
        out_specs=(pl.BlockSpec((bn, H, W, 128), lambda i: (i, 0, 0, 0)),
                   pl.BlockSpec((bn, Hp, Wp, 128), lambda i: (i, 0, 0, 0))),
        compiler_params=_cparams(),
    )(net_p, inp_p, c_p, f_p, wzr, bzr, wq, bq)


# ---------------------------------------------------------------------------
# Fused dwa (delta0 | weight0 | agg.conv1, relu) -> block-diagonal delta1|weight1 head.
# The 256-ch delta0|weight0 intermediate never leaves VMEM; only the agg.conv1 branch and
# the 8-ch (4 real) head are written to HBM.
# ---------------------------------------------------------------------------
def _dwa_head_kernel(netp_ref, wd_ref, bd_ref, wh_ref, bh_ref,
                     agg_ref, head_ref, mid_ref, *, H, W):
    bn = agg_ref.shape[0]
    dwa = jnp.maximum(_conv3x3(netp_ref, wd_ref, H, W) + bd_ref[...], 0.0)    # [M, 384]
    agg_ref[...] = dwa[:, 256:].reshape(bn, H, W, 128)                        # agg.conv1 branch

    @pl.when(pl.program_id(0) == 0)
    def _():
        mid_ref[...] = jnp.zeros_like(mid_ref)

    mid_ref[:, 1:1 + H, 1:1 + W, :] = dwa[:, :256].astype(jnp.bfloat16).reshape(bn, H, W, 256)
    head = _conv3x3(mid_ref, wh_ref, H, W) + bh_ref[...]                      # [M, 8]
    head_ref[...] = head.reshape(bn, H, W, head.shape[-1])


def dwa_head(net_p16, wd, bd, wh, bh):
    BN, Hp, Wp, _ = net_p16.shape
    H, W = Hp - 2, Wp - 2
    per_img = 2 * Hp * Wp * 128 + 4 * H * W * (128 + 8) + 2 * Hp * Wp * 256
    bn = _pick_block_n(BN, H * W, per_img)
    return pl.pallas_call(
        partial(_dwa_head_kernel, H=H, W=W),
        out_shape=(jax.ShapeDtypeStruct((BN, H, W, 128), jnp.float32),
                   jax.ShapeDtypeStruct((BN, H, W, 8), jnp.float32)),
        grid=(BN // bn,),
        in_specs=[
            pl.BlockSpec((bn, Hp, Wp, 128), lambda i: (i, 0, 0, 0)),
            pl.BlockSpec((9, 128, 384), lambda i: (0, 0, 0)),
            pl.BlockSpec((1, 384), lambda i: (0, 0)),
            pl.BlockSpec((9, 256, 8), lambda i: (0, 0, 0)),
            pl.BlockSpec((1, 8), lambda i: (0, 0)),
        ],
        out_specs=(pl.BlockSpec((bn, H, W, 128), lambda i: (i, 0, 0, 0)),
                   pl.BlockSpec((bn, H, W, 8), lambda i: (i, 0, 0, 0))),
        scratch_shapes=[pltpu.VMEM((bn, Hp, Wp, 256), jnp.bfloat16)],
        compiler_params=_cparams(),
    )(net_p16, wd, bd, wh, bh)


# ---------------------------------------------------------------------------
# Fused GraphAgg tail: conv2 (3x3, relu) -> { eta (3x3, softplus), upmask (1x1) };
# the conv2 output stays in VMEM.
# ---------------------------------------------------------------------------
def _agg_tail_kernel(ap_ref, w2_ref, b2_ref, weta_ref, beta_ref, wup_ref, bup_ref,
                     eta_ref, up_ref, mid_ref, *, H, W):
    bn = eta_ref.shape[0]
    a2 = jnp.maximum(_conv3x3(ap_ref, w2_ref, H, W) + b2_ref[...], 0.0)       # [M, 128] f32
    up = jnp.dot(a2.astype(jnp.bfloat16), wup_ref[0], preferred_element_type=jnp.float32)
    up_ref[...] = (up + bup_ref[...]).reshape(bn, H, W, up.shape[-1])

    @pl.when(pl.program_id(0) == 0)
    def _():
        mid_ref[...] = jnp.zeros_like(mid_ref)

    mid_ref[:, 1:1 + H, 1:1 + W, :] = a2.astype(jnp.bfloat16).reshape(bn, H, W, 128)
    eta = _softplus(_conv3x3(mid_ref, weta_ref, H, W) + beta_ref[...])
    eta_ref[...] = eta.reshape(bn, H, W, eta.shape[-1])


def graph_agg_tail(amean_p, w2, b2, weta, beta, wup, bup):
    BG, Hp, Wp, _ = amean_p.shape
    H, W = Hp - 2, Wp - 2
    per_img = 2 * Hp * Wp * 128 + 4 * H * W * (576 + 8) + 2 * Hp * Wp * 128
    bn = _pick_block_n(BG, H * W, per_img)
    return pl.pallas_call(
        partial(_agg_tail_kernel, H=H, W=W),
        out_shape=(jax.ShapeDtypeStruct((BG, H, W, 8), jnp.float32),
                   jax.ShapeDtypeStruct((BG, H, W, 576), jnp.float32)),
        grid=(BG // bn,),
        in_specs=[
            pl.BlockSpec((bn, Hp, Wp, 128), lambda i: (i, 0, 0, 0)),
            pl.BlockSpec((9, 128, 128), lambda i: (0, 0, 0)),
            pl.BlockSpec((1, 128), lambda i: (0, 0)),
            pl.BlockSpec((9, 128, 8), lambda i: (0, 0, 0)),
            pl.BlockSpec((1, 8), lambda i: (0, 0)),
            pl.BlockSpec((1, 128, 576), lambda i: (0, 0, 0)),
            pl.BlockSpec((1, 576), lambda i: (0, 0)),
        ],
        out_specs=(pl.BlockSpec((bn, H, W, 8), lambda i: (i, 0, 0, 0)),
                   pl.BlockSpec((bn, H, W, 576), lambda i: (i, 0, 0, 0))),
        scratch_shapes=[pltpu.VMEM((bn, Hp, Wp, 128), jnp.bfloat16)],
        compiler_params=_cparams(),
    )(amean_p, w2, b2, weta, beta, wup, bup)


# ---------------------------------------------------------------------------
# cvx_upsample / upsample_disp: softmax over 9 taps + weighted 3x3 gather + 8x upsample
# ---------------------------------------------------------------------------
def _cvx_kernel(mask_ref, nbr_ref, o_ref):
    m = mask_ref[0].astype(jnp.float32)                 # [9, 64, HW]
    n = nbr_ref[0].astype(jnp.float32)                  # [9, HW]
    m = m - jnp.max(m, axis=0, keepdims=True)
    e = jnp.exp(m)
    wgt = e / jnp.sum(e, axis=0, keepdims=True)         # exact softmax over the 9 taps
    o_ref[0] = jnp.sum(wgt * n[:, None, :], axis=0)     # [64, HW]


def upsample_disp(disp, mask):
    """disp: [batch, num, ht, wd]; mask: [batch, num, 8*8*9, ht, wd] -> [batch, num, 8ht, 8wd]."""
    batch, num, ht, wd = disp.shape
    Bn = batch * num
    HW = ht * wd
    d = disp.reshape(Bn, ht, wd).astype(jnp.float32)
    m = mask.reshape(Bn, 9, 64, HW).astype(jnp.float32)     # c = k*64 + i*8 + j
    dp = jnp.pad(d, ((0, 0), (1, 1), (1, 1)))
    nbr = jnp.stack([dp[:, dy:dy + ht, dx:dx + wd] for dy in range(3) for dx in range(3)], axis=1)
    nbr = nbr.reshape(Bn, 9, HW)

    up = pl.pallas_call(
        _cvx_kernel,
        out_shape=jax.ShapeDtypeStruct((Bn, 64, HW), jnp.float32),
        grid=(Bn,),
        in_specs=[
            pl.BlockSpec((1, 9, 64, HW), lambda b: (b, 0, 0, 0)),
            pl.BlockSpec((1, 9, HW), lambda b: (b, 0, 0)),
        ],
        out_specs=pl.BlockSpec((1, 64, HW), lambda b: (b, 0, 0)),
        compiler_params=_cparams(),
    )(m, nbr)

    up = up.reshape(Bn, 8, 8, ht, wd).transpose(0, 3, 1, 4, 2).reshape(Bn, 8 * ht, 8 * wd)
    return up.reshape(batch, num, 8 * ht, 8 * wd)


# ---------------------------------------------------------------------------
# Parameters: torch-layout init, then one-time conversion to the fused kernel layout.
# ---------------------------------------------------------------------------
def init_params(key):
    keys = jax.random.split(key, 16)

    def conv(k, cout, cin, kh, kw):
        w = 0.05 * jax.random.normal(k, (cout, cin, kh, kw), jnp.float32)
        b = jnp.zeros((cout,), jnp.float32)
        return (w, b)

    p = {}
    p["corr0"] = conv(keys[0], 128, 196, 1, 1)      # cor_planes = 4*(2*3+1)**2 = 196
    p["corr1"] = conv(keys[1], 128, 128, 3, 3)
    p["flow0"] = conv(keys[2], 128, 4, 7, 7)
    p["flow1"] = conv(keys[3], 64, 128, 3, 3)
    p["convz"] = conv(keys[4], 128, 448, 3, 3)      # ConvGRU(128, 128+128+64)
    p["convr"] = conv(keys[5], 128, 448, 3, 3)
    p["convq"] = conv(keys[6], 128, 448, 3, 3)
    p["weight0"] = conv(keys[7], 128, 128, 3, 3)
    p["weight1"] = conv(keys[8], 2, 128, 3, 3)
    p["delta0"] = conv(keys[9], 128, 128, 3, 3)
    p["delta1"] = conv(keys[10], 2, 128, 3, 3)
    p["agg_conv1"] = conv(keys[11], 128, 128, 3, 3)
    p["agg_conv2"] = conv(keys[12], 128, 128, 3, 3)
    p["agg_eta"] = conv(keys[13], 1, 128, 3, 3)
    p["agg_upmask"] = conv(keys[14], 576, 128, 1, 1)    # 8*8*9
    return p


def prepare_params(p):
    """Torch layout [Cout, Cin, kh, kw] -> fused tap-major layout [kh*kw, Cin, Cout] bf16."""
    def wt(w):
        cout, cin, kh, kw = w.shape
        return jnp.transpose(w, (2, 3, 1, 0)).reshape(kh * kw, cin, cout).astype(jnp.bfloat16)

    def bias(b):
        return b.reshape(1, -1).astype(jnp.float32)

    def pad_k(w_, K):
        return jnp.pad(w_, ((0, 0), (0, K - w_.shape[1]), (0, 0)))

    kp = {}
    # corr encoder: 1x1 (196 -> 128, K padded to 256 lanes) then 3x3 (128 -> 128)
    w, b = p["corr0"]; kp["corr_w0"] = pad_k(wt(w), 256); kp["corr_b0"] = bias(b)
    w, b = p["corr1"]; kp["corr_w1"] = wt(w);             kp["corr_b1"] = bias(b)
    # flow encoder: 7x7 fully unfolded -> one 196 (->256) x 128 matmul, then 3x3 (128 -> 64)
    w, b = p["flow0"]
    w196 = jnp.transpose(w, (2, 3, 1, 0)).reshape(1, 196, 128).astype(jnp.bfloat16)
    kp["flow_w0"] = pad_k(w196, 256); kp["flow_b0"] = bias(b)
    w, b = p["flow1"]; kp["flow_w1"] = wt(w); kp["flow_b1"] = bias(b)
    # GRU: convz | convr fused along Cout; convq separate. Cin order: [net | inp | corr | flow]
    (wz, bz), (wr, br), (wq, bq) = p["convz"], p["convr"], p["convq"]
    kp["gru_wzr"] = jnp.concatenate([wt(wz), wt(wr)], axis=-1)          # [9, 448, 256]
    kp["gru_bzr"] = jnp.concatenate([bias(bz), bias(br)], axis=-1)
    kp["gru_wq"] = wt(wq); kp["gru_bq"] = bias(bq)
    # delta0 | weight0 | agg.conv1 fused along Cout (shared input net_new)
    (wd0, bd0), (ww0, bw0), (wa1, ba1) = p["delta0"], p["weight0"], p["agg_conv1"]
    kp["dwa_w"] = jnp.concatenate([wt(wd0), wt(ww0), wt(wa1)], axis=-1)  # [9, 128, 384]
    kp["dwa_b"] = jnp.concatenate([bias(bd0), bias(bw0), bias(ba1)], axis=-1)
    # head: delta1 | weight1 block-diagonal over the 256 [delta0|weight0] channels
    # (dead agg third removed), Cout padded 4 -> 8 for friendlier stores.
    (wd1, bd1), (ww1, bw1) = p["delta1"], p["weight1"]
    whead = jnp.zeros((8, 256, 3, 3), jnp.float32)
    whead = whead.at[0:2, 0:128].set(wd1).at[2:4, 128:256].set(ww1)
    bhead = jnp.zeros((8,), jnp.float32).at[0:2].set(bd1).at[2:4].set(bw1)
    kp["head_w"] = wt(whead); kp["head_b"] = bias(bhead)
    # GraphAgg tail: conv2 3x3, eta 3x3 (Cout padded 1 -> 8), upmask 1x1 (576)
    w, b = p["agg_conv2"]; kp["agg2_w"] = wt(w); kp["agg2_b"] = bias(b)
    w, b = p["agg_eta"]
    kp["eta_w"] = wt(jnp.pad(w, ((0, 7), (0, 0), (0, 0), (0, 0))))
    kp["eta_b"] = bias(jnp.pad(b, (0, 7)))
    w, b = p["agg_upmask"]; kp["up_w"] = wt(w); kp["up_b"] = bias(b)
    return kp


# ---------------------------------------------------------------------------
# UpdateModule.forward (+ GraphAgg) — the per-step hot path of DroidNet.forward
# ---------------------------------------------------------------------------
def update_module(kp, net, inp, corr, flow, ii):
    batch, num, ch, ht, wd = net.shape
    BN = batch * num

    # TODO(synk): upstream (corr lookup / context nets) should emit NHWC so these
    # module-boundary transposes disappear.
    def to_nhwc(t, cpad=0):
        x = jnp.transpose(t.reshape(BN, t.shape[2], ht, wd), (0, 2, 3, 1)).astype(jnp.bfloat16)
        if cpad:
            x = jnp.pad(x, ((0, 0), (0, 0), (0, 0), (0, cpad - x.shape[-1])))
        return x

    def pad_hw(x):
        return jnp.pad(x, ((0, 0), (1, 1), (1, 1), (0, 0)))

    net_h = to_nhwc(net)                        # [BN, ht, wd, 128]
    inp_h = to_nhwc(inp)
    corr_h = to_nhwc(corr, cpad=256)            # 196 -> 256 zero-padded lanes
    flow_h = to_nhwc(flow)                      # [BN, ht, wd, 4]

    # 7x7 flow conv fully unfolded (tiny 4-ch tensor) -> one lane-dense 256-K matmul
    fp = jnp.pad(flow_h, ((0, 0), (3, 3), (3, 3), (0, 0)))
    fu = jnp.concatenate([fp[:, dy:dy + ht, dx:dx + wd, :]
                          for dy in range(7) for dx in range(7)], axis=-1)
    fu = jnp.pad(fu, ((0, 0), (0, 0), (0, 0), (0, 256 - fu.shape[-1])))

    # fused encoders (1x1 -> 3x3), outputs come back halo-padded bf16
    c_p = encoder(corr_h, kp["corr_w0"], kp["corr_b0"], kp["corr_w1"], kp["corr_b1"])
    f_p = encoder(fu, kp["flow_w0"], kp["flow_b0"], kp["flow_w1"], kp["flow_b1"])

    # ConvGRU (standard DROID gated form; see TODO at top of file)
    net_p = pad_hw(net_h)
    inp_p = pad_hw(inp_h)
    net_new, net_new_p16 = conv_gru(net_p, inp_p, c_p, f_p,
                                    kp["gru_wzr"], kp["gru_bzr"], kp["gru_wq"], kp["gru_bq"])

    # fused delta0|weight0|agg.conv1 -> block-diagonal delta1|weight1 head
    agg1, head = dwa_head(net_new_p16, kp["dwa_w"], kp["dwa_b"], kp["head_w"], kp["head_b"])
    delta = head[..., 0:2].reshape(batch, num, ht, wd, 2)
    weight = jax.nn.sigmoid(head[..., 2:4]).reshape(batch, num, ht, wd, 2)
    net_out = jnp.transpose(net_new, (0, 3, 1, 2)).reshape(batch, num, ch, ht, wd)

    # GraphAgg: scatter_mean over edges -> frames (small data-dependent scatter; XLA glue)
    _, ix = np.unique(np.asarray(ii), return_inverse=True)
    G = int(ix.max()) + 1
    ix = jnp.asarray(ix, jnp.int32)
    a1 = agg1.reshape(batch, num, ht, wd, 128)
    sums = jnp.zeros((batch, G, ht, wd, 128), jnp.float32).at[:, ix].add(a1)
    cnt = jnp.zeros((G,), jnp.float32).at[ix].add(1.0)
    amean = (sums / cnt[None, :, None, None, None]).reshape(batch * G, ht, wd, 128)

    amean_p = pad_hw(amean.astype(jnp.bfloat16))
    eta8, um = graph_agg_tail(amean_p, kp["agg2_w"], kp["agg2_b"],
                              kp["eta_w"], kp["eta_b"], kp["up_w"], kp["up_b"])
    eta = 0.01 * eta8[..., 0].reshape(batch, G, ht, wd)
    upmask = jnp.transpose(um.reshape(batch, G, ht, wd, 576), (0, 1, 4, 2, 3))
    return net_out, delta, weight, eta, upmask


# ---------------------------------------------------------------------------
if __name__ == "__main__":
    key = jax.random.PRNGKey(0)
    kpk, k1, k2, k3, k4, k5 = jax.random.split(key, 6)
    params = init_params(kpk)
    kparams = prepare_params(params)

    # small shapes: 1 batch, 4 factor-graph edges, 8x8 feature maps (1/8 of 64x64 images)
    batch, num, ht, wd = 1, 4, 8, 8
    ii = np.array([0, 0, 1, 1], dtype=np.int64)    # edge -> keyframe indices

    net = jnp.tanh(jax.random.normal(k1, (batch, num, 128, ht, wd), jnp.float32))
    inp = jax.nn.relu(jax.random.normal(k2, (batch, num, 128, ht, wd), jnp.float32))
    corr = jax.random.normal(k3, (batch, num, 196, ht, wd), jnp.float32)
    motion = jnp.clip(10.0 * jax.random.normal(k4, (batch, num, 4, ht, wd), jnp.float32),
                      -64.0, 64.0)

    net2, delta, weight, eta, upmask = update_module(kparams, net, inp, corr, motion, ii)

    G = upmask.shape[1]                            # number of unique keyframes
    disps = jax.nn.softplus(jax.random.normal(k5, (batch, G, ht, wd), jnp.float32))
    disps_up = upsample_disp(disps, upmask)

    for t in (net2, delta, weight, eta, upmask, disps_up):
        jax.block_until_ready(t)

    assert net2.shape == (batch, num, 128, ht, wd)
    assert delta.shape == (batch, num, ht, wd, 2)
    assert weight.shape == (batch, num, ht, wd, 2)
    assert eta.shape == (batch, G, ht, wd)
    assert upmask.shape == (batch, G, 576, ht, wd)
    assert disps_up.shape == (batch, G, 8 * ht, 8 * wd)
    assert all(bool(jnp.isfinite(t).all()) for t in (net2, delta, weight, eta, upmask, disps_up))

    print("KERNEL_OK")
</pallas_src>

<mosaic_0001>
module attributes {stable_mosaic.version = 11 : i64} {
  func.func @_enc_kernel(%arg0: i32, %arg1: memref<2x8x8x256xbf16, #tpu.memory_space<vmem>>, %arg2: memref<1x256x128xbf16, #tpu.memory_space<vmem>>, %arg3: memref<1x128xf32, #tpu.memory_space<vmem>>, %arg4: memref<9x128x128xbf16, #tpu.memory_space<vmem>>, %arg5: memref<1x128xf32, #tpu.memory_space<vmem>>, %arg6: memref<2x10x10x128xbf16, #tpu.memory_space<vmem>>, %arg7: memref<2x10x10x128xbf16, #tpu.memory_space<vmem>>) attributes {dimension_semantics = [#tpu.dimension_semantics<parallel>], iteration_bounds = array<i64: 2>, scalar_prefetch = 0 : i64, scratch_operands = 1 : i64, tpu.core_type = #tpu.core_type<tc>, window_params = [{transform_indices = @transform_0, window_bounds = array<i64: 2, 8, 8, 256>}, {pipeline_mode = #tpu.pipeline_mode<synchronous>, transform_indices = @transform_1, window_bounds = array<i64: 1, 256, 128>}, {pipeline_mode = #tpu.pipeline_mode<synchronous>, transform_indices = @transform_2, window_bounds = array<i64: 1, 128>}, {pipeline_mode = #tpu.pipeline_mode<synchronous>, transform_indices = @transform_3, window_bounds = array<i64: 9, 128, 128>}, {pipeline_mode = #tpu.pipeline_mode<synchronous>, transform_indices = @transform_4, window_bounds = array<i64: 1, 128>}, {transform_indices = @transform_5, window_bounds = array<i64: 2, 10, 10, 128>}]} {
    %c0 = arith.constant 0 : index
    %c0_0 = arith.constant 0 : index
    %c0_1 = arith.constant 0 : index
    %c0_2 = arith.constant 0 : index
    %0 = vector.load %arg1[%c0, %c0_0, %c0_1, %c0_2] : memref<2x8x8x256xbf16, #tpu.memory_space<vmem>>, vector<2x8x8x256xbf16>
    %1 = vector.shape_cast %0 : vector<2x8x8x256xbf16> to vector<128x256xbf16>
    %c0_3 = arith.constant 0 : index
    %c0_4 = arith.constant 0 : index
    %c0_5 = arith.constant 0 : index
    %2 = vector.load %arg2[%c0_3, %c0_4, %c0_5] : memref<1x256x128xbf16, #tpu.memory_space<vmem>>, vector<1x256x128xbf16>
    %3 = vector.shape_cast %2 : vector<1x256x128xbf16> to vector<256x128xbf16>
    %cst = arith.constant dense<0.000000e+00> : vector<128x128xf32>
    %4 = tpu.matmul %1, %3, %cst {dimension_numbers = #tpu.dot_dimension_numbers<[1], [0], [0], [1], [0, 0, 1, 1], [], []>} : vector<128x256xbf16>, vector<256x128xbf16>, vector<128x128xf32> -> vector<128x128xf32>
    %c0_6 = arith.constant 0 : index
    %c0_7 = arith.constant 0 : index
    %5 = vector.load %arg3[%c0_6, %c0_7] : memref<1x128xf32, #tpu.memory_space<vmem>>, vector<1x128xf32>
    %6 = vector.broadcast %5 : vector<1x128xf32> to vector<128x128xf32>
    %7 = arith.addf %4, %6 : vector<128x128xf32>
    %cst_8 = arith.constant 0.000000e+00 : f32
    %8 = vector.broadcast %cst_8 : f32 to vector<128x128xf32>
    %9 = arith.maximumf %7, %8 : vector<128x128xf32>
    %c0_i32 = arith.constant 0 : i32
    %10 = arith.cmpi eq, %arg0, %c0_i32 : i32
    %11 = arith.extui %10 : i1 to i32
    %c0_i32_9 = arith.constant 0 : i32
    %12 = arith.cmpi ne, %11, %c0_i32_9 : i32
    scf.if %12 {
      %cst_90 = arith.constant 0.000000e+00 : bf16
      %79 = vector.broadcast %cst_90 : bf16 to vector<2x10x10x128xbf16>
      %c0_91 = arith.constant 0 : index
      %c0_92 = arith.constant 0 : index
      %c0_93 = arith.constant 0 : index
      %c0_94 = arith.constant 0 : index
      %80 = vector.load %arg7[%c0_91, %c0_92, %c0_93, %c0_94] : memref<2x10x10x128xbf16, #tpu.memory_space<vmem>>, vector<2x10x10x128xbf16>
      tpu.vector_store %arg7[%c0_91, %c0_92, %c0_93, %c0_94], %79 {strides = array<i32>} : memref<2x10x10x128xbf16, #tpu.memory_space<vmem>>, vector<2x10x10x128xbf16>,
    } else {
    }
    %13 = arith.truncf %9 : vector<128x128xf32> to vector<128x128xbf16>
    %14 = vector.shape_cast %13 : vector<128x128xbf16> to vector<2x8x8x128xbf16>
    %c0_10 = arith.constant 0 : index
    %c1 = arith.constant 1 : index
    %c1_11 = arith.constant 1 : index
    %c0_12 = arith.constant 0 : index
    %15 = vector.load %arg7[%c0_10, %c1, %c1_11, %c0_12] : memref<2x10x10x128xbf16, #tpu.memory_space<vmem>>, vector<2x8x8x128xbf16>
    tpu.vector_store %arg7[%c0_10, %c1, %c1_11, %c0_12], %14 {strides = array<i32>} : memref<2x10x10x128xbf16, #tpu.memory_space<vmem>>, vector<2x8x8x128xbf16>,
    %c0_13 = arith.constant 0 : index
    %c0_14 = arith.constant 0 : index
    %c0_15 = arith.constant 0 : index
    %c0_16 = arith.constant 0 : index
    %16 = vector.load %arg7[%c0_13, %c0_14, %c0_15, %c0_16] : memref<2x10x10x128xbf16, #tpu.memory_space<vmem>>, vector<2x8x8x128xbf16>
    %17 = vector.shape_cast %16 : vector<2x8x8x128xbf16> to vector<128x128xbf16>
    %c0_17 = arith.constant 0 : index
    %c0_18 = arith.constant 0 : index
    %c0_19 = arith.constant 0 : index
    %18 = vector.load %arg4[%c0_17, %c0_18, %c0_19] : memref<9x128x128xbf16, #tpu.memory_space<vmem>>, vector<1x128x128xbf16>
    %19 = vector.shape_cast %18 : vector<1x128x128xbf16> to vector<128x128xbf16>
    %cst_20 = arith.constant dense<0.000000e+00> : vector<128x128xf32>
    %20 = tpu.matmul %17, %19, %cst_20 {dimension_numbers = #tpu.dot_dimension_numbers<[1], [0], [0], [1], [0, 0, 1, 1], [], []>} : vector<128x128xbf16>, vector<128x128xbf16>, vector<128x128xf32> -> vector<128x128xf32>
    %c0_21 = arith.constant 0 : index
    %c0_22 = arith.constant 0 : index
    %c1_23 = arith.constant 1 : index
    %c0_24 = arith.constant 0 : index
    %21 = vector.load %arg7[%c0_21, %c0_22, %c1_23, %c0_24] : memref<2x10x10x128xbf16, #tpu.memory_space<vmem>>, vector<2x8x8x128xbf16>
    %22 = vector.shape_cast %21 : vector<2x8x8x128xbf16> to vector<128x128xbf16>
    %c1_25 = arith.constant 1 : index
    %c0_26 = arith.constant 0 : index
    %c0_27 = arith.constant 0 : index
    %23 = vector.load %arg4[%c1_25, %c0_26, %c0_27] : memref<9x128x128xbf16, #tpu.memory_space<vmem>>, vector<1x128x128xbf16>
    %24 = vector.shape_cast %23 : vector<1x128x128xbf16> to vector<128x128xbf16>
    %cst_28 = arith.constant dense<0.000000e+00> : vector<128x128xf32>
    %25 = tpu.matmul %22, %24, %cst_28 {dimension_numbers = #tpu.dot_dimension_numbers<[1], [0], [0], [1], [0, 0, 1, 1], [], []>} : vector<128x128xbf16>, vector<128x128xbf16>, vector<128x128xf32> -> vector<128x128xf32>
    %26 = arith.addf %20, %25 : vector<128x128xf32>
    %c0_29 = arith.constant 0 : index
    %c0_30 = arith.constant 0 : index
    %c2 = arith.constant 2 : index
    %c0_31 = arith.constant 0 : index
    %27 = vector.load %arg7[%c0_29, %c0_30, %c2, %c0_31] : memref<2x10x10x128xbf16, #tpu.memory_space<vmem>>, vector<2x8x8x128xbf16>
    %28 = vector.shape_cast %27 : vector<2x8x8x128xbf16> to vector<128x128xbf16>
    %c2_32 = arith.constant 2 : index
    %c0_33 = arith.constant 0 : index
    %c0_34 = arith.constant 0 : index
    %29 = vector.load %arg4[%c2_32, %c0_33, %c0_34] : memref<9x128x128xbf16, #tpu.memory_space<vmem>>, vector<1x128x128xbf16>
    %30 = vector.shape_cast %29 : vector<1x128x128xbf16> to vector<128x128xbf16>
    %cst_35 = arith.constant dense<0.000000e+00> : vector<128x128xf32>
    %31 = tpu.matmul %28, %30, %cst_35 {dimension_numbers = #tpu.dot_dimension_numbers<[1], [0], [0], [1], [0, 0, 1, 1], [], []>} : vector<128x128xbf16>, vector<128x128xbf16>, vector<128x128xf32> -> vector<128x128xf32>
    %32 = arith.addf %26, %31 : vector<128x128xf32>
    %c0_36 = arith.constant 0 : index
    %c1_37 = arith.constant 1 : index
    %c0_38 = arith.constant 0 : index
    %c0_39 = arith.constant 0 : index
    %33 = vector.load %arg7[%c0_36, %c1_37, %c0_38, %c0_39] : memref<2x10x10x128xbf16, #tpu.memory_space<vmem>>, vector<2x8x8x128xbf16>
    %34 = vector.shape_cast %33 : vector<2x8x8x128xbf16> to vector<128x128xbf16>
    %c3 = arith.constant 3 : index
    %c0_40 = arith.constant 0 : index
    %c0_41 = arith.constant 0 : index
    %35 = vector.load %arg4[%c3, %c0_40, %c0_41] : memref<9x128x128xbf16, #tpu.memory_space<vmem>>, vector<1x128x128xbf16>
    %36 = vector.shape_cast %35 : vector<1x128x128xbf16> to vector<128x128xbf16>
    %cst_42 = arith.constant dense<0.000000e+00> : vector<128x128xf32>
    %37 = tpu.matmul %34, %36, %cst_42 {dimension_numbers = #tpu.dot_dimension_numbers<[1], [0], [0], [1], [0, 0, 1, 1], [], []>} : vector<128x128xbf16>, vector<128x128xbf16>, vector<128x128xf32> -> vector<128x128xf32>
    %38 = arith.addf %32, %37 : vector<128x128xf32>
    %c0_43 = arith.constant 0 : index
    %c1_44 = arith.constant 1 : index
    %c1_45 = arith.constant 1 : index
    %c0_46 = arith.constant 0 : index
    %39 = vector.load %arg7[%c0_43, %c1_44, %c1_45, %c0_46] : memref<2x10x10x128xbf16, #tpu.memory_space<vmem>>, vector<2x8x8x128xbf16>
    %40 = vector.shape_cast %39 : vector<2x8x8x128xbf16> to vector<128x128xbf16>
    %c4 = arith.constant 4 : index
    %c0_47 = arith.constant 0 : index
    %c0_48 = arith.constant 0 : index
    %41 = vector.load %arg4[%c4, %c0_47, %c0_48] : memref<9x128x128xbf16, #tpu.memory_space<vmem>>, vector<1x128x128xbf16>
    %42 = vector.shape_cast %41 : vector<1x128x128xbf16> to vector<128x128xbf16>
    %cst_49 = arith.constant dense<0.000000e+00> : vector<128x128xf32>
    %43 = tpu.matmul %40, %42, %cst_49 {dimension_numbers = #tpu.dot_dimension_numbers<[1], [0], [0], [1], [0, 0, 1, 1], [], []>} : vector<128x128xbf16>, vector<128x128xbf16>, vector<128x128xf32> -> vector<128x128xf32>
    %44 = arith.addf %38, %43 : vector<128x128xf32>
    %c0_50 = arith.constant 0 : index
    %c1_51 = arith.constant 1 : index
    %c2_52 = arith.constant 2 : index
    %c0_53 = arith.constant 0 : index
    %45 = vector.load %arg7[%c0_50, %c1_51, %c2_52, %c0_53] : memref<2x10x10x128xbf16, #tpu.memory_space<vmem>>, vector<2x8x8x128xbf16>
    %46 = vector.shape_cast %45 : vector<2x8x8x128xbf16> to vector<128x128xbf16>
    %c5 = arith.constant 5 : index
    %c0_54 = arith.constant 0 : index
    %c0_55 = arith.constant 0 : index
    %47 = vector.load %arg4[%c5, %c0_54, %c0_55] : memref<9x128x128xbf16, #tpu.memory_space<vmem>>, vector<1x128x128xbf16>
    %48 = vector.shape_cast %47 : vector<1x128x128xbf16> to vector<128x128xbf16>
    %cst_56 = arith.constant dense<0.000000e+00> : vector<128x128xf32>
    %49 = tpu.matmul %46, %48, %cst_56 {dimension_numbers = #tpu.dot_dimension_numbers<[1], [0], [0], [1], [0, 0, 1, 1], [], []>} : vector<128x128xbf16>, vector<128x128xbf16>, vector<128x128xf32> -> vector<128x128xf32>
    %50 = arith.addf %44, %49 : vector<128x128xf32>
    %c0_57 = arith.constant 0 : index
    %c2_58 = arith.constant 2 : index
    %c0_59 = arith.constant 0 : index
    %c0_60 = arith.constant 0 : index
    %51 = vector.load %arg7[%c0_57, %c2_58, %c0_59, %c0_60] : memref<2x10x10x128xbf16, #tpu.memory_space<vmem>>, vector<2x8x8x128xbf16>
    %52 = vector.shape_cast %51 : vector<2x8x8x128xbf16> to vector<128x128xbf16>
    %c6 = arith.constant 6 : index
    %c0_61 = arith.constant 0 : index
    %c0_62 = arith.constant 0 : index
    %53 = vector.load %arg4[%c6, %c0_61, %c0_62] : memref<9x128x128xbf16, #tpu.memory_space<vmem>>, vector<1x128x128xbf16>
    %54 = vector.shape_cast %53 : vector<1x128x128xbf16> to vector<128x128xbf16>
    %cst_63 = arith.constant dense<0.000000e+00> : vector<128x128xf32>
    %55 = tpu.matmul %52, %54, %cst_63 {dimension_numbers = #tpu.dot_dimension_numbers<[1], [0], [0], [1], [0, 0, 1, 1], [], []>} : vector<128x128xbf16>, vector<128x128xbf16>, vector<128x128xf32> -> vector<128x128xf32>
    %56 = arith.addf %50, %55 : vector<128x128xf32>
    %c0_64 = arith.constant 0 : index
    %c2_65 = arith.constant 2 : index
    %c1_66 = arith.constant 1 : index
    %c0_67 = arith.constant 0 : index
    %57 = vector.load %arg7[%c0_64, %c2_65, %c1_66, %c0_67] : memref<2x10x10x128xbf16, #tpu.memory_space<vmem>>, vector<2x8x8x128xbf16>
    %58 = vector.shape_cast %57 : vector<2x8x8x128xbf16> to vector<128x128xbf16>
    %c7 = arith.constant 7 : index
    %c0_68 = arith.constant 0 : index
    %c0_69 = arith.constant 0 : index
    %59 = vector.load %arg4[%c7, %c0_68, %c0_69] : memref<9x128x128xbf16, #tpu.memory_space<vmem>>, vector<1x128x128xbf16>
    %60 = vector.shape_cast %59 : vector<1x128x128xbf16> to vector<128x128xbf16>
    %cst_70 = arith.constant dense<0.000000e+00> : vector<128x128xf32>
    %61 = tpu.matmul %58, %60, %cst_70 {dimension_numbers = #tpu.dot_dimension_numbers<[1], [0], [0], [1], [0, 0, 1, 1], [], []>} : vector<128x128xbf16>, vector<128x128xbf16>, vector<128x128xf32> -> vector<128x128xf32>
    %62 = arith.addf %56, %61 : vector<128x128xf32>
    %c0_71 = arith.constant 0 : index
    %c2_72 = arith.constant 2 : index
    %c2_73 = arith.constant 2 : index
    %c0_74 = arith.constant 0 : index
    %63 = vector.load %arg7[%c0_71, %c2_72, %c2_73, %c0_74] : memref<2x10x10x128xbf16, #tpu.memory_space<vmem>>, vector<2x8x8x128xbf16>
    %64 = vector.shape_cast %63 : vector<2x8x8x128xbf16> to vector<128x128xbf16>
    %c8 = arith.constant 8 : index
    %c0_75 = arith.constant 0 : index
    %c0_76 = arith.constant 0 : index
    %65 = vector.load %arg4[%c8, %c0_75, %c0_76] : memref<9x128x128xbf16, #tpu.memory_space<vmem>>, vector<1x128x128xbf16>
    %66 = vector.shape_cast %65 : vector<1x128x128xbf16> to vector<128x128xbf16>
    %cst_77 = arith.constant dense<0.000000e+00> : vector<128x128xf32>
    %67 = tpu.matmul %64, %66, %cst_77 {dimension_numbers = #tpu.dot_dimension_numbers<[1], [0], [0], [1], [0, 0, 1, 1], [], []>} : vector<128x128xbf16>, vector<128x128xbf16>, vector<128x128xf32> -> vector<128x128xf32>
    %68 = arith.addf %62, %67 : vector<128x128xf32>
    %c0_78 = arith.constant 0 : index
    %c0_79 = arith.constant 0 : index
    %69 = vector.load %arg5[%c0_78, %c0_79] : memref<1x128xf32, #tpu.memory_space<vmem>>, vector<1x128xf32>
    %70 = vector.broadcast %69 : vector<1x128xf32> to vector<128x128xf32>
    %71 = arith.addf %68, %70 : vector<128x128xf32>
    %cst_80 = arith.constant 0.000000e+00 : f32
    %72 = vector.broadcast %cst_80 : f32 to vector<128x128xf32>
    %73 = arith.maximumf %71, %72 : vector<128x128xf32>
    %cst_81 = arith.constant 0.000000e+00 : bf16
    %74 = vector.broadcast %cst_81 : bf16 to vector<2x10x10x128xbf16>
    %c0_82 = arith.constant 0 : index
    %c0_83 = arith.constant 0 : index
    %c0_84 = arith.constant 0 : index
    %c0_85 = arith.constant 0 : index
    %75 = vector.load %arg6[%c0_82, %c0_83, %c0_84, %c0_85] : memref<2x10x10x128xbf16, #tpu.memory_space<vmem>>, vector<2x10x10x128xbf16>
    tpu.vector_store %arg6[%c0_82, %c0_83, %c0_84, %c0_85], %74 {strides = array<i32>} : memref<2x10x10x128xbf16, #tpu.memory_space<vmem>>, vector<2x10x10x128xbf16>,
    %76 = vector.shape_cast %73 : vector<128x128xf32> to vector<2x8x8x128xf32>
    %77 = arith.truncf %76 : vector<2x8x8x128xf32> to vector<2x8x8x128xbf16>
    %c0_86 = arith.constant 0 : index
    %c1_87 = arith.constant 1 : index
    %c1_88 = arith.constant 1 : index
    %c0_89 = arith.constant 0 : index
    %78 = vector.load %arg6[%c0_86, %c1_87, %c1_88, %c0_89] : memref<2x10x10x128xbf16, #tpu.memory_space<vmem>>, vector<2x8x8x128xbf16>
    tpu.vector_store %arg6[%c0_86, %c1_87, %c1_88, %c0_89], %77 {strides = array<i32>} : memref<2x10x10x128xbf16, #tpu.memory_space<vmem>>, vector<2x8x8x128xbf16>,
    return
  }
  func.func @transform_0(%arg0: i32) -> (i32, i32, i32, i32) {
    %c0_i32 = arith.constant 0 : i32
    %c0_i32_0 = arith.constant 0 : i32
    %c0_i32_1 = arith.constant 0 : i32
    %c0_i32_2 = arith.constant 0 : i32
    return %arg0, %c0_i32, %c0_i32_0, %c0_i32_1 : i32, i32, i32, i32
  }
  func.func @transform_1(%arg0: i32) -> (i32, i32, i32) {
    %c0_i32 = arith.constant 0 : i32
    %c0_i32_0 = arith.constant 0 : i32
    %c0_i32_1 = arith.constant 0 : i32
    %c0_i32_2 = arith.constant 0 : i32
    return %c0_i32, %c0_i32_0, %c0_i32_1 : i32, i32, i32
  }
  func.func @transform_2(%arg0: i32) -> (i32, i32) {
    %c0_i32 = arith.constant 0 : i32
    %c0_i32_0 = arith.constant 0 : i32
    %c0_i32_1 = arith.constant 0 : i32
    return %c0_i32, %c0_i32_0 : i32, i32
  }
  func.func @transform_3(%arg0: i32) -> (i32, i32, i32) {
    %c0_i32 = arith.constant 0 : i32
    %c0_i32_0 = arith.constant 0 : i32
    %c0_i32_1 = arith.constant 0 : i32
    %c0_i32_2 = arith.constant 0 : i32
    return %c0_i32, %c0_i32_0, %c0_i32_1 : i32, i32, i32
  }
  func.func @transform_4(%arg0: i32) -> (i32, i32) {
    %c0_i32 = arith.constant 0 : i32
    %c0_i32_0 = arith.constant 0 : i32
    %c0_i32_1 = arith.constant 0 : i32
    return %c0_i32, %c0_i32_0 : i32, i32
  }
  func.func @transform_5(%arg0: i32) -> (i32, i32, i32, i32) {
    %c0_i32 = arith.constant 0 : i32
    %c0_i32_0 = arith.constant 0 : i32
    %c0_i32_1 = arith.constant 0 : i32
    %c0_i32_2 = arith.constant 0 : i32
    return %arg0, %c0_i32, %c0_i32_0, %c0_i32_1 : i32, i32, i32, i32
  }
}

</mosaic_0001>

<bundles_post_ra>
// kernel: tpu_custom_call.1
= control target key start
LH: loop header
LB: loop body
LE: loop exit
PB: predicated region body
PF: predicated region fallthrough
CT: control target
= control target key end

     0   :  { %10 = vsyncpa [#allocation4], 0  ;;  %s6321_s0 = inlined_call_operand.hbm [shape: bf16[4,8,8,256], index: 0, kind: input, shape index: {}]   ;;  %s6322_s1 = inlined_call_operand.hbm [shape: bf16[1,256,128], index: 1, kind: input, shape index: {}]   ;;  %s6323_s2 = inlined_call_operand.vmem [shape: f32[1,128], index: 2, kind: input, shape index: {}]   ;;  %s6324_s3 = inlined_call_operand.hbm [shape: bf16[9,128,128], index: 3, kind: input, shape index: {}]   ;;  %s6325_s4 = inlined_call_operand.vmem [shape: f32[1,128], index: 4, kind: input, shape index: {}]   ;;  %s6326_s5 = inlined_call_operand.vmem [shape: bf16[4,10,10,128], index: 5, kind: output, shape index: {}]  }
   0x1   :  { %12 = vsyncpa [#allocation4 + $0x1], 0 }
   0x2   :  { %13 = vsyncpa [#allocation6], 0  ;;  %s5038_s18 = smov 0   ;;  %s5040_s19 = smov 0  }
   0x3   :  { %s5042_s20 = smov 0   ;;  %s5044_s21 = smov 0  }
   0x4 LB: > { %s5057_s22 = sadd.s32 4294967295, %s4998_s21   ;;  %p39_p0 = scmp.ne.s32.totalorder %s4990_s19, %s4986_s18  ;;  %s4998_s21 = sphi %s5044_s21, %s6341_s21   ;;  %s4994_s20 = sphi %s5042_s20, %s6340_s20   ;;  %s4990_s19 = sphi %s5040_s19, %s6339_s19   ;;  %s4986_s18 = sphi %s5038_s18, %s6338_s18  }
   0x5   : > { %p40_p1 = scmp.eq.s32.totalorder %s5057_s22, 0  ;;  %p4006_p2 = scmp.ge.s32.totalorder %s4998_s21, 1 }
   0x6   : > { %p160_p3 = scmp.lt.s32.totalorder %s4998_s21, 3  ;;  %p4007_p4 = scmp.ne.s32.totalorder %s5057_s22, 0 }
   0x7   : > { %p5066_p5 = por %p40_p1, %p39_p0  ;;  %s171_s26 = sshll.u32 %s6322_s1, 4  ;;  %s172_s26 = int_to_ptr.hbm [resolvable:$true] %s171_s26 }
   0x8   : > { %p5073_p6 = pnand %p4006_p2, %p160_p3  ;;  %s5000_s28 = smov [#allocation5]  }
   0x9   : > { %s173_s29 = sshll.u32 %s5000_s28, 4  ;;  %s188_s7 = sshll.u32 %s6324_s3, 4  ;;  %s174_s29 = int_to_ptr.vmem [resolvable:$true] %s173_s29  ;;  %s189_s7 = int_to_ptr.hbm [resolvable:$true] %s188_s7 }
   0xa   : > { %p4812_p7 = pneg %p5073_p6  ;;  %s5001_s8 = smov 64  }
   0xb   : > { %s5002_s9 = smov 4   ;;  %s5003_s10 = smov [#allocation7]  }
   0xc   : > { %p4813_p8 = pnand %p4812_p7, %p40_p1  ;;  %s190_s11 = sshll.u32 %s5003_s10, 4  ;;  %s191_s11 = int_to_ptr.vmem [resolvable:$true] %s190_s11 }
   0xd   : > { %s5085_s12 = sadd.s32 1, %s4998_s21   ;;  %s26_s13 = sadd.s32 1, %s4994_s20 }
   0xe   : > { %4815 = dma.hbm_to_vmem [thread:$0]  (!%p4813_p8), %s172_s26, 2048, %s174_s29, [#allocation6], %s5001_s8, %s5001_s8, %s5002_s9  }
   0xf   : > { %4818 = dma.hbm_to_vmem [thread:$0]  (!%p4813_p8), %s189_s7, 9216, %s191_s11, [#allocation6], %s5001_s8, %s5001_s8, %s5002_s9  }
  0x10   : > { %s23_s14 = ssub.s32 %s4998_s21, %s5085_s12  ;;  %p33_p9 = scmp.ne.s32.totalorder %s4994_s20, %s4990_s19 }
  0x11   : > { %p24_p10 = scmp.eq.s32.totalorder %s23_s14, 0  ;;  %p34_p11 = scmp.eq.s32.totalorder %s4998_s21, 0 }
  0x12   : > { %p4825_p12 = scmp.lt.s32.totalorder %s4998_s21, 2  ;;  %s207_s15 = sand.u32 1, %s4994_s20  }
  0x13   : > { %s5096_s16 = scalar_select %p24_p10, %s4994_s20, %s26_s13  }
  0x14   : > { %p35_p13 = por %p34_p11, %p33_p9  ;;  %s4010_s17 = sshll.u32 %s207_s15, 7 }
  0x15   : > { %s4648_s18 = sshll.u32 %s4998_s21, 7  ;;  %s211_s29 = scalar_lea.vmem [#allocation3], %s4010_s17 }
  0x16   : > { %s217_s26 = scalar_lea.hbm %s6321_s0, %s4648_s18  ;;  %s220_s30 = sshll.u32 %s211_s29, 4  ;;  %s221_s30 = int_to_ptr.vmem [resolvable:$true] %s220_s30 }
  0x17   : > { %s218_s28 = sshll.u32 %s217_s26, 4  ;;  %p5102_p0 = pnand %p4825_p12, %p35_p13  ;;  %s219_s28 = int_to_ptr.hbm [resolvable:$true] %s218_s28 }
  0x18   : > { %s208_s7 = scalar_lea.sflag [#allocation4], %s207_s15  ;;  %s4930_s8 = sshra.s32 %s219_s28, 4  ;;  %s4931_s8 = int_to_ptr.hbm [resolvable:$true] %s4930_s8 }
  0x19   : > { %s4932_s9 = scalar_lea.hbm %s4931_s8, 128  ;;  %p4934_p3 = pneg %p5102_p0 }
  0x1a   : > { %p4933_p2 = scmp.ne.s32.totalorder %s4931_s8, %s4932_s9  ;;  %s4937_s11 = scalar_lea.hbm %s6321_s0, 256 }
  0x1b   : > { %p4938_p9 = scmp.lt.s32.totalorder %s4931_s8, %s6321_s0  ;;  %p4939_p10 = scmp.lt.s32.totalorder %s4937_s11, %s4932_s9 }
  0x1c   : > { %p4935_p7 = pnand %p4934_p3, %p4933_p2 }
  0x1d   : > { %p4940_p11 = por %p4939_p10, %p4938_p9 }
  0x1e   : > { %p4936_p8 = pneg %p4935_p7 }
  0x20   : > { %p4941_p12 = pnand %p4940_p11, %p4936_p8 }
  0x22   : > { %4944 = shalt.err (!%p4941_p12)
}
  0x23   : > { %s5004_s15 = smov 128   ;;  %s5005_s17 = smov 8  }
  0x24   : > { %4822 = dma.hbm_to_vmem [thread:$0]  (!%p5102_p0), %s219_s28, 2048, %s221_s30, %s208_s7, %s5004_s15, %s5004_s15, %s5005_s17  }
  0x25   : > { %232 = sbr.rel (%p5073_p6) target bundleno = 875 (0x36b), region = 40  ;;  %s234_s18 = sand.u32 (!%p5073_p6), 1, %s4990_s19  }
  0x26   : > { %s4015_s24 = sshll.u32 (!%p5073_p6), %s234_s18, 7  ;;  %s235_s25 = scalar_lea.sflag (!%p5073_p6), [#allocation4], %s234_s18 }
  0x27   : > { %s5119_s26 = scalar_lea.vmem (!%p5073_p6), [#allocation3], %s4015_s24 }
  0x2a   : > { %4977 = dma.done.wait (%p5066_p5), %s235_s25, 2048  }
  0x2b   : > { %4979 = vsyncadd (%p5066_p5), %s235_s25, 4294965248 }
  0x2c   : > { %4981 = dma.done.wait (%p40_p1), [#allocation6], 11264  }
  0x2d   : > { %4983 = vsyncadd (%p40_p1), [#allocation6], 4294956032  ;;  %s4018_s27 = sshll.u32 %s5057_s22, 1  ;;  %v4672_v0 = vld [vmem:[#allocation5 + $0x38] sm:$0xff]  ;;  %v4671_v2 = vld [vmem:[#allocation5 + $0x30] sm:$0xff] }
  0x2e   : > { %p279_p6 = scmp.lt.s32.totalorder %s4018_s27, 3  ;;  %v4680_v1 = vld [vmem:[#allocation5 + $0x78] sm:$0xff]  ;;  %4777 = vmatpush.bf16.msra.mxu3 %v4672_v0  ;;  %v4679_v3 = vld [vmem:[#allocation5 + $0x70] sm:$0xff]  ;;  %514 = vmatpush.bf16.msra.mxu0 %v4672_v0  ;;  %v4670_v4 = vld [vmem:[#allocation5 + $0x28] sm:$0xff] }
  0x2f   : > { %4785 = vmatpush.bf16.msra.mxu1 %v4680_v1  ;;  %v4678_v5 = vld [vmem:[#allocation5 + $0x68] sm:$0xff]  ;;  %v4669_v6 = vld [vmem:[#allocation5 + $0x20] sm:$0xff]  ;;  %v4668_v8 = vld [vmem:[#allocation5 + $0x18] sm:$0xff] }
  0x30   : > { %s6343_s27 = smov (!%p279_p6, %s4018_s27), 3  ;;  %v4677_v7 = vld [vmem:[#allocation5 + $0x60] sm:$0xff]  ;;  %v4676_v9 = vld [vmem:[#allocation5 + $0x58] sm:$0xff]  ;;  %v4667_v10 = vld [vmem:[#allocation5 + $0x10] sm:$0xff] }
  0x31   : > { %s4801_s28 = smul.u32 80, %s6343_s27  ;;  %v4675_v11 = vld [vmem:[#allocation5 + $0x50] sm:$0xff]  ;;  %v4666_v12 = vld [vmem:[#allocation5 + $0x8] sm:$0xff]  ;;  %v4665_v14 = vld [vmem:[#allocation5] sm:$0xff] }
  0x32   : > { %4778 = vmatpush.bf16.msra.mxu3 %v4671_v2  ;;  %515 = vmatpush.bf16.msra.mxu0 %v4671_v2  ;;  %v4674_v13 = vld [vmem:[#allocation5 + $0x48] sm:$0xff]  ;;  %v4673_v15 = vld [vmem:[#allocation5 + $0x40] sm:$0xff]  ;;  %v4046_v25 = vld [vmem:[%s5119_s26 + $0x30] sm:$0xf] }
  0x33   : > { %s5133_s6 = scalar_lea.vmem %s6326_s5, %s4801_s28  ;;  %4786 = vmatpush.bf16.msra.mxu1 %v4679_v3  ;;  %v4038_v16 = vld [vmem:[%s5119_s26 + $0x20] sm:$0xf]  ;;  %v4654_v17 = vld [vmem:[%s5119_s26 + $0x24] sm:$0xf0]  ;;  %v4653_v18 = vld [vmem:[%s5119_s26 + $0x24] sm:$0xf] }
  0x34   : > { %v4040_v19 = vld [vmem:[%s5119_s26 + $0x28] sm:$0xf0]  ;;  %v4022_v20 = vld [vmem:[%s5119_s26] sm:$0xf]  ;;  %v4650_v21 = vld [vmem:[%s5119_s26 + $0x4] sm:$0xf0]  ;;  %v4039_v22 = vor.u32 %v4654_v17, %v4038_v16 }
  0x35   : > { %v4043_v23 = vor.u32 %v4653_v18, %v4040_v19  ;;  %v4023_v24 = vor.u32 %v4650_v21, %v4022_v20  ;;  %v4656_v26 = vld [vmem:[%s5119_s26 + $0x34] sm:$0xf0]  ;;  %v4655_v27 = vld [vmem:[%s5119_s26 + $0x34] sm:$0xf]  ;;  %v4048_v28 = vld [vmem:[%s5119_s26 + $0x38] sm:$0xf0] }
  0x36   : > { %4779 = vmatpush.bf16.msra.mxu3 %v4670_v4  ;;  %516 = vmatpush.bf16.msra.mxu0 %v4670_v4  ;;  %v4030_v29 = vld [vmem:[%s5119_s26 + $0x10] sm:$0xf]  ;;  %v4652_v30 = vld [vmem:[%s5119_s26 + $0x14] sm:$0xf0]  ;;  %v4047_v31 = vor.u32 %v4656_v26, %v4046_v25  ;;  %v4051_v32 = vor.u32 %v4655_v27, %v4048_v28  ;;  %v4054_v34 = vld [vmem:[%s5119_s26 + $0x40] sm:$0xf] }
  0x37   : > { %4787 = vmatpush.bf16.msra.mxu1 %v4678_v5  ;;  %v4031_v33 = vor.u32 %v4652_v30, %v4030_v29  ;;  %v4658_v35 = vld [vmem:[%s5119_s26 + $0x44] sm:$0xf0]  ;;  %v4657_v36 = vld [vmem:[%s5119_s26 + $0x44] sm:$0xf]  ;;  %v4056_v37 = vld [vmem:[%s5119_s26 + $0x48] sm:$0xf0] }
  0x38   : > { %v4649_v38 = vld [vmem:[%s5119_s26 + $0x4] sm:$0xf]  ;;  %v4024_v39 = vld [vmem:[%s5119_s26 + $0x8] sm:$0xf0]  ;;  %v4055_v40 = vor.u32 %v4658_v35, %v4054_v34  ;;  %v4059_v41 = vor.u32 %v4657_v36, %v4056_v37  ;;  %v4062_v43 = vld [vmem:[%s5119_s26 + $0x50] sm:$0xf] }
  0x39   : > { %v4027_v42 = vor.u32 %v4649_v38, %v4024_v39  ;;  %v4660_v44 = vld [vmem:[%s5119_s26 + $0x54] sm:$0xf0]  ;;  %v4659_v45 = vld [vmem:[%s5119_s26 + $0x54] sm:$0xf]  ;;  %v4064_v46 = vld [vmem:[%s5119_s26 + $0x58] sm:$0xf0] }
  0x3a   : > { %4780 = vmatpush.bf16.msra.mxu3 %v4669_v6  ;;  %517 = vmatpush.bf16.msra.mxu0 %v4669_v6  ;;  %v4651_v47 = vld [vmem:[%s5119_s26 + $0x14] sm:$0xf]  ;;  %v4032_v48 = vld [vmem:[%s5119_s26 + $0x18] sm:$0xf0]  ;;  %v4063_v49 = vor.u32 %v4660_v44, %v4062_v43  ;;  %v4067_v50 = vor.u32 %v4659_v45, %v4064_v46  ;;  %v4070_v52 = vld [vmem:[%s5119_s26 + $0x60] sm:$0xf] }
  0x3b   : > { %4788 = vmatpush.bf16.msra.mxu1 %v4677_v7  ;;  %v4035_v51 = vor.u32 %v4651_v47, %v4032_v48  ;;  %v4662_v53 = vld [vmem:[%s5119_s26 + $0x64] sm:$0xf0]  ;;  %v4661_v54 = vld [vmem:[%s5119_s26 + $0x64] sm:$0xf]  ;;  %v4072_v55 = vld [vmem:[%s5119_s26 + $0x68] sm:$0xf0] }
  0x3c   : > { %v4071_v56 = vor.u32 %v4662_v53, %v4070_v52  ;;  %v4075_v57 = vor.u32 %v4661_v54, %v4072_v55  ;;  %v4078_v58 = vld [vmem:[%s5119_s26 + $0x70] sm:$0xf]  ;;  %v4664_v59 = vld [vmem:[%s5119_s26 + $0x74] sm:$0xf0]  ;;  %v4663_v60 = vld [vmem:[%s5119_s26 + $0x74] sm:$0xf] }
  0x3d   : > { %v4080_v61 = vld [vmem:[%s5119_s26 + $0x78] sm:$0xf0]  ;;  %v4079_v62 = vor.u32 %v4664_v59, %v4078_v58  ;;  %v5170_v2 = vld [vmem:[%s6323_s2] ss:$0 sm:$0xff] }
  0x3e   : > { %4781 = vmatpush.bf16.msra.mxu3 %v4668_v8  ;;  %518 = vmatpush.bf16.msra.mxu0 %v4668_v8  ;;  %v4083_v63 = vor.u32 %v4663_v60, %v4080_v61 }
  0x3f   : > { %4789 = vmatpush.bf16.msra.mxu1 %v4676_v9 }
  0x42   : > { %4782 = vmatpush.bf16.msra.mxu3 %v4667_v10  ;;  %519 = vmatpush.bf16.msra.mxu0 %v4667_v10 }
  0x43   : > { %4790 = vmatpush.bf16.msra.mxu1 %v4675_v11 }
  0x46   : > { %4783 = vmatpush.bf16.msra.mxu3 %v4666_v12  ;;  %520 = vmatpush.bf16.msra.mxu0 %v4666_v12 }
  0x47   : > { %4791 = vmatpush.bf16.msra.mxu1 %v4674_v13 }
  0x4a   : > { %4784 = vmatpush.bf16.msra.mxu3 %v4665_v14  ;;  %521 = vmatpush.bf16.msra.mxu0 %v4665_v14 }
  0x4b   : > { %4792 = vmatpush.bf16.msra.mxu1 %v4673_v15 }
  0x4d   : > { %532 = vmatmul.bf16.vlgmr.msra.gmra.mxu3 %v4039_v22  ;;  %522 = vmatmul.bf16.vlgmr.msra.gmra.mxu0 %v4023_v24 }
  0x4e   : > { %563 = vmatpush.bf16.msrb.mxu0 %v4680_v1  ;;  %581 = vmatmul.bf16.vlgmr.msra.gmra.mxu1 %v4043_v23 }
  0x52   : > { %564 = vmatpush.bf16.msrb.mxu0 %v4679_v3 }
  0x56   : > { %565 = vmatpush.bf16.msrb.mxu0 %v4678_v5 }
  0x5a   : > { %566 = vmatpush.bf16.msrb.mxu0 %v4677_v7 }
  0x5d   : > { %537 = vmatmul.bf16.gmra.mxu3 %v4047_v31  ;;  %527 = vmatmul.bf16.gmra.mxu0 %v4031_v33 }
  0x5e   : > { %567 = vmatpush.bf16.msrb.mxu0 %v4676_v9  ;;  %586 = vmatmul.bf16.gmra.mxu1 %v4051_v32 }
  0x62   : > { %568 = vmatpush.bf16.msrb.mxu0 %v4675_v11 }
  0x66   : > { %569 = vmatpush.bf16.msrb.mxu0 %v4674_v13 }
  0x6a   : > { %570 = vmatpush.bf16.msrb.mxu0 %v4673_v15 }
  0x6d   : > { %542 = vmatmul.bf16.gmra.mxu3 %v4055_v40  ;;  %571 = vmatmul.bf16.vlgmr.msrb.gmra.mxu0 %v4027_v42 }
  0x6e   : > { %591 = vmatmul.bf16.gmra.mxu1 %v4059_v41 }
  0x7d   : > { %547 = vmatmul.bf16.gmra.mxu3 %v4063_v49  ;;  %576 = vmatmul.bf16.gmra.mxu0 %v4035_v51 }
  0x7e   : > { %596 = vmatmul.bf16.gmra.mxu1 %v4067_v50 }
  0x8d   : > { %552 = vmatmul.bf16.gmra.mxu3 %v4071_v56 }
  0x8e   : > { %601 = vmatmul.bf16.gmra.mxu1 %v4075_v57 }
  0x9d   : > { %557 = vmatmul.bf16.gmra.mxu3 %v4079_v62 }
  0x9e   : > { %606 = vmatmul.bf16.gmra.mxu1 %v4083_v63 }
  0xca   : > { %v523_v1 = vpop.f32.mrf.mxu0 }
  0xcb   : > { %v582_v0 = vpop.f32.mrf.mxu1  ;;  %v524_v21 = vadd.f32 %v5170_v2, %v523_v1 }
  0xd0   : > { %v533_v3 = vpop.f32.mrf.mxu3 }
  0xd1   : > { %v534_v4 = vadd.f32 %v5170_v2, %v533_v3 }
  0xd2   : > { %v525_v7 = vpop.f32.mrf.mxu0 }
  0xd3   : > { %v584_v5 = vpop.f32.mrf.mxu1  ;;  %v5173_v6 = vadd.f32 %v582_v0, %v534_v4  ;;  %v526_v30 = vadd.f32 %v5170_v2, %v525_v7 }
  0xd5   : > { %v616_v8 = vmax.f32 %v5173_v6, 0.0 }
  0xd8   : > { %v535_v9 = vpop.f32.mrf.mxu3 }
  0xd9   : > { %v536_v10 = vadd.f32 %v5170_v2, %v535_v9 }
  0xda   : > { %v528_v13 = vpop.f32.mrf.mxu0 }
  0xdb   : > { %v587_v11 = vpop.f32.mrf.mxu1  ;;  %v5177_v12 = vadd.f32 %v584_v5, %v536_v10  ;;  %v529_v39 = vadd.f32 %v5170_v2, %v528_v13 }
  0xdd   : > { %v617_v14 = vmax.f32 %v5177_v12, 0.0 }
  0xe0   : > { %v538_v15 = vpop.f32.mrf.mxu3 }
  0xe1   : > { %v539_v16 = vadd.f32 %v5170_v2, %v538_v15 }
  0xe2   : > { %v530_v19 = vpop.f32.mrf.mxu0 }
  0xe3   : > { %v589_v17 = vpop.f32.mrf.mxu1  ;;  %v5181_v18 = vadd.f32 %v587_v11, %v539_v16  ;;  %v531_v48 = vadd.f32 %v5170_v2, %v530_v19 }
  0xe5   : > { %v618_v20 = vmax.f32 %v5181_v18, 0.0 }
  0xe8   : > { %v540_v22 = vpop.f32.mrf.mxu3 }
  0xe9   : > { %v541_v23 = vadd.f32 %v5170_v2, %v540_v22 }
  0xea   : > { %v572_v26 = vpop.f32.mrf.mxu0 }
  0xeb   : > { %v592_v24 = vpop.f32.mrf.mxu1  ;;  %v5186_v25 = vadd.f32 %v589_v17, %v541_v23  ;;  %v5188_v27 = vadd.f32 %v572_v26, %v524_v21 }
  0xed   : > { %v619_v28 = vmax.f32 %v5186_v25, 0.0  ;;  %v612_v29 = vmax.f32 %v5188_v27, 0.0 }
  0xf0   : > { %v543_v31 = vpop.f32.mrf.mxu3 }
  0xf1   : > { %v544_v32 = vadd.f32 %v5170_v2, %v543_v31 }
  0xf2   : > { %v574_v35 = vpop.f32.mrf.mxu0 }
  0xf3   : > { %v594_v33 = vpop.f32.mrf.mxu1  ;;  %v5194_v34 = vadd.f32 %v592_v24, %v544_v32  ;;  %v5196_v36 = vadd.f32 %v574_v35, %v526_v30 }
  0xf5   : > { %v620_v37 = vmax.f32 %v5194_v34, 0.0  ;;  %v613_v38 = vmax.f32 %v5196_v36, 0.0 }
  0xf8   : > { %v545_v40 = vpop.f32.mrf.mxu3 }
  0xf9   : > { %v546_v41 = vadd.f32 %v5170_v2, %v545_v40 }
  0xfa   : > { %v577_v44 = vpop.f32.mrf.mxu0 }
  0xfb   : > { %v597_v42 = vpop.f32.mrf.mxu1  ;;  %v5202_v43 = vadd.f32 %v594_v33, %v546_v41  ;;  %v5204_v45 = vadd.f32 %v577_v44, %v529_v39 }
  0xfd   : > { %v621_v46 = vmax.f32 %v5202_v43, 0.0  ;;  %v614_v47 = vmax.f32 %v5204_v45, 0.0 }
 0x100   : > { %v548_v49 = vpop.f32.mrf.mxu3 }
 0x101   : > { %v549_v50 = vadd.f32 %v5170_v2, %v548_v49 }
 0x102   : > { %v579_v53 = vpop.f32.mrf.mxu0 }
 0x103   : > { %v599_v51 = vpop.f32.mrf.mxu1  ;;  %v5210_v52 = vadd.f32 %v597_v42, %v549_v50  ;;  %v5212_v54 = vadd.f32 %v579_v53, %v531_v48 }
 0x105   : > { %v622_v55 = vmax.f32 %v5210_v52, 0.0  ;;  %v615_v56 = vmax.f32 %v5212_v54, 0.0 }
 0x108   : > { %v550_v57 = vpop.f32.mrf.mxu3 }
 0x109   : > { %v551_v58 = vadd.f32 %v5170_v2, %v550_v57 }
 0x10b   : > { %v5217_v59 = vadd.f32 %v599_v51, %v551_v58  ;;  %v602_v60 = vpop.f32.mrf.mxu1 }
 0x10d   : > { %v623_v61 = vmax.f32 %v5217_v59, 0.0 }
 0x110   : > { %v553_v62 = vpop.f32.mrf.mxu3 }
 0x111   : > { %v554_v63 = vadd.f32 %v5170_v2, %v553_v62 }
 0x113   : > { %v5221_v0 = vadd.f32 %v602_v60, %v554_v63  ;;  %v604_v3 = vpop.f32.mrf.mxu1 }
 0x115   : > { %v624_v1 = vmax.f32 %v5221_v0, 0.0 }
 0x118   : > { %v555_v4 = vpop.f32.mrf.mxu3 }
 0x119   : > { %v556_v5 = vadd.f32 %v5170_v2, %v555_v4 }
 0x11b   : > { %v5225_v7 = vadd.f32 %v604_v3, %v556_v5  ;;  %v607_v10 = vpop.f32.mrf.mxu1 }
 0x11d   : > { %v625_v9 = vmax.f32 %v5225_v7, 0.0 }
 0x120   : > { %v558_v11 = vpop.f32.mrf.mxu3 }
 0x121   : > { %v559_v13 = vadd.f32 %v5170_v2, %v558_v11 }
 0x123   : > { %v5229_v15 = vadd.f32 %v607_v10, %v559_v13  ;;  %v609_v21 = vpop.f32.mrf.mxu1 }
 0x125   : > { %v626_v16 = vmax.f32 %v5229_v15, 0.0 }
 0x128   : > { %v560_v17 = vpop.f32.mrf.mxu3 }
 0x129   : > { %v561_v19 = vadd.f32 %v5170_v2, %v560_v17  ;;  %631 = sbr.rel (%p4007_p4) target bundleno = 343 (0x157), region = 56 }
 0x12b   : > { %v5233_v22 = vadd.f32 %v609_v21, %v561_v19 }
 0x12d   : > { %v627_v23 = vmax.f32 %v5233_v22, 0.0 }
 0x12e   : > { %v5006_v24 = vmov 0  }
 0x12f   : > { %632 = vst [vmem:[#allocation2] sm:$0xf] %v5006_v24 }
 0x130   : > { %633 = vst [vmem:[#allocation2 + $0x4] sm:$0x1] %v5006_v24 }
 0x131   : > { %634 = vst [vmem:[#allocation2 + $0x8] sm:$0xf] %v5006_v24 }
 0x132   : > { %635 = vst [vmem:[#allocation2 + $0xc] sm:$0x1] %v5006_v24 }
 0x133   : > { %636 = vst [vmem:[#allocation2 + $0x10] sm:$0xf] %v5006_v24 }
 0x134   : > { %637 = vst [vmem:[#allocation2 + $0x14] sm:$0x1] %v5006_v24 }
 0x135   : > { %638 = vst [vmem:[#allocation2 + $0x18] sm:$0xf] %v5006_v24 }
 0x136   : > { %639 = vst [vmem:[#allocation2 + $0x1c] sm:$0x1] %v5006_v24 }
 0x137   : > { %640 = vst [vmem:[#allocation2 + $0x20] sm:$0xf] %v5006_v24 }
 0x138   : > { %641 = vst [vmem:[#allocation2 + $0x24] sm:$0x1] %v5006_v24 }
 0x139   : > { %642 = vst [vmem:[#allocation2 + $0x28] sm:$0xf] %v5006_v24 }
 0x13a   : > { %643 = vst [vmem:[#allocation2 + $0x2c] sm:$0x1] %v5006_v24 }
 0x13b   : > { %644 = vst [vmem:[#allocation2 + $0x30] sm:$0xf] %v5006_v24 }
 0x13c   : > { %645 = vst [vmem:[#allocation2 + $0x34] sm:$0x1] %v5006_v24 }
 0x13d   : > { %646 = vst [vmem:[#allocation2 + $0x38] sm:$0xf] %v5006_v24 }
 0x13e   : > { %647 = vst [vmem:[#allocation2 + $0x3c] sm:$0x1] %v5006_v24 }
 0x13f   : > { %648 = vst [vmem:[#allocation2 + $0x40] sm:$0xf] %v5006_v24 }
 0x140   : > { %649 = vst [vmem:[#allocation2 + $0x44] sm:$0x1] %v5006_v24 }
 0x141   : > { %650 = vst [vmem:[#allocation2 + $0x48] sm:$0xf] %v5006_v24 }
 0x142   : > { %651 = vst [vmem:[#allocation2 + $0x4c] sm:$0x1] %v5006_v24 }
 0x143   : > { %652 = vst [vmem:[#allocation2 + $0x50] sm:$0xf] %v5006_v24 }
 0x144   : > { %653 = vst [vmem:[#allocation2 + $0x54] sm:$0x1] %v5006_v24 }
 0x145   : > { %654 = vst [vmem:[#allocation2 + $0x58] sm:$0xf] %v5006_v24 }
 0x146   : > { %655 = vst [vmem:[#allocation2 + $0x5c] sm:$0x1] %v5006_v24 }
 0x147   : > { %656 = vst [vmem:[#allocation2 + $0x60] sm:$0xf] %v5006_v24 }
 0x148   : > { %657 = vst [vmem:[#allocation2 + $0x64] sm:$0x1] %v5006_v24 }
 0x149   : > { %658 = vst [vmem:[#allocation2 + $0x68] sm:$0xf] %v5006_v24 }
 0x14a   : > { %659 = vst [vmem:[#allocation2 + $0x6c] sm:$0x1] %v5006_v24 }
 0x14b   : > { %660 = vst [vmem:[#allocation2 + $0x70] sm:$0xf] %v5006_v24 }
 0x14c   : > { %661 = vst [vmem:[#allocation2 + $0x74] sm:$0x1] %v5006_v24 }
 0x14d   : > { %662 = vst [vmem:[#allocation2 + $0x78] sm:$0xf] %v5006_v24 }
 0x14e   : > { %663 = vst [vmem:[#allocation2 + $0x7c] sm:$0x1] %v5006_v24 }
 0x14f   : > { %664 = vst [vmem:[#allocation2 + $0x80] sm:$0xf] %v5006_v24 }
 0x150   : > { %665 = vst [vmem:[#allocation2 + $0x84] sm:$0x1] %v5006_v24 }
 0x151   : > { %666 = vst [vmem:[#allocation2 + $0x88] sm:$0xf] %v5006_v24 }
 0x152   : > { %667 = vst [vmem:[#allocation2 + $0x8c] sm:$0x1] %v5006_v24 }
 0x153   : > { %668 = vst [vmem:[#allocation2 + $0x90] sm:$0xf] %v5006_v24 }
 0x154   : > { %669 = vst [vmem:[#allocation2 + $0x94] sm:$0x1] %v5006_v24 }
 0x155   : > { %670 = vst [vmem:[#allocation2 + $0x98] sm:$0xf] %v5006_v24 }
 0x156   : > { %671 = vst [vmem:[#allocation2 + $0x9c] sm:$0x1] %v5006_v24 }
 0x157 PF: > { %v4704_v2 = vld [vmem:[#allocation7 + $0x78] sm:$0xff]  ;;  %v672_v30 = vpack.c.bf16 %v612_v29, %v612_v29  ;;  %v675_v31 = vpack.c.bf16 %v615_v56, %v615_v56  ;;  %vm849_vm0 = vcmask 1043456   ;;  %v676_v32 = vpack.c.bf16 %v616_v8, %v616_v8  ;;  %v4703_v33 = vld [vmem:[#allocation7 + $0x70] sm:$0xff]  ;;  %v4702_v6 = vld [vmem:[#allocation7 + $0x68] sm:$0xff] }
 0x158   : > { %v4696_v26 = vld [vmem:[#allocation7 + $0x38] sm:$0xff]  ;;  %1323 = vmatpush.bf16.msra.mxu0 %v4704_v2  ;;  %4793 = vmatpush.bf16.msra.mxu2 %v4704_v2  ;;  %vm850_vm1 = vsmask.f32 7938  ;;  %v4695_v27 = vld [vmem:[#allocation7 + $0x30] sm:$0xff]  ;;  %vm855_vm2 = vcmask 1040384   ;;  %v5250_v42 = vpack.c.bf16 %v613_v38, %v613_v38  ;;  %v4694_v56 = vld [vmem:[#allocation7 + $0x28] sm:$0xff]  ;;  %v5283_v45 = vpack.c.bf16 %v617_v14, %v617_v14 }
 0x159   : > { %v689_v35 = vshrl.u32 %v672_v30, 16  ;;  %v692_v39 = vshll.u32 %v672_v30, 16  ;;  %v713_v40 = vshrl.u32 %v675_v31, 16  ;;  %1468 = vmatpush.bf16.msrb.mxu3 %v4696_v26  ;;  %vm856_vm3 = vsmask.f32 256  ;;  %vm5253_vm4 = vmand %vm849_vm0, %vm850_vm1  ;;  %v4701_v3 = vld [vmem:[#allocation7 + $0x60] sm:$0xff] }
 0x15a   : > { %v716_v29 = vshll.u32 %v675_v31, 16  ;;  %v852_v44 = vld [vmem:[#allocation2 + $0x8] sm:$0xf]  ;;  %v721_v49 = vshrl.u32 %v676_v32, 16  ;;  %vm5257_vm5 = vmand %vm855_vm2, %vm856_vm3  ;;  %v858_v36 = vld [vmem:[#allocation2 + $0xc] sm:$0x1] }
 0x15b   : > { %v691_v41 = vrot.slane %v689_v35, 7  ;;  %v715_v48 = vrot.slane %v713_v40, 7  ;;  %v951_v38 = vld [vmem:[#allocation2] sm:$0xf]  ;;  %v724_v54 = vshll.u32 %v676_v32, 16  ;;  %v697_v17 = vshrl.u32 %v5250_v42, 16 }
 0x15c   : > { %1324 = vmatpush.bf16.msra.mxu0 %v4703_v33  ;;  %4794 = vmatpush.bf16.msra.mxu2 %v4703_v33  ;;  %v5261_v57 = vld [vmem:[#allocation2 + $0x4] sm:$0x1]  ;;  %v1003_v58 = vshrl.u32 %v951_v38, 16  ;;  %v1006_v60 = vshll.u32 %v951_v38, 16  ;;  %v723_v10 = vrot.slane %v721_v49, 7  ;;  %v674_v35 = vpack.c.bf16 %v614_v47, %v614_v47  ;;  %v4692_v47 = vld [vmem:[#allocation7 + $0x18] sm:$0xff] }
 0x15d   : > { %v694_v50 = vor.u32 %v692_v39, %v691_v41  ;;  %v695_v51 = vrot.slane %v691_v41, 4  ;;  %1469 = vmatpush.bf16.msrb.mxu3 %v4695_v27  ;;  %v718_v62 = vor.u32 %v716_v29, %v715_v48  ;;  %v719_v63 = vrot.slane %v715_v48, 4  ;;  %v873_v11 = vld [vmem:[#allocation2 + $0x20] sm:$0xf]  ;;  %v876_v13 = vld [vmem:[#allocation2 + $0x24] sm:$0x1] }
 0x15e   : > { %v1005_v19 = vrot.slane %v1003_v58, 4  ;;  %v1008_v21 = vrot.slane %v1006_v60, 5  ;;  %v879_v26 = vld [vmem:[#allocation2 + $0x28] sm:$0xf]  ;;  %v1012_v30 = vshll.u32 %v5261_v57, 16  ;;  %v726_v31 = vor.u32 %v724_v54, %v723_v10  ;;  %v4693_v39 = vld [vmem:[#allocation7 + $0x20] sm:$0xff] }
 0x15f   : > { %v853_v4 = vsel %vm5253_vm4, %v694_v50, %v852_v44  ;;  %v859_v5 = vsel %vm5257_vm5, %v695_v51, %v858_v36  ;;  %v874_v24 = vsel %vm5253_vm4, %v718_v62, %v873_v11  ;;  %v877_v2 = vsel %vm5257_vm5, %v719_v63, %v876_v13  ;;  %v882_v33 = vld [vmem:[#allocation2 + $0x2c] sm:$0x1]  ;;  %v4728_v27 = vld [vmem:[#allocation7 + $0xf8] sm:$0xff]  ;;  %v4727_v48 = vld [vmem:[#allocation7 + $0xf0] sm:$0xff] }
 0x160   : > { %854 = vst [vmem:[#allocation2 + $0x8] sm:$0xf] %v853_v4  ;;  %1325 = vmatpush.bf16.msra.mxu0 %v4702_v6  ;;  %4795 = vmatpush.bf16.msra.mxu2 %v4702_v6  ;;  %v727_v32 = vrot.slane %v723_v10, 4  ;;  %vm999_vm6 = vsmask.f32 3328  ;;  %v1009_v40 = vor.u32 %v1008_v21, %v1005_v19  ;;  %v4700_v29 = vld [vmem:[#allocation7 + $0x58] sm:$0xff]  ;;  %v880_v41 = vsel %vm5253_vm4, %v726_v31, %v879_v26 }
 0x161   : > { %860 = vst [vmem:[#allocation2 + $0xc] sm:$0x1] %v859_v5  ;;  %1470 = vmatpush.bf16.msrb.mxu3 %v4694_v56  ;;  %v699_v44 = vrot.slane %v697_v17, 7  ;;  %vm1000_vm7 = vsmask.f32 7440  ;;  %1923 = vmatpush.bf16.msrb.mxu1 %v4728_v27  ;;  %v5285_v49 = vrot.slane %v1012_v30, 5  ;;  %v5304_v17 = vpack.c.bf16 %v618_v20, %v618_v20 }
 0x162   : > { %875 = vst [vmem:[#allocation2 + $0x20] sm:$0xf] %v874_v24  ;;  %v883_v6 = vsel %vm5257_vm5, %v727_v32, %v882_v33  ;;  %v700_v50 = vshll.u32 %v5250_v42, 16  ;;  %v705_v36 = vshrl.u32 %v674_v35, 16  ;;  %v5288_v38 = vrot.slane %v1009_v40, 4  ;;  %v4699_v56 = vld [vmem:[#allocation7 + $0x50] sm:$0xff]  ;;  %vm5297_vm8 = vmor %vm999_vm6, %vm1000_vm7 }
 0x163   : > { %878 = vst [vmem:[#allocation2 + $0x24] sm:$0x1] %v877_v2  ;;  %v703_v51 = vrot.slane %v699_v44, 4  ;;  %v708_v12 = vshll.u32 %v674_v35, 16  ;;  %v861_v14 = vld [vmem:[#allocation2 + $0x10] sm:$0xf] }
 0x164   : > { %881 = vst [vmem:[#allocation2 + $0x28] sm:$0xf] %v880_v41  ;;  %1326 = vmatpush.bf16.msra.mxu0 %v4701_v3  ;;  %4796 = vmatpush.bf16.msra.mxu2 %v4701_v3  ;;  %v864_v54 = vld [vmem:[#allocation2 + $0x14] sm:$0x1]  ;;  %v4726_v60 = vld [vmem:[#allocation7 + $0xe8] sm:$0xff]  ;;  %v702_v62 = vor.u32 %v700_v50, %v699_v44  ;;  %v707_v63 = vrot.slane %v705_v36, 7 }
 0x165   : > { %884 = vst [vmem:[#allocation2 + $0x2c] sm:$0x1] %v883_v6  ;;  %1471 = vmatpush.bf16.msrb.mxu3 %v4693_v39  ;;  %v865_v3 = vsel %vm5257_vm5, %v703_v51, %v864_v54  ;;  %v729_v4 = vshrl.u32 %v5283_v45, 16  ;;  %v4691_v5 = vld [vmem:[#allocation7 + $0x10] sm:$0xff]  ;;  %1924 = vmatpush.bf16.msrb.mxu1 %v4727_v48  ;;  %v867_v30 = vld [vmem:[#allocation2 + $0x18] sm:$0xf]  ;;  %v1015_v39 = vsel %vm5297_vm8, %v5288_v38, %v5285_v49 }
 0x166   : > { %866 = vst [vmem:[#allocation2 + $0x14] sm:$0x1] %v865_v3  ;;  %v710_v24 = vor.u32 %v708_v12, %v707_v63  ;;  %v711_v2 = vrot.slane %v707_v63, 4  ;;  %v862_v26 = vsel %vm5253_vm4, %v702_v62, %v861_v14  ;;  %v4698_v20 = vld [vmem:[#allocation7 + $0x48] sm:$0xff]  ;;  %v4725_v51 = vld [vmem:[#allocation7 + $0xe0] sm:$0xff]  ;;  %v737_v34 = vshrl.u32 %v5304_v17, 16 }
 0x167   : > { %v952_v58 = vld [vmem:[#allocation2 + $0x8] sm:$0xf]  ;;  %863 = vst [vmem:[#allocation2 + $0x10] sm:$0xf] %v862_v26  ;;  %v731_v12 = vrot.slane %v729_v4, 7  ;;  %v5333_v4 = vpack.c.bf16 %v620_v37, %v620_v37  ;;  %vm1565_vm9 = vcmask 1042432  }
 0x168   : > { %v5293_v42 = vld [vmem:[#allocation2 + $0xc] sm:$0x1]  ;;  %v1017_v11 = vshrl.u32 %v952_v58, 16  ;;  %v1020_v13 = vshll.u32 %v952_v58, 16  ;;  %1327 = vmatpush.bf16.msra.mxu0 %v4700_v29  ;;  %4797 = vmatpush.bf16.msra.mxu2 %v4700_v29  ;;  %v868_v41 = vsel %vm5253_vm4, %v710_v24, %v867_v30  ;;  %v5321_v63 = vld [vmem:[#allocation2] sm:$0xf]  ;;  %v1243_v24 = vunpack.c.l.b16 %v1015_v39 }
 0x169   : > { %v1026_v19 = vshll.u32 %v5293_v42, 16  ;;  %v955_v21 = vld [vmem:[#allocation2 + $0x20] sm:$0xf]  ;;  %1472 = vmatpush.bf16.msrb.mxu3 %v4692_v47  ;;  %1925 = vmatpush.bf16.msrb.mxu1 %v4726_v60  ;;  %869 = vst [vmem:[#allocation2 + $0x18] sm:$0xf] %v868_v41  ;;  %v4690_v14 = vld [vmem:[#allocation7 + $0x8] sm:$0xff] }
 0x16a   : > { %v1019_v31 = vrot.slane %v1017_v11, 4  ;;  %v1022_v32 = vrot.slane %v1020_v13, 5  ;;  %v5309_v33 = vld [vmem:[#allocation2 + $0x24] sm:$0x1]  ;;  %v1059_v18 = vshrl.u32 %v955_v21, 16  ;;  %v1062_v35 = vshll.u32 %v955_v21, 16 }
 0x16b   : > { %v1028_v40 = vrot.slane %v1026_v19, 5  ;;  %v956_v27 = vld [vmem:[#allocation2 + $0x28] sm:$0xf]  ;;  %v1068_v29 = vshll.u32 %v5309_v33, 16  ;;  %v870_v3 = vld [vmem:[#allocation2 + $0x1c] sm:$0x1] }
 0x16c   : > { %v1023_v6 = vor.u32 %v1022_v32, %v1019_v31  ;;  %v5318_v44 = vld [vmem:[#allocation2 + $0x2c] sm:$0x1]  ;;  %v1061_v47 = vrot.slane %v1059_v18, 4  ;;  %v1064_v48 = vrot.slane %v1062_v35, 5  ;;  %v1073_v50 = vshrl.u32 %v956_v27, 16  ;;  %1328 = vmatpush.bf16.msra.mxu0 %v4699_v56  ;;  %4798 = vmatpush.bf16.msra.mxu2 %v4699_v56  ;;  %v4724_v31 = vld [vmem:[#allocation7 + $0xd8] sm:$0xff] }
 0x16d   : > { %v1070_v36 = vrot.slane %v1068_v29, 5  ;;  %v1076_v49 = vshll.u32 %v956_v27, 16  ;;  %v1082_v38 = vshll.u32 %v5318_v44, 16  ;;  %1473 = vmatpush.bf16.msrb.mxu3 %v4691_v5  ;;  %v732_v11 = vshll.u32 %v5283_v45, 16  ;;  %v5324_v13 = vld [vmem:[#allocation2 + $0x4] sm:$0xf0]  ;;  %1926 = vmatpush.bf16.msrb.mxu1 %v4725_v51 }
 0x16e   : > { %v1024_v54 = vrot.slane %v1023_v6, 4  ;;  %v1065_v58 = vor.u32 %v1064_v48, %v1061_v47  ;;  %v1075_v62 = vrot.slane %v1073_v50, 4  ;;  %v871_v56 = vsel %vm5257_vm5, %v711_v2, %v870_v3  ;;  %v5328_v19 = vld [vmem:[#allocation2 + $0x14] sm:$0x1]  ;;  %v885_v30 = vld [vmem:[#allocation2 + $0x30] sm:$0xf] }
 0x16f   : > { %v1078_v60 = vrot.slane %v1076_v49, 5  ;;  %v735_v21 = vrot.slane %v731_v12, 4  ;;  %872 = vst [vmem:[#allocation2 + $0x1c] sm:$0x1] %v871_v56  ;;  %v734_v45 = vor.u32 %v732_v11, %v731_v12  ;;  %v4697_v2 = vld [vmem:[#allocation7 + $0x40] sm:$0xff]  ;;  %v1084_v35 = vrot.slane %v1082_v38, 5 }
 0x170   : > { %v1029_v5 = vsel %vm5297_vm8, %v1024_v54, %v1028_v40  ;;  %v1066_v26 = vrot.slane %v1065_v58, 4  ;;  %1329 = vmatpush.bf16.msra.mxu0 %v4698_v20  ;;  %4799 = vmatpush.bf16.msra.mxu2 %v4698_v20  ;;  %v888_v37 = vld [vmem:[#allocation2 + $0x34] sm:$0x1]  ;;  %v4689_v27 = vld [vmem:[#allocation7] sm:$0xff]  ;;  %v4736_v40 = vld [vmem:[#allocation7 + $0x138] sm:$0xff]  ;;  %v740_v41 = vshll.u32 %v5304_v17, 16  ;;  %v4184_v48 = vor.u32 %v5324_v13, %v5321_v63 }
 0x171   : > { %v1244_v32 = vunpack.c.l.b16 %v1029_v5  ;;  %v1079_v18 = vor.u32 %v1078_v60, %v1075_v62  ;;  %1474 = vmatpush.bf16.msrb.mxu3 %v4690_v14  ;;  %v953_v29 = vld [vmem:[#allocation2 + $0x10] sm:$0xf]  ;;  %v886_v6 = vsel %vm5253_vm4, %v734_v45, %v885_v30  ;;  %v889_v20 = vsel %vm5257_vm5, %v735_v21, %v888_v37  ;;  %v4712_v50 = vld [vmem:[#allocation7 + $0xb8] sm:$0xff]  ;;  %1927 = vmatpush.bf16.msrb.mxu1 %v4724_v31  ;;  %v4722_v37 = vld [vmem:[#allocation7 + $0xc8] sm:$0xff] }
 0x172   : > { %v1071_v39 = vsel %vm5297_vm8, %v1066_v26, %v1070_v36  ;;  %v1031_v51 = vshrl.u32 %v953_v29, 16  ;;  %v1040_v49 = vshll.u32 %v5328_v19, 16  ;;  %887 = vst [vmem:[#allocation2 + $0x30] sm:$0xf] %v886_v6  ;;  %v954_v12 = vld [vmem:[#allocation2 + $0x18] sm:$0xf] }
 0x173   : > { %v1080_v47 = vrot.slane %v1079_v18, 4  ;;  %v1259_v36 = vpack.c.b16 %v1244_v32, %v1243_v24  ;;  %v1247_v38 = vunpack.c.l.b16 %v1071_v39  ;;  %v1034_v14 = vshll.u32 %v953_v29, 16  ;;  %890 = vst [vmem:[#allocation2 + $0x34] sm:$0x1] %v889_v20  ;;  %v891_v3 = vld [vmem:[#allocation2 + $0x38] sm:$0xf] }
 0x174   : > { %v739_v17 = vrot.slane %v737_v34, 7  ;;  %1330 = vmatpush.bf16.msra.mxu0 %v4697_v2  ;;  %4800 = vmatpush.bf16.msra.mxu2 %v4697_v2  ;;  %v1033_v58 = vrot.slane %v1031_v51, 4  ;;  %v1045_v62 = vshrl.u32 %v954_v12, 16  ;;  %v1048_v63 = vshll.u32 %v954_v12, 16  ;;  %v4723_v11 = vld [vmem:[#allocation7 + $0xd0] sm:$0xff]  ;;  %v4734_v29 = vld [vmem:[#allocation7 + $0x128] sm:$0xff] }
 0x175   : > { %v1085_v54 = vsel %vm5297_vm8, %v1080_v47, %v1084_v35  ;;  %1475 = vmatpush.bf16.msrb.mxu3 %v4689_v27  ;;  %v4711_v13 = vld [vmem:[#allocation7 + $0xb0] sm:$0xff]  ;;  %v1036_v56 = vrot.slane %v1034_v14, 5  ;;  %v894_v24 = vld [vmem:[#allocation2 + $0x3c] sm:$0x1]  ;;  %v1042_v30 = vrot.slane %v1040_v49, 5  ;;  %1928 = vmatpush.bf16.msrb.mxu1 %v4723_v11  ;;  %v4710_v27 = vld [vmem:[#allocation7 + $0xa8] sm:$0xff] }
 0x176   : > { %v1248_v60 = vunpack.c.l.b16 %v1085_v54  ;;  %v742_v21 = vor.u32 %v740_v41, %v739_v17  ;;  %v743_v5 = vrot.slane %v739_v17, 4  ;;  %v4735_v26 = vld [vmem:[#allocation7 + $0x130] sm:$0xff]  ;;  %v5350_v45 = vld [vmem:[#allocation2 + $0x1c] sm:$0x1]  ;;  %v1047_v31 = vrot.slane %v1045_v62, 4 }
 0x177   : > { %v1050_v2 = vrot.slane %v1048_v63, 5  ;;  %1331 = vmatmul.bf16.vlgmr.msra.gmra.mxu0 %v1259_v36  ;;  %v1037_v18 = vor.u32 %v1036_v56, %v1033_v58  ;;  %v1054_v35 = vshll.u32 %v5350_v45, 16  ;;  %v753_v41 = vshrl.u32 %v5333_v4, 16  ;;  %v959_v20 = vld [vmem:[#allocation2 + $0x50] sm:$0xf] }
 0x178   : > { %2341 = vmatpush.bf16.msrb.mxu2 %v4736_v40  ;;  %1729 = vmatpush.bf16.msrb.mxu0 %v4712_v50  ;;  %v1261_v32 = vpack.c.b16 %v1248_v60, %v1247_v38  ;;  %v892_v34 = vsel %vm5253_vm4, %v742_v21, %v891_v3  ;;  %v895_v40 = vsel %vm5257_vm5, %v743_v5, %v894_v24  ;;  %v756_v6 = vshll.u32 %v5333_v4, 16  ;;  %v4721_v4 = vld [vmem:[#allocation7 + $0xc0] sm:$0xff]  ;;  %v903_v11 = vld [vmem:[#allocation2 + $0x58] sm:$0xf]  ;;  %v906_v60 = vld [vmem:[#allocation2 + $0x5c] sm:$0x1] }
 0x179   : > { %1476 = vmatmul.bf16.vlgmr.msrb.gmra.mxu3 %v4184_v48  ;;  %v1051_v39 = vor.u32 %v1050_v2, %v1047_v31  ;;  %893 = vst [vmem:[#allocation2 + $0x38] sm:$0xf] %v892_v34  ;;  %v1038_v47 = vrot.slane %v1037_v18, 4  ;;  %v1056_v50 = vrot.slane %v1054_v35, 5  ;;  %v957_v51 = vld [vmem:[#allocation2 + $0x30] sm:$0xf]  ;;  %1929 = vmatpush.bf16.msrb.mxu1 %v4722_v37 }
 0x17a   : > { %1341 = vmatmul.bf16.vlgmr.msra.gmra.mxu2 %v1261_v32  ;;  %896 = vst [vmem:[#allocation2 + $0x3c] sm:$0x1] %v895_v40  ;;  %v5359_v49 = vld [vmem:[#allocation2 + $0x34] sm:$0x1]  ;;  %v1087_v36 = vshrl.u32 %v957_v51, 16  ;;  %v1090_v38 = vshll.u32 %v957_v51, 16 }
 0x17b   : > { %v1052_v48 = vrot.slane %v1051_v39, 4  ;;  %v755_v12 = vrot.slane %v753_v41, 7  ;;  %v1043_v14 = vsel %vm5297_vm8, %v1038_v47, %v1042_v30  ;;  %v1096_v17 = vshll.u32 %v5359_v49, 16  ;;  %v4187_v31 = vld [vmem:[#allocation2 + $0x10] sm:$0xf]  ;;  %v4733_v18 = vld [vmem:[#allocation7 + $0x120] sm:$0xff] }
 0x17c   : > { %1730 = vmatpush.bf16.msrb.mxu0 %v4711_v13  ;;  %2342 = vmatpush.bf16.msrb.mxu2 %v4735_v26  ;;  %v1115_v54 = vshrl.u32 %v959_v20, 16  ;;  %v1118_v58 = vshll.u32 %v959_v20, 16  ;;  %v1089_v63 = vrot.slane %v1087_v36, 4  ;;  %v1092_v3 = vrot.slane %v1090_v38, 5  ;;  %v4709_v13 = vld [vmem:[#allocation7 + $0xa0] sm:$0xff] }
 0x17d   : > { %v1057_v62 = vsel %vm5297_vm8, %v1052_v48, %v1056_v50  ;;  %v758_v56 = vor.u32 %v756_v6, %v755_v12  ;;  %v759_v21 = vrot.slane %v755_v12, 4  ;;  %v1245_v5 = vunpack.c.l.b16 %v1043_v14  ;;  %v4682_v2 = vld [vmem:[#allocation2 + $0x14] sm:$0xf0]  ;;  %v5366_v32 = vld [vmem:[#allocation2 + $0x54] sm:$0x1]  ;;  %1930 = vmatpush.bf16.msrb.mxu1 %v4721_v4 }
 0x17e   : > { %v1246_v24 = vunpack.c.l.b16 %v1057_v62  ;;  %v1093_v26 = vor.u32 %v1092_v3, %v1089_v63  ;;  %v1098_v30 = vrot.slane %v1096_v17, 5  ;;  %v1117_v39 = vrot.slane %v1115_v54, 4  ;;  %v1517_v40 = vld [vmem:[#allocation2] sm:$0xe]  ;;  %v1518_v50 = vld [vmem:[#allocation2 + $0x8] sm:$0xe] }
 0x17f   : > { %v904_v34 = vsel %vm5253_vm4, %v758_v56, %v903_v11  ;;  %v907_v37 = vsel %vm5257_vm5, %v759_v21, %v906_v60  ;;  %v4295_v51 = vld [vmem:[#allocation2 + $0x8] sm:$0xf]  ;;  %v1124_v36 = vshll.u32 %v5366_v32, 16  ;;  %v4713_v38 = vld [vmem:[#allocation2 + $0xc] sm:$0xf0]  ;;  %v681_v12 = vpack.c.bf16 %v621_v46, %v621_v46 }
 0x180   : > { %1731 = vmatpush.bf16.msrb.mxu0 %v4710_v27  ;;  %2343 = vmatpush.bf16.msrb.mxu2 %v4734_v29  ;;  %v958_v35 = vld [vmem:[#allocation2 + $0x38] sm:$0xf]  ;;  %v1120_v27 = vrot.slane %v1118_v58, 5  ;;  %v1094_v6 = vrot.slane %v1093_v26, 4  ;;  %905 = vst [vmem:[#allocation2 + $0x58] sm:$0xf] %v904_v34  ;;  %v682_v14 = vpack.c.bf16 %v622_v55, %v622_v55  ;;  %v1260_v54 = vpack.c.b16 %v1246_v24, %v1245_v5 }
 0x181   : > { %v5372_v41 = vld [vmem:[#allocation2 + $0x3c] sm:$0x1]  ;;  %v1101_v20 = vshrl.u32 %v958_v35, 16  ;;  %v1104_v47 = vshll.u32 %v958_v35, 16  ;;  %908 = vst [vmem:[#allocation2 + $0x5c] sm:$0x1] %v907_v37  ;;  %v4188_v62 = vor.u32 %v4682_v2, %v4187_v31 }
 0x182   : > { %v4708_v29 = vld [vmem:[#allocation7 + $0x98] sm:$0xff]  ;;  %v1110_v48 = vshll.u32 %v5372_v41, 16  ;;  %vm1566_vm10 = vcmask 1046532   ;;  %v1099_v58 = vsel %vm5297_vm8, %v1094_v6, %v1098_v30  ;;  %v1121_v63 = vor.u32 %v1120_v27, %v1117_v39  ;;  %v4707_v5 = vld [vmem:[#allocation7 + $0x90] sm:$0xff]  ;;  %v909_v37 = vld [vmem:[#allocation2 + $0x60] sm:$0xf] }
 0x183   : > { %v1103_v17 = vrot.slane %v1101_v20, 4  ;;  %v1106_v4 = vrot.slane %v1104_v47, 5  ;;  %v4245_v46 = vrot.slane %v1517_v40, 9  ;;  %v1570_v52 = vrot.slane %v5261_v57, 5  ;;  %vm5385_vm11 = vmor %vm1565_vm9, %vm1566_vm10  ;;  %v912_v47 = vld [vmem:[#allocation2 + $0x64] sm:$0x1] }
 0x184   : > { %1732 = vmatpush.bf16.msrb.mxu0 %v4709_v13  ;;  %2344 = vmatpush.bf16.msrb.mxu2 %v4733_v18  ;;  %v1112_v3 = vrot.slane %v1110_v48, 5  ;;  %v4246_v11 = vrot.slane %v1518_v50, 9  ;;  %v1574_v60 = vrot.slane %v5293_v42, 5  ;;  %v4296_v13 = vor.u32 %v4713_v38, %v4295_v51  ;;  %v915_v38 = vld [vmem:[#allocation2 + $0x68] sm:$0xf] }
 0x185   : > { %v1107_v43 = vor.u32 %v1106_v4, %v1103_v17  ;;  %v761_v56 = vshrl.u32 %v681_v12, 16  ;;  %v1126_v24 = vrot.slane %v1124_v36, 5  ;;  %v764_v26 = vshll.u32 %v681_v12, 16  ;;  %v4195_v25 = vld [vmem:[#allocation2 + $0x30] sm:$0xf] }
 0x186   : > { %v1249_v30 = vunpack.c.l.b16 %v1099_v58  ;;  %v1122_v31 = vrot.slane %v1121_v63, 4  ;;  %1931 = vmatmul.bf16.vlgmr.msrb.gmra.mxu1 %v4296_v13  ;;  %v769_v57 = vshrl.u32 %v682_v14, 16  ;;  %v5394_v42 = vsel %vm5385_vm11, %v4245_v46, %v1570_v52  ;;  %v1519_v58 = vld [vmem:[#allocation2 + $0x10] sm:$0xe]  ;;  %v5405_v63 = vld [vmem:[#allocation2 + $0x24] sm:$0xf0] }
 0x187   : > { %v1108_v21 = vrot.slane %v1107_v43, 4  ;;  %1336 = vmatmul.bf16.gmra.mxu0 %v1260_v54  ;;  %v763_v2 = vrot.slane %v761_v56, 7  ;;  %v960_v35 = vld [vmem:[#allocation2 + $0x58] sm:$0xf]  ;;  %v772_v34 = vshll.u32 %v682_v14, 16  ;;  %v1575_v20 = vsel %vm5385_vm11, %v4246_v11, %v1574_v60 }
 0x188   : > { %1733 = vmatpush.bf16.msrb.mxu0 %v4708_v29  ;;  %v5396_v27 = vld [vmem:[#allocation2 + $0x5c] sm:$0x1]  ;;  %v1129_v40 = vshrl.u32 %v960_v35, 16  ;;  %v1132_v6 = vshll.u32 %v960_v35, 16  ;;  %v4706_v29 = vld [vmem:[#allocation7 + $0x88] sm:$0xff]  ;;  %v771_v36 = vrot.slane %v769_v57, 7  ;;  %v1127_v14 = vsel %vm5297_vm8, %v1122_v31, %v1126_v24 }
 0x189   : > { %v1113_v18 = vsel %vm5297_vm8, %v1108_v21, %v1112_v3  ;;  %1481 = vmatmul.bf16.gmra.mxu3 %v4188_v62  ;;  %v1138_v50 = vshll.u32 %v5396_v27, 16  ;;  %v766_v51 = vor.u32 %v764_v26, %v763_v2  ;;  %v767_v48 = vrot.slane %v763_v2, 4  ;;  %v918_v54 = vld [vmem:[#allocation2 + $0x6c] sm:$0x1]  ;;  %v5403_v62 = vld [vmem:[#allocation2 + $0x20] sm:$0xf] }
 0x18a   : > { %v1250_v39 = vunpack.c.l.b16 %v1113_v18  ;;  %v1131_v17 = vrot.slane %v1129_v40, 4  ;;  %v1134_v4 = vrot.slane %v1132_v6, 5  ;;  %v1649_v43 = vunpack.c.l.b16 %v5394_v42  ;;  %v1520_v21 = vld [vmem:[#allocation2 + $0x18] sm:$0xe]  ;;  %v4705_v24 = vld [vmem:[#allocation7 + $0x80] sm:$0xff]  ;;  %v4731_v42 = vld [vmem:[#allocation7 + $0x110] sm:$0xff] }
 0x18b   : > { %v774_v3 = vor.u32 %v772_v34, %v771_v36  ;;  %v775_v46 = vrot.slane %v771_v36, 4  ;;  %v910_v52 = vsel %vm5253_vm4, %v766_v51, %v909_v37  ;;  %v1140_v60 = vrot.slane %v1138_v50, 5  ;;  %v4299_v35 = vld [vmem:[#allocation2 + $0x18] sm:$0xf]  ;;  %v4714_v6 = vld [vmem:[#allocation2 + $0x1c] sm:$0xf0] }
 0x18c   : > { %1734 = vmatpush.bf16.msrb.mxu0 %v4707_v5  ;;  %v1262_v12 = vpack.c.b16 %v1250_v39, %v1249_v30  ;;  %v1135_v11 = vor.u32 %v1134_v4, %v1131_v17  ;;  %v1650_v13 = vunpack.c.l.b16 %v1575_v20  ;;  %911 = vst [vmem:[#allocation2 + $0x60] sm:$0xf] %v910_v52  ;;  %v913_v56 = vsel %vm5257_vm5, %v767_v48, %v912_v47  ;;  %v4732_v5 = vld [vmem:[#allocation7 + $0x118] sm:$0xff]  ;;  %v921_v36 = vld [vmem:[#allocation2 + $0x70] sm:$0xf] }
 0x18d   : > { %914 = vst [vmem:[#allocation2 + $0x64] sm:$0x1] %v913_v56  ;;  %v916_v26 = vsel %vm5253_vm4, %v774_v3, %v915_v38  ;;  %v919_v30 = vsel %vm5257_vm5, %v775_v46, %v918_v54  ;;  %v4247_v31 = vrot.slane %v1519_v58, 9  ;;  %v1578_v2 = vrot.slane %v5328_v19, 5  ;;  %2345 = vmatpush.bf16.msrb.mxu2 %v4732_v5  ;;  %v924_v17 = vld [vmem:[#allocation2 + $0x74] sm:$0x1] }
 0x18e   : > { %1346 = vmatmul.bf16.gmra.mxu2 %v1262_v12  ;;  %v1136_v57 = vrot.slane %v1135_v11, 4  ;;  %v4192_v18 = vor.u32 %v5405_v63, %v5403_v62  ;;  %917 = vst [vmem:[#allocation2 + $0x68] sm:$0xf] %v916_v26  ;;  %v683_v34 = vpack.c.bf16 %v623_v61, %v623_v61  ;;  %v684_v37 = vpack.c.bf16 %v624_v1, %v624_v1  ;;  %v927_v4 = vld [vmem:[#allocation2 + $0x78] sm:$0xf] }
 0x18f   : > { %v5425_v39 = vunpack.c.l.b16 %v1127_v14  ;;  %920 = vst [vmem:[#allocation2 + $0x6c] sm:$0x1] %v919_v30  ;;  %v4248_v19 = vrot.slane %v1520_v21, 9  ;;  %v1582_v40 = vrot.slane %v5350_v45, 5  ;;  %v685_v20 = vpack.c.bf16 %v625_v9, %v625_v9  ;;  %v930_v52 = vld [vmem:[#allocation2 + $0x7c] sm:$0x1] }
 0x190   : > { %1735 = vmatpush.bf16.msrb.mxu0 %v4706_v29  ;;  %v1141_v59 = vsel %vm5297_vm8, %v1136_v57, %v1140_v60  ;;  %v777_v47 = vshrl.u32 %v683_v34, 16  ;;  %v780_v61 = vshll.u32 %v683_v34, 16  ;;  %v785_v29 = vshrl.u32 %v684_v37, 16  ;;  %v1521_v21 = vld [vmem:[#allocation2 + $0x20] sm:$0xe] }
 0x191   : > { %v1665_v0 = vpack.c.b16 %v1650_v13, %v1649_v43  ;;  %v5435_v1 = vsel %vm5385_vm11, %v4247_v31, %v1578_v2  ;;  %v788_v50 = vshll.u32 %v684_v37, 16  ;;  %v793_v51 = vshrl.u32 %v685_v20, 16  ;;  %2346 = vmatpush.bf16.msrb.mxu2 %v4731_v42  ;;  %v933_v42 = vld [vmem:[#allocation2 + $0x80] sm:$0xf] }
 0x192   : > { %v4300_v45 = vor.u32 %v4714_v6, %v4299_v35  ;;  %v779_v48 = vrot.slane %v777_v47, 7  ;;  %v787_v7 = vrot.slane %v785_v29, 7  ;;  %v796_v9 = vshll.u32 %v685_v20, 16  ;;  %v1522_v6 = vld [vmem:[#allocation2 + $0x28] sm:$0xe] }
 0x193   : > { %v1252_v38 = vunpack.c.l.b16 %v1141_v59  ;;  %v961_v12 = vld [vmem:[#allocation2 + $0x60] sm:$0xf]  ;;  %v5439_v14 = vsel %vm5385_vm11, %v4248_v19, %v1582_v40  ;;  %v5444_v54 = vpack.c.bf16 %v626_v16, %v626_v16  ;;  %v5446_v58 = vrot.slane %v793_v51, 7 }
 0x194   : > { %1736 = vmatpush.bf16.msrb.mxu0 %v4705_v24  ;;  %v5448_v62 = vld [vmem:[#allocation2 + $0x64] sm:$0x1]  ;;  %v1143_v63 = vshrl.u32 %v961_v12, 16  ;;  %v1146_v43 = vshll.u32 %v961_v12, 16  ;;  %v782_v3 = vor.u32 %v780_v61, %v779_v48  ;;  %v783_v46 = vrot.slane %v779_v48, 4 }
 0x195   : > { %v962_v11 = vld [vmem:[#allocation2 + $0x68] sm:$0xf]  ;;  %v1152_v60 = vshll.u32 %v5448_v62, 16  ;;  %v790_v13 = vor.u32 %v788_v50, %v787_v7  ;;  %v791_v56 = vrot.slane %v787_v7, 4  ;;  %v798_v15 = vor.u32 %v796_v9, %v5446_v58  ;;  %v3301_v10 = vld [vmem:[#allocation2 + $0x60] sm:$0xe] }
 0x196   : > { %v5452_v16 = vld [vmem:[#allocation2 + $0x6c] sm:$0x1]  ;;  %v1145_v5 = vrot.slane %v1143_v63, 4  ;;  %v1148_v24 = vrot.slane %v1146_v43, 5  ;;  %v1157_v26 = vshrl.u32 %v962_v11, 16  ;;  %v1160_v30 = vshll.u32 %v962_v11, 16  ;;  %1936 = vmatmul.bf16.gmra.mxu1 %v4300_v45 }
 0x197   : > { %1737 = vmatmul.bf16.vlgmr.msrb.gmra.mxu0 %v1665_v0  ;;  %v1263_v31 = vpack.c.b16 %v1252_v38, %v5425_v39  ;;  %v1166_v2 = vshll.u32 %v5452_v16, 16  ;;  %v922_v57 = vsel %vm5253_vm4, %v782_v3, %v921_v36  ;;  %v925_v35 = vsel %vm5257_vm5, %v783_v46, %v924_v17  ;;  %v4730_v38 = vld [vmem:[#allocation7 + $0x108] sm:$0xff]  ;;  %v4715_v3 = vld [vmem:[#allocation2 + $0x2c] sm:$0xf0] }
 0x198   : > { %v1149_v34 = vor.u32 %v1148_v24, %v1145_v5  ;;  %v1159_v37 = vrot.slane %v1157_v26, 4  ;;  %v1162_v19 = vrot.slane %v1160_v30, 5  ;;  %923 = vst [vmem:[#allocation2 + $0x70] sm:$0xf] %v922_v57  ;;  %v928_v40 = vsel %vm5253_vm4, %v790_v13, %v927_v4  ;;  %v4303_v43 = vld [vmem:[#allocation2 + $0x28] sm:$0xf]  ;;  %2347 = vmatpush.bf16.msrb.mxu2 %v4730_v38 }
 0x199   : > { %1486 = vmatmul.bf16.gmra.mxu3 %v4192_v18  ;;  %926 = vst [vmem:[#allocation2 + $0x74] sm:$0x1] %v925_v35  ;;  %v931_v18 = vsel %vm5257_vm5, %v791_v56, %v930_v52  ;;  %v4249_v39 = vrot.slane %v1521_v21, 9  ;;  %v801_v20 = vshrl.u32 %v5444_v54, 16  ;;  %v804_v59 = vshll.u32 %v5444_v54, 16  ;;  %v4729_v38 = vld [vmem:[#allocation7 + $0x100] sm:$0xff] }
 0x19a   : > { %v1154_v47 = vrot.slane %v1152_v60, 5  ;;  %v1163_v61 = vor.u32 %v1162_v19, %v1159_v37  ;;  %929 = vst [vmem:[#allocation2 + $0x78] sm:$0xf] %v928_v40  ;;  %v1586_v29 = vrot.slane %v5309_v33, 5  ;;  %v934_v0 = vsel %vm5253_vm4, %v798_v15, %v933_v42  ;;  %v4684_v54 = vld [vmem:[#allocation2 + $0x34] sm:$0xf0] }
 0x19b   : > { %v1150_v50 = vrot.slane %v1149_v34, 4  ;;  %932 = vst [vmem:[#allocation2 + $0x7c] sm:$0x1] %v931_v18  ;;  %v4250_v51 = vrot.slane %v1522_v6, 9  ;;  %v1590_v45 = vrot.slane %v5318_v44, 5  ;;  %v679_v48 = vpack.c.bf16 %v619_v28, %v619_v28 }
 0x19c   : > { %v1164_v7 = vrot.slane %v1163_v61, 4  ;;  %v1168_v36 = vrot.slane %v1166_v2, 5  ;;  %v1587_v9 = vsel %vm5385_vm11, %v4249_v39, %v1586_v29  ;;  %v799_v33 = vrot.slane %v5446_v58, 4  ;;  %935 = vst [vmem:[#allocation2 + $0x80] sm:$0xf] %v934_v0  ;;  %2348 = vmatpush.bf16.msrb.mxu2 %v4729_v38 }
 0x19d   : > { %v1651_v12 = vunpack.c.l.b16 %v5435_v1  ;;  %v1591_v17 = vsel %vm5385_vm11, %v4250_v51, %v1590_v45  ;;  %v1653_v4 = vunpack.c.l.b16 %v1587_v9  ;;  %v936_v44 = vld [vmem:[#allocation2 + $0x84] sm:$0x1]  ;;  %v1652_v28 = vunpack.c.l.b16 %v5439_v14  ;;  %v939_v56 = vld [vmem:[#allocation2 + $0x88] sm:$0xf]  ;;  %v942_v21 = vld [vmem:[#allocation2 + $0x8c] sm:$0x1] }
 0x19e   : > { %1351 = vmatmul.bf16.gmra.mxu2 %v1263_v31  ;;  %v1654_v63 = vunpack.c.l.b16 %v1591_v17  ;;  %v803_v46 = vrot.slane %v801_v20, 7  ;;  %v937_v58 = vsel %vm5257_vm5, %v799_v33, %v936_v44  ;;  %v1155_v1 = vsel %vm5297_vm8, %v1150_v50, %v1154_v47  ;;  %v897_v40 = vld [vmem:[#allocation2 + $0x40] sm:$0xf]  ;;  %v4744_v44 = vld [vmem:[#allocation7 + $0x178] sm:$0xff]  ;;  %v1990_v38 = vld [vmem:[#allocation2 + $0x10] sm:$0xf] }
 0x19f   : > { %v963_v52 = vld [vmem:[#allocation2 + $0x70] sm:$0xf]  ;;  %938 = vst [vmem:[#allocation2 + $0x84] sm:$0x1] %v937_v58  ;;  %v745_v11 = vshrl.u32 %v679_v48, 16  ;;  %v1169_v60 = vsel %vm5297_vm8, %v1164_v7, %v1168_v36  ;;  %v748_v15 = vshll.u32 %v679_v48, 16  ;;  %v1666_v2 = vpack.c.b16 %v1652_v28, %v1651_v12  ;;  %2615 = vmatpush.bf16.msra.mxu3 %v4744_v44 }
 0x1a0   : > { %v5486_v13 = vpack.c.b16 %v1654_v63, %v1653_v4  ;;  %v806_v14 = vor.u32 %v804_v59, %v803_v46  ;;  %v1171_v24 = vshrl.u32 %v963_v52, 16  ;;  %v1174_v26 = vshll.u32 %v963_v52, 16  ;;  %v5494_v39 = vld [vmem:[#allocation2 + $0x74] sm:$0x1]  ;;  %v4199_v63 = vld [vmem:[#allocation2 + $0x50] sm:$0xf] }
 0x1a1   : > { %v964_v5 = vld [vmem:[#allocation2 + $0x78] sm:$0xf]  ;;  %v807_v30 = vrot.slane %v803_v46, 4  ;;  %v5488_v31 = vrot.slane %v745_v11, 7  ;;  %v4304_v42 = vor.u32 %v4715_v3, %v4303_v43  ;;  %v4196_v34 = vor.u32 %v4684_v54, %v4195_v25  ;;  %v4203_v44 = vld [vmem:[#allocation2 + $0x60] sm:$0xf] }
 0x1a2   : > { %v1185_v57 = vshrl.u32 %v964_v5, 16  ;;  %v1188_v35 = vshll.u32 %v964_v5, 16  ;;  %v940_v37 = vsel %vm5253_vm4, %v806_v14, %v939_v56  ;;  %v1253_v6 = vunpack.c.l.b16 %v1155_v1  ;;  %v5497_v0 = vld [vmem:[#allocation2 + $0x7c] sm:$0x1]  ;;  %v4307_v54 = vld [vmem:[#allocation2 + $0x38] sm:$0xf] }
 0x1a3   : > { %v943_v19 = vsel %vm5257_vm5, %v807_v30, %v942_v21  ;;  %v1254_v18 = vunpack.c.l.b16 %v1169_v60  ;;  %941 = vst [vmem:[#allocation2 + $0x88] sm:$0xf] %v940_v37  ;;  %v750_v20 = vor.u32 %v748_v15, %v5488_v31  ;;  %v1173_v59 = vrot.slane %v1171_v24, 4  ;;  %v965_v4 = vld [vmem:[#allocation2 + $0x80] sm:$0xf] }
 0x1a4   : > { %v1176_v47 = vrot.slane %v1174_v26, 5  ;;  %v1187_v61 = vrot.slane %v1185_v57, 4  ;;  %v1190_v29 = vrot.slane %v1188_v35, 5  ;;  %944 = vst [vmem:[#allocation2 + $0x8c] sm:$0x1] %v943_v19  ;;  %v1180_v45 = vshll.u32 %v5494_v39, 16 }
 0x1a5   : > { %v898_v50 = vsel %vm5253_vm4, %v750_v20, %v897_v40  ;;  %v1264_v51 = vpack.c.b16 %v1254_v18, %v1253_v6  ;;  %v1194_v36 = vshll.u32 %v5497_v0, 16  ;;  %v4685_v43 = vld [vmem:[#allocation2 + $0x54] sm:$0xf0]  ;;  %v1199_v3 = vshrl.u32 %v965_v4, 16  ;;  %v1523_v15 = vld [vmem:[#allocation2 + $0x30] sm:$0xe] }
 0x1a6   : > { %1941 = vmatmul.bf16.gmra.mxu1 %v4304_v42  ;;  %899 = vst [vmem:[#allocation2 + $0x40] sm:$0xf] %v898_v50  ;;  %v1177_v48 = vor.u32 %v1176_v47, %v1173_v59  ;;  %v1191_v7 = vor.u32 %v1190_v29, %v1187_v61  ;;  %v1182_v9 = vrot.slane %v1180_v45, 5  ;;  %v1202_v46 = vshll.u32 %v965_v4, 16  ;;  %v1524_v5 = vld [vmem:[#allocation2 + $0x38] sm:$0xe] }
 0x1a7   : > { %1742 = vmatmul.bf16.gmra.mxu0 %v1666_v2  ;;  %v1196_v17 = vrot.slane %v1194_v36, 5  ;;  %v4200_v14 = vor.u32 %v4685_v43, %v4199_v63  ;;  %v1201_v24 = vrot.slane %v1199_v3, 4  ;;  %v5508_v57 = vld [vmem:[#allocation2 + $0x84] sm:$0x1]  ;;  %v4251_v42 = vrot.slane %v1523_v15, 9  ;;  %v4776_v29 = vld [vmem:[#allocation7 + $0x238] sm:$0xff] }
 0x1a8   : > { %v1178_v33 = vrot.slane %v1177_v48, 4  ;;  %v1192_v12 = vrot.slane %v1191_v7, 4  ;;  %v1204_v26 = vrot.slane %v1202_v46, 5  ;;  %v4252_v37 = vrot.slane %v1524_v5, 9  ;;  %v1988_v61 = vld [vmem:[#allocation2 + $0x8] sm:$0xf]  ;;  %3502 = vmatpush.bf16.msra.mxu2 %v4776_v29 }
 0x1a9   : > { %1491 = vmatmul.bf16.gmra.mxu3 %v4196_v34  ;;  %v1594_v34 = vrot.slane %v5359_v49, 5  ;;  %v1598_v19 = vrot.slane %v5372_v41, 5  ;;  %v1208_v18 = vshll.u32 %v5508_v57, 16  ;;  %v4760_v49 = vld [vmem:[#allocation7 + $0x1b8] sm:$0xff]  ;;  %v4743_v7 = vld [vmem:[#allocation7 + $0x170] sm:$0xff]  ;;  %v4742_v4 = vld [vmem:[#allocation7 + $0x168] sm:$0xff] }
 0x1aa   : > { %v966_v25 = vld [vmem:[#allocation2 + $0x88] sm:$0xf]  ;;  %v1183_v58 = vsel %vm5297_vm8, %v1178_v33, %v1182_v9  ;;  %v1197_v1 = vsel %vm5297_vm8, %v1192_v12, %v1196_v17  ;;  %v1205_v6 = vor.u32 %v1204_v26, %v1201_v24  ;;  %v4768_v50 = vld [vmem:[#allocation7 + $0x1f8] sm:$0xff]  ;;  %2810 = vmatpush.bf16.msra.mxu0 %v4760_v49  ;;  %v2021_v33 = vshrl.u32 %v1988_v61, 16  ;;  %v4717_v17 = vld [vmem:[#allocation2 + $0x5c] sm:$0xf0]  ;;  %2616 = vmatpush.bf16.msra.mxu3 %v4743_v7 }
 0x1ab   : > { %v1213_v52 = vshrl.u32 %v966_v25, 16  ;;  %v1216_v11 = vshll.u32 %v966_v25, 16  ;;  %v1255_v56 = vunpack.c.l.b16 %v1183_v58  ;;  %v1256_v21 = vunpack.c.l.b16 %v1197_v1  ;;  %v5510_v35 = vld [vmem:[#allocation2 + $0x8c] sm:$0x1]  ;;  %v4311_v12 = vld [vmem:[#allocation2 + $0x58] sm:$0xf]  ;;  %3228 = vmatpush.bf16.msra.mxu1 %v4768_v50 }
 0x1ac   : > { %v1222_v59 = vshll.u32 %v5510_v35, 16  ;;  %v1599_v47 = vsel %vm5385_vm11, %v4252_v37, %v1598_v19  ;;  %v1210_v41 = vrot.slane %v1208_v18, 5  ;;  %v4686_v25 = vld [vmem:[#allocation2 + $0x64] sm:$0xf0]  ;;  %v2035_v43 = vshrl.u32 %v1990_v38, 16  ;;  %v4741_v15 = vld [vmem:[#allocation7 + $0x160] sm:$0xff] }
 0x1ad   : > { %v4716_v28 = vld [vmem:[#allocation2 + $0x3c] sm:$0xf0]  ;;  %v1215_v30 = vrot.slane %v1213_v52, 4  ;;  %v1218_v2 = vrot.slane %v1216_v11, 5  ;;  %v1265_v40 = vpack.c.b16 %v1256_v21, %v1255_v56  ;;  %v1656_v9 = vunpack.c.l.b16 %v1599_v47  ;;  %v1526_v56 = vld [vmem:[#allocation2 + $0x58] sm:$0xe] }
 0x1ae   : > { %1356 = vmatmul.bf16.gmra.mxu2 %v1264_v51  ;;  %v4308_v60 = vor.u32 %v4716_v28, %v4307_v54  ;;  %v1206_v51 = vrot.slane %v1205_v6, 4  ;;  %v1224_v48 = vrot.slane %v1222_v59, 5  ;;  %v2024_v54 = vshll.u32 %v1988_v61, 16  ;;  %2617 = vmatpush.bf16.msra.mxu3 %v4742_v4  ;;  %v5524_v26 = vld [vmem:[#allocation2 + $0xc] sm:$0x1]  ;;  %v4740_v61 = vld [vmem:[#allocation7 + $0x158] sm:$0xff] }
 0x1af   : > { %v1219_v20 = vor.u32 %v1218_v2, %v1215_v30  ;;  %v2038_v3 = vshll.u32 %v1990_v38, 16  ;;  %v4312_v58 = vor.u32 %v4717_v17, %v4311_v12  ;;  %v4204_v1 = vor.u32 %v4686_v25, %v4203_v44  ;;  %v5526_v30 = vld [vmem:[#allocation2 + $0x14] sm:$0x1]  ;;  %v1992_v47 = vld [vmem:[#allocation2 + $0x18] sm:$0xf] }
 0x1b0   : > { %v1211_v28 = vsel %vm5297_vm8, %v1206_v51, %v1210_v41  ;;  %v2023_v52 = vrot.slane %v2021_v33, 4  ;;  %v2026_v21 = vrot.slane %v2024_v54, 5  ;;  %v2037_v5 = vrot.slane %v2035_v43, 4  ;;  %v4775_v29 = vld [vmem:[#allocation7 + $0x230] sm:$0xff]  ;;  %v4315_v33 = vld [vmem:[#allocation2 + $0x68] sm:$0xf] }
 0x1b1   : > { %v1220_v45 = vrot.slane %v1219_v20, 4  ;;  %v1257_v11 = vunpack.c.l.b16 %v1211_v28  ;;  %v2040_v24 = vrot.slane %v2038_v3, 5  ;;  %v1606_v37 = vrot.slane %v5396_v27, 5  ;;  %v4759_v27 = vld [vmem:[#allocation7 + $0x1b0] sm:$0xff]  ;;  %3503 = vmatpush.bf16.msra.mxu2 %v4775_v29  ;;  %v4687_v4 = vld [vmem:[#allocation2 + $0x74] sm:$0xf0] }
 0x1b2   : > { %2618 = vmatpush.bf16.msra.mxu3 %v4741_v15  ;;  %v2030_v6 = vshll.u32 %v5524_v26, 16  ;;  %v2044_v20 = vshll.u32 %v5526_v30, 16  ;;  %v4767_v49 = vld [vmem:[#allocation7 + $0x1f0] sm:$0xff]  ;;  %v2052_v38 = vshll.u32 %v1992_v47, 16  ;;  %2811 = vmatpush.bf16.msra.mxu0 %v4759_v27  ;;  %v4211_v22 = vld [vmem:[#allocation2 + $0x80] sm:$0xf] }
 0x1b3   : > { %v1225_v63 = vsel %vm5297_vm8, %v1220_v45, %v1224_v48  ;;  %v2041_v18 = vor.u32 %v2040_v24, %v2037_v5  ;;  %v1994_v45 = vld [vmem:[#allocation2 + $0x20] sm:$0xf]  ;;  %v4739_v48 = vld [vmem:[#allocation7 + $0x150] sm:$0xff]  ;;  %3229 = vmatpush.bf16.msra.mxu1 %v4767_v49  ;;  %v5542_v5 = vld [vmem:[#allocation2 + $0x24] sm:$0x1] }
 0x1b4   : > { %v2032_v50 = vrot.slane %v2030_v6, 5  ;;  %v2046_v41 = vrot.slane %v2044_v20, 5  ;;  %v4718_v12 = vld [vmem:[#allocation2 + $0x6c] sm:$0xf0]  ;;  %v2063_v44 = vshrl.u32 %v1994_v45, 16  ;;  %v2066_v25 = vshll.u32 %v1994_v45, 16 }
 0x1b5   : > { %v2042_v51 = vrot.slane %v2041_v18, 4  ;;  %v4207_v17 = vld [vmem:[#allocation2 + $0x70] sm:$0xf]  ;;  %v4737_v24 = vld [vmem:[#allocation7 + $0x140] sm:$0xff]  ;;  %v1614_v6 = vrot.slane %v5452_v16, 5  ;;  %v687_v16 = vpack.c.bf16 %v627_v23, %v627_v23  ;;  %v4758_v45 = vld [vmem:[#allocation7 + $0x1a8] sm:$0xff] }
 0x1b6   : > { %1946 = vmatmul.bf16.gmra.mxu1 %v4308_v60  ;;  %v1258_v60 = vunpack.c.l.b16 %v1225_v63  ;;  %2619 = vmatpush.bf16.msra.mxu3 %v4740_v61  ;;  %v4738_v63 = vld [vmem:[#allocation7 + $0x148] sm:$0xff]  ;;  %v2068_v15 = vrot.slane %v2066_v25, 5  ;;  %v1998_v61 = vld [vmem:[#allocation2 + $0x30] sm:$0xf] }
 0x1b7   : > { %1747 = vmatmul.bf16.gmra.mxu0 %v5486_v13  ;;  %v1595_v13 = vsel %vm5385_vm11, %v4251_v42, %v1594_v34  ;;  %v1602_v42 = vrot.slane %v5366_v32, 5  ;;  %v4254_v34 = vrot.slane %v1526_v56, 9  ;;  %v2047_v28 = vsel %vm5297_vm8, %v2042_v51, %v2046_v41  ;;  %v1528_v56 = vld [vmem:[#allocation2 + $0x68] sm:$0xe] }
 0x1b8   : > { %v1655_v36 = vunpack.c.l.b16 %v1595_v13  ;;  %v1266_v19 = vpack.c.b16 %v1258_v60, %v1257_v11  ;;  %v2262_v60 = vunpack.c.l.b16 %v2047_v28  ;;  %v4774_v41 = vld [vmem:[#allocation7 + $0x228] sm:$0xff]  ;;  %2812 = vmatpush.bf16.msra.mxu0 %v4758_v45  ;;  %v812_v28 = vshll.u32 %v687_v16, 16 }
 0x1b9   : > { %1496 = vmatmul.bf16.gmra.mxu3 %v4200_v14  ;;  %v1525_v14 = vld [vmem:[#allocation2 + $0x50] sm:$0xe]  ;;  %v1607_v13 = vsel %vm5385_vm11, %v4254_v34, %v1606_v37  ;;  %3504 = vmatpush.bf16.msra.mxu2 %v4774_v41  ;;  %v4688_v23 = vld [vmem:[#allocation2 + $0x84] sm:$0xf0] }
 0x1ba   : > { %v1668_v46 = vpack.c.b16 %v1656_v9, %v1655_v36  ;;  %v4253_v2 = vrot.slane %v1525_v14, 9  ;;  %v1658_v36 = vunpack.c.l.b16 %v1607_v13  ;;  %v2049_v9 = vshrl.u32 %v1992_v47, 16  ;;  %2620 = vmatpush.bf16.msra.mxu3 %v4739_v48  ;;  %v1527_v14 = vld [vmem:[#allocation2 + $0x60] sm:$0xe]  ;;  %v1996_v13 = vld [vmem:[#allocation2 + $0x28] sm:$0xf] }
 0x1bb   : > { %v4255_v37 = vrot.slane %v1527_v14, 9  ;;  %v900_v47 = vld [vmem:[#allocation2 + $0x44] sm:$0x1]  ;;  %v2077_v51 = vshrl.u32 %v1996_v13, 16  ;;  %v4766_v48 = vld [vmem:[#allocation7 + $0x1e8] sm:$0xff] }
 0x1bc   : > { %v1603_v59 = vsel %vm5385_vm11, %v4253_v2, %v1602_v42  ;;  %v2051_v3 = vrot.slane %v2049_v9, 4  ;;  %v751_v2 = vrot.slane %v5488_v31, 4  ;;  %v2094_v9 = vshll.u32 %v1998_v61, 16  ;;  %3230 = vmatpush.bf16.msra.mxu1 %v4766_v48 }
 0x1bd   : > { %v1657_v7 = vunpack.c.l.b16 %v1603_v59  ;;  %v2072_v59 = vshll.u32 %v5542_v5, 16 }
 0x1be   : > { %1361 = vmatmul.bf16.gmra.mxu2 %v1265_v40  ;;  %v2027_v40 = vor.u32 %v2026_v21, %v2023_v52  ;;  %v5540_v52 = vld [vmem:[#allocation2 + $0x1c] sm:$0x1]  ;;  %v2065_v21 = vrot.slane %v2063_v44, 4  ;;  %2621 = vmatpush.bf16.msra.mxu3 %v4738_v63  ;;  %v5564_v63 = vld [vmem:[#allocation2 + $0x2c] sm:$0x1] }
 0x1bf   : > { %v1669_v43 = vpack.c.b16 %v1658_v36, %v1657_v7  ;;  %v2058_v34 = vshll.u32 %v5540_v52, 16  ;;  %v2080_v7 = vshll.u32 %v1996_v13, 16  ;;  %v2091_v36 = vshrl.u32 %v1998_v61, 16 }
 0x1c0   : > { %v2028_v32 = vrot.slane %v2027_v40, 4  ;;  %v4256_v40 = vrot.slane %v1528_v56, 9  ;;  %v2069_v20 = vor.u32 %v2068_v15, %v2065_v21  ;;  %v945_v21 = vld [vmem:[#allocation2 + $0x90] sm:$0xf]  ;;  %v4212_v15 = vor.u32 %v4688_v23, %v4211_v22  ;;  %v4764_v23 = vld [vmem:[#allocation7 + $0x1d8] sm:$0xff] }
 0x1c1   : > { %v2060_v27 = vrot.slane %v2058_v34, 5  ;;  %v2086_v61 = vshll.u32 %v5564_v63, 16 }
 0x1c2   : > { %v2033_v54 = vsel %vm5297_vm8, %v2028_v32, %v2032_v50  ;;  %2622 = vmatpush.bf16.msra.mxu3 %v4737_v24  ;;  %v901_v32 = vsel %vm5257_vm5, %v751_v2, %v900_v47  ;;  %v2070_v49 = vrot.slane %v2069_v20, 4  ;;  %v2074_v50 = vrot.slane %v2072_v59, 5  ;;  %v1530_v24 = vld [vmem:[#allocation2 + $0x78] sm:$0xe]  ;;  %v4757_v2 = vld [vmem:[#allocation7 + $0x1a0] sm:$0xff] }
 0x1c3   : > { %v2261_v11 = vunpack.c.l.b16 %v2033_v54  ;;  %902 = vst [vmem:[#allocation2 + $0x44] sm:$0x1] %v901_v32  ;;  %v1618_v20 = vrot.slane %v5494_v39, 5  ;;  %2813 = vmatpush.bf16.msra.mxu0 %v4757_v2  ;;  %v4258_v47 = vrot.slane %v1530_v24, 9  ;;  %v2460_v39 = vrot.slane %v5526_v30, 5 }
 0x1c4   : > { %v2075_v25 = vsel %vm5297_vm8, %v2070_v49, %v2074_v50  ;;  %v2000_v49 = vld [vmem:[#allocation2 + $0x38] sm:$0xf]  ;;  %v2002_v50 = vld [vmem:[#allocation2 + $0x40] sm:$0xf]  ;;  %v2088_v48 = vrot.slane %v2086_v61, 5 }
 0x1c5   : > { %v2277_v18 = vpack.c.b16 %v2262_v60, %v2261_v11  ;;  %v1529_v11 = vld [vmem:[#allocation2 + $0x70] sm:$0xe]  ;;  %v5566_v60 = vld [vmem:[#allocation2 + $0x34] sm:$0x1] }
 0x1c6   : > { %1951 = vmatmul.bf16.gmra.mxu1 %v4312_v58  ;;  %v4316_v58 = vor.u32 %v4718_v12, %v4315_v33  ;;  %v2100_v32 = vshll.u32 %v5566_v60, 16  ;;  %v2875_v24 = vld [vmem:[#allocation2 + $0x10] sm:$0xf] }
 0x1c7   : > { %1752 = vmatmul.bf16.gmra.mxu0 %v1668_v46  ;;  %v2054_v46 = vrot.slane %v2052_v38, 5  ;;  %v809_v38 = vshrl.u32 %v687_v16, 16 }
 0x1c9   : > { %1501 = vmatmul.bf16.gmra.mxu3 %v4204_v1  ;;  %v4208_v1 = vor.u32 %v4687_v4, %v4207_v17  ;;  %v2055_v42 = vor.u32 %v2054_v46, %v2051_v3  ;;  %v4319_v17 = vld [vmem:[#allocation2 + $0x78] sm:$0xf]  ;;  %v4719_v4 = vld [vmem:[#allocation2 + $0x7c] sm:$0xf0]  ;;  %v5562_v54 = vrot.slane %v809_v38, 7  ;;  %v2082_v3 = vrot.slane %v2080_v7, 5 }
 0x1ca   : > { %v2093_v46 = vrot.slane %v2091_v36, 4  ;;  %v4320_v14 = vor.u32 %v4719_v4, %v4319_v17  ;;  %v2102_v7 = vrot.slane %v2100_v32, 5  ;;  %v4756_v36 = vld [vmem:[#allocation7 + $0x198] sm:$0xff]  ;;  %v2108_v38 = vshll.u32 %v2000_v49, 16  ;;  %v4773_v17 = vld [vmem:[#allocation7 + $0x220] sm:$0xff] }
 0x1cb   : > { %v2056_v31 = vrot.slane %v2055_v42, 4  ;;  %v814_v56 = vor.u32 %v812_v28, %v5562_v54  ;;  %v4765_v42 = vld [vmem:[#allocation7 + $0x1e0] sm:$0xff]  ;;  %2814 = vmatpush.bf16.msra.mxu0 %v4756_v36  ;;  %3505 = vmatpush.bf16.msra.mxu2 %v4773_v17  ;;  %v1630_v32 = vrot.slane %v5510_v35, 5 }
 0x1cc   : > { %3231 = vmatpush.bf16.msra.mxu1 %v4765_v42  ;;  %v5589_v42 = vld [vmem:[#allocation2 + $0x3c] sm:$0x1]  ;;  %v4753_v36 = vld [vmem:[#allocation7 + $0x180] sm:$0xff] }
 0x1cd   : > { %v2061_v44 = vsel %vm5297_vm8, %v2056_v31, %v2060_v27  ;;  %v1622_v31 = vrot.slane %v5497_v0, 5 }
 0x1ce   : > { %1366 = vmatmul.bf16.gmra.mxu2 %v1266_v19  ;;  %v1610_v19 = vrot.slane %v5448_v62, 5  ;;  %v1615_v62 = vsel %vm5385_vm11, %v4256_v40, %v1614_v6  ;;  %v2263_v34 = vunpack.c.l.b16 %v2061_v44  ;;  %v2407_v40 = vld [vmem:[#allocation2 + $0x10] sm:$0xe]  ;;  %v946_v6 = vsel %vm5253_vm4, %v814_v56, %v945_v21  ;;  %v1531_v44 = vld [vmem:[#allocation2 + $0x80] sm:$0xe] }
 0x1cf   : > { %v1660_v12 = vunpack.c.l.b16 %v1615_v62  ;;  %v2456_v62 = vrot.slane %v5524_v26, 5  ;;  %v4390_v27 = vrot.slane %v2407_v40, 9  ;;  %947 = vst [vmem:[#allocation2 + $0x90] sm:$0xf] %v946_v6  ;;  %v1623_v0 = vsel %vm5385_vm11, %v4258_v47, %v1622_v31  ;;  %v1532_v6 = vld [vmem:[#allocation2 + $0x88] sm:$0xe] }
 0x1d0   : > { %v1611_v29 = vsel %vm5385_vm11, %v4255_v37, %v1610_v19  ;;  %v2264_v37 = vunpack.c.l.b16 %v2075_v25  ;;  %v2406_v19 = vld [vmem:[#allocation2 + $0x8] sm:$0xe]  ;;  %v1662_v22 = vunpack.c.l.b16 %v1623_v0  ;;  %3232 = vmatpush.bf16.msra.mxu1 %v4764_v23  ;;  %v2110_v56 = vrot.slane %v2108_v38, 5  ;;  %v2004_v23 = vld [vmem:[#allocation2 + $0x58] sm:$0xf] }
 0x1d1   : > { %v1659_v33 = vunpack.c.l.b16 %v1611_v29  ;;  %v4389_v29 = vrot.slane %v2406_v19, 9  ;;  %v2461_v30 = vsel %vm5385_vm11, %v4390_v27, %v2460_v39  ;;  %v4323_v25 = vld [vmem:[#allocation2 + $0x88] sm:$0xf]  ;;  %v2908_v19 = vshrl.u32 %v2875_v24, 16 }
 0x1d2   : > { %v2278_v16 = vpack.c.b16 %v2264_v37, %v2263_v34  ;;  %v5591_v34 = vld [vmem:[#allocation2 + $0x44] sm:$0x1]  ;;  %v4754_v37 = vld [vmem:[#allocation7 + $0x188] sm:$0xff]  ;;  %v2114_v39 = vshll.u32 %v5589_v42, 16 }
 0x1d3   : > { %v2457_v26 = vsel %vm5385_vm11, %v4389_v29, %v2456_v62  ;;  %v2409_v29 = vld [vmem:[#allocation2 + $0x20] sm:$0xe]  ;;  %v2911_v62 = vshll.u32 %v2875_v24, 16  ;;  %v2133_v24 = vshrl.u32 %v2004_v23, 16 }
 0x1d4   : > { %v2116_v17 = vrot.slane %v2114_v39, 5 }
 0x1d5   : > { %v2913_v38 = vrot.slane %v2911_v62, 5 }
 0x1d6   : > { %1956 = vmatmul.bf16.gmra.mxu1 %v4316_v58  ;;  %v2096_v58 = vrot.slane %v2094_v9, 5  ;;  %v2105_v9 = vshrl.u32 %v2000_v49, 16  ;;  %v2128_v49 = vshll.u32 %v5591_v34, 16 }
 0x1d7   : > { %1757 = vmatmul.bf16.gmra.mxu0 %v1669_v43  ;;  %v2079_v43 = vrot.slane %v2077_v51, 4 }
 0x1d8   : > { %v2097_v13 = vor.u32 %v2096_v58, %v2093_v46  ;;  %v2536_v46 = vunpack.c.l.b16 %v2461_v30  ;;  %v4720_v58 = vld [vmem:[#allocation2 + $0x8c] sm:$0xf0] }
 0x1d9   : > { %1506 = vmatmul.bf16.gmra.mxu3 %v4208_v1  ;;  %v1670_v1 = vpack.c.b16 %v1660_v12, %v1659_v33  ;;  %v2083_v59 = vor.u32 %v2082_v3, %v2079_v43  ;;  %v2119_v33 = vshrl.u32 %v2002_v50, 16  ;;  %v2122_v12 = vshll.u32 %v2002_v50, 16  ;;  %v5597_v50 = vld [vmem:[#allocation2 + $0x14] sm:$0x1] }
 0x1da   : > { %v2098_v45 = vrot.slane %v2097_v13, 4  ;;  %v2535_v3 = vunpack.c.l.b16 %v2457_v26  ;;  %v4324_v13 = vor.u32 %v4720_v58, %v4323_v25  ;;  %v2468_v26 = vrot.slane %v5542_v5, 5 }
 0x1db   : > { %v2084_v41 = vrot.slane %v2083_v59, 4  ;;  %v2121_v21 = vrot.slane %v2119_v33, 4  ;;  %v2408_v59 = vld [vmem:[#allocation2 + $0x18] sm:$0xe] }
 0x1dc   : > { %v2103_v43 = vsel %vm5297_vm8, %v2098_v45, %v2102_v7  ;;  %v2551_v61 = vpack.c.b16 %v2536_v46, %v2535_v3  ;;  %v4391_v0 = vrot.slane %v2408_v59, 9  ;;  %v4762_v45 = vld [vmem:[#allocation7 + $0x1c8] sm:$0xff]  ;;  %v4392_v7 = vrot.slane %v2409_v29, 9 }
 0x1dd   : > { %v2089_v28 = vsel %vm5297_vm8, %v2084_v41, %v2088_v48  ;;  %v2266_v31 = vunpack.c.l.b16 %v2103_v43  ;;  %v2464_v41 = vrot.slane %v5540_v52, 5  ;;  %v2910_v48 = vrot.slane %v2908_v19, 4  ;;  %v5611_v43 = vld [vmem:[#allocation2 + $0x1c] sm:$0x1] }
 0x1de   : > { %2349 = vmatmul.bf16.vlgmr.msrb.gmra.mxu2 %v2277_v18  ;;  %v4257_v18 = vrot.slane %v1529_v11, 9  ;;  %v4763_v11 = vld [vmem:[#allocation7 + $0x1d0] sm:$0xff]  ;;  %v2265_v40 = vunpack.c.l.b16 %v2089_v28  ;;  %v2917_v52 = vshll.u32 %v5597_v50, 16  ;;  %v2006_v28 = vld [vmem:[#allocation2 + $0x60] sm:$0xf]  ;;  %v2469_v58 = vsel %vm5385_vm11, %v4392_v7, %v2468_v26 }
 0x1df   : > { %3233 = vmatpush.bf16.msra.mxu1 %v4763_v11  ;;  %v2465_v25 = vsel %vm5385_vm11, %v4391_v0, %v2464_v41  ;;  %v2914_v3 = vor.u32 %v2913_v38, %v2910_v48  ;;  %v2147_v19 = vshrl.u32 %v2006_v28, 16  ;;  %v5628_v48 = vld [vmem:[#allocation2 + $0x64] sm:$0x1] }
 0x1e0   : > { %v1619_v51 = vsel %vm5385_vm11, %v4257_v18, %v1618_v20  ;;  %v4259_v18 = vrot.slane %v1531_v44, 9  ;;  %v1626_v20 = vrot.slane %v5508_v57, 5  ;;  %v4260_v57 = vrot.slane %v1532_v6, 9  ;;  %v4772_v6 = vld [vmem:[#allocation7 + $0x218] sm:$0xff] }
 0x1e1   : > { %v1661_v4 = vunpack.c.l.b16 %v1619_v51  ;;  %v2877_v51 = vld [vmem:[#allocation2 + $0x18] sm:$0xf]  ;;  %v2279_v30 = vpack.c.b16 %v2266_v31, %v2265_v40  ;;  %v2150_v40 = vshll.u32 %v2006_v28, 16  ;;  %v2537_v31 = vunpack.c.l.b16 %v2465_v25  ;;  %3506 = vmatpush.bf16.msra.mxu2 %v4772_v6 }
 0x1e2   : > { %v5602_v35 = vsel %vm5385_vm11, %v4259_v18, %v1626_v20  ;;  %v2922_v33 = vshrl.u32 %v2877_v51, 16  ;;  %v1631_v44 = vsel %vm5385_vm11, %v4260_v57, %v1630_v32  ;;  %v2931_v20 = vshll.u32 %v5611_v43, 16  ;;  %v2879_v57 = vld [vmem:[#allocation2 + $0x20] sm:$0xf] }
 0x1e3   : > { %v1671_v2 = vpack.c.b16 %v1662_v22, %v1661_v4  ;;  %3234 = vmatpush.bf16.msra.mxu1 %v4762_v45  ;;  %v2130_v22 = vrot.slane %v2128_v49, 5  ;;  %v1663_v5 = vunpack.c.l.b16 %v5602_v35  ;;  %v1664_v59 = vunpack.c.l.b16 %v1631_v44  ;;  %v5626_v45 = vld [vmem:[#allocation2 + $0x5c] sm:$0x1]  ;;  %v2410_v35 = vld [vmem:[#allocation2 + $0x28] sm:$0xe] }
 0x1e4   : > { %v2924_v11 = vrot.slane %v2922_v33, 4  ;;  %v2933_v62 = vrot.slane %v2931_v20, 5  ;;  %v2152_v49 = vrot.slane %v2150_v40, 5  ;;  %v2936_v38 = vshrl.u32 %v2879_v57, 16 }
 0x1e5   : > { %v2142_v25 = vshll.u32 %v5626_v45, 16 }
 0x1e6   : > { %1961 = vmatmul.bf16.gmra.mxu1 %v4320_v14  ;;  %v2107_v14 = vrot.slane %v2105_v9, 4  ;;  %v4761_v9 = vld [vmem:[#allocation7 + $0x1c0] sm:$0xff] }
 0x1e7   : > { %1762 = vmatmul.bf16.gmra.mxu0 %v1670_v1  ;;  %v4755_v1 = vld [vmem:[#allocation7 + $0x190] sm:$0xff]  ;;  %3235 = vmatpush.bf16.msra.mxu1 %v4761_v9 }
 0x1e8   : > { %2815 = vmatpush.bf16.msra.mxu0 %v4755_v1  ;;  %v2111_v27 = vor.u32 %v2110_v56, %v2107_v14  ;;  %v2919_v1 = vrot.slane %v2917_v52, 5  ;;  %v2925_v14 = vshll.u32 %v2877_v51, 16 }
 0x1e9   : > { %1511 = vmatmul.bf16.gmra.mxu3 %v4212_v15  ;;  %v2124_v15 = vrot.slane %v2122_v12, 5 }
 0x1ea   : > { %v2112_v12 = vrot.slane %v2111_v27, 4  ;;  %v2927_v18 = vrot.slane %v2925_v14, 5  ;;  %v2135_v27 = vrot.slane %v2133_v24, 4  ;;  %v2881_v14 = vld [vmem:[#allocation2 + $0x28] sm:$0xf] }
 0x1ec   : > { %2816 = vmatpush.bf16.msra.mxu0 %v4754_v37  ;;  %v2915_v37 = vrot.slane %v2914_v3, 4  ;;  %v2928_v29 = vor.u32 %v2927_v18, %v2924_v11  ;;  %v4393_v3 = vrot.slane %v2410_v35, 9  ;;  %v5641_v11 = vld [vmem:[#allocation2 + $0x24] sm:$0x1] }
 0x1ee   : > { %2354 = vmatmul.bf16.gmra.mxu2 %v2278_v16  ;;  %v2125_v16 = vor.u32 %v2124_v15, %v2121_v21  ;;  %v2920_v32 = vsel %vm5297_vm8, %v2915_v37, %v2919_v1  ;;  %v2929_v51 = vrot.slane %v2928_v29, 4  ;;  %v2010_v37 = vld [vmem:[#allocation2 + $0x70] sm:$0xf] }
 0x1ef   : > { %v3148_v7 = vunpack.c.l.b16 %v2920_v32  ;;  %v2175_v32 = vshrl.u32 %v2010_v37, 16  ;;  %v2178_v29 = vshll.u32 %v2010_v37, 16 }
 0x1f0   : > { %v2126_v4 = vrot.slane %v2125_v16, 4  ;;  %2817 = vmatpush.bf16.msra.mxu0 %v4753_v36  ;;  %v2149_v16 = vrot.slane %v2147_v19, 4  ;;  %v2934_v9 = vsel %vm5297_vm8, %v2929_v51, %v2933_v62 }
 0x1f2   : > { %v2153_v28 = vor.u32 %v2152_v49, %v2149_v16 }
 0x1f4   : > { %v1332_v47 = vpop.f32.mrf.mxu0 }
 0x1f6   : > { %1966 = vmatmul.bf16.gmra.mxu1 %v4324_v13  ;;  %v2117_v13 = vsel %vm5297_vm8, %v2112_v12, %v2116_v17  ;;  %v2411_v17 = vld [vmem:[#allocation2 + $0x30] sm:$0xe] }
 0x1f7   : > { %1767 = vmatmul.bf16.gmra.mxu0 %v1671_v2  ;;  %v2136_v2 = vshll.u32 %v2004_v23, 16  ;;  %v2267_v0 = vunpack.c.l.b16 %v2117_v13  ;;  %v2939_v23 = vshll.u32 %v2879_v57, 16  ;;  %v4394_v24 = vrot.slane %v2411_v17, 9  ;;  %v4771_v17 = vld [vmem:[#allocation7 + $0x210] sm:$0xff] }
 0x1f8   : > { %v2154_v13 = vrot.slane %v2153_v28, 4  ;;  %3507 = vmatpush.bf16.msra.mxu2 %v4771_v17 }
 0x1f9   : > { %2623 = vmatmul.bf16.vlgmr.msra.gmra.mxu3 %v2551_v61  ;;  %v2538_v61 = vunpack.c.l.b16 %v2469_v58  ;;  %v2138_v39 = vrot.slane %v2136_v2, 5  ;;  %v2472_v58 = vrot.slane %v5564_v63, 5  ;;  %v2476_v2 = vrot.slane %v5566_v60, 5  ;;  %v5647_v60 = vld [vmem:[#allocation2 + $0x2c] sm:$0x1] }
 0x1fa   : > { %v2941_v20 = vrot.slane %v2939_v23, 5  ;;  %v2144_v63 = vrot.slane %v2142_v25, 5  ;;  %v2177_v23 = vrot.slane %v2175_v32, 4  ;;  %v2180_v25 = vrot.slane %v2178_v29, 5 }
 0x1fb   : > { %v2552_v36 = vpack.c.b16 %v2538_v61, %v2537_v31  ;;  %v2139_v12 = vor.u32 %v2138_v39, %v2135_v27  ;;  %v2950_v31 = vshrl.u32 %v2881_v14, 16  ;;  %v2473_v61 = vsel %vm5385_vm11, %v4393_v3, %v2472_v58 }
 0x1fc   : > { %v1477_v46 = vpop.f32.mrf.mxu3  ;;  %v1334_v15 = vpop.f32.mrf.mxu0  ;;  %v2477_v39 = vsel %vm5385_vm11, %v4394_v24, %v2476_v2 }
 0x1fd   : > { %v5615_v56 = vpop.f32.mrf.mxu2  ;;  %v5617_v21 = vadd.f32 %v1477_v46, %v1332_v47  ;;  %v2131_v47 = vsel %vm5297_vm8, %v2126_v4, %v2130_v22  ;;  %v3149_v4 = vunpack.c.l.b16 %v2934_v9  ;;  %v2008_v22 = vld [vmem:[#allocation2 + $0x68] sm:$0xf]  ;;  %v2140_v18 = vrot.slane %v2139_v12, 4 }
 0x1fe   : > { %2359 = vmatmul.bf16.gmra.mxu2 %v2279_v30  ;;  %v2268_v41 = vunpack.c.l.b16 %v2131_v47  ;;  %v1672_v30 = vpack.c.b16 %v1664_v59, %v1663_v5  ;;  %v2156_v5 = vshll.u32 %v5628_v48, 16  ;;  %v2161_v19 = vshrl.u32 %v2008_v22, 16 }
 0x1ff   : > { %v3164_v1 = vpack.c.b16 %v3149_v4, %v3148_v7  ;;  %v2164_v40 = vshll.u32 %v2008_v22, 16  ;;  %v2945_v59 = vshll.u32 %v5641_v11, 16  ;;  %v2952_v7 = vrot.slane %v2950_v31, 4  ;;  %v4745_v22 = vld [vmem:[#allocation2 + $0x14] sm:$0xf0] }
 0x200   : > { %v2280_v6 = vpack.c.b16 %v2268_v41, %v2267_v0  ;;  %v2158_v47 = vrot.slane %v2156_v5, 5  ;;  %v2163_v16 = vrot.slane %v2161_v19, 4  ;;  %v5653_v41 = vld [vmem:[#allocation2 + $0x6c] sm:$0x1]  ;;  %v2539_v9 = vunpack.c.l.b16 %v2473_v61  ;;  %v5662_v5 = vld [vmem:[#allocation2 + $0x74] sm:$0x1] }
 0x201   : > { %v2166_v49 = vrot.slane %v2164_v40, 5  ;;  %v2947_v51 = vrot.slane %v2945_v59, 5  ;;  %v2540_v4 = vunpack.c.l.b16 %v2477_v39  ;;  %v2170_v58 = vshll.u32 %v5653_v41, 16 }
 0x202   : > { %v2184_v59 = vshll.u32 %v5662_v5, 16 }
 0x203   : > { %v5634_v44 = vpop.f32.mrf.mxu1  ;;  %v2167_v3 = vor.u32 %v2166_v49, %v2163_v16  ;;  %v5674_v61 = vrot.slane %v2170_v58, 5  ;;  %v2480_v16 = vrot.slane %v5589_v42, 5 }
 0x204   : > { %v1479_v26 = vpop.f32.mrf.mxu3  ;;  %v1337_v33 = vpop.f32.mrf.mxu0 }
 0x205   : > { %v5632_v52 = vadd.f32 %v1479_v26, %v1334_v15  ;;  %v5638_v46 = vpop.f32.mrf.mxu2  ;;  %v2938_v15 = vrot.slane %v2936_v38, 4  ;;  %v2953_v26 = vshll.u32 %v2881_v14, 16  ;;  %v4439_v38 = vld [vmem:[#allocation2 + $0x10] sm:$0xf]  ;;  %v2412_v14 = vld [vmem:[#allocation2 + $0x38] sm:$0xe] }
 0x206   : > { %3236 = vmatmul.bf16.vlgmr.msra.gmra.mxu1 %v3164_v1  ;;  %v4440_v40 = vor.u32 %v4745_v22, %v4439_v38  ;;  %v5672_v31 = vrot.slane %v2167_v3, 4  ;;  %v4395_v32 = vrot.slane %v2412_v14, 9  ;;  %v5688_v22 = vld [vmem:[#allocation2 + $0x34] sm:$0x1]  ;;  %v2885_v3 = vld [vmem:[#allocation2 + $0x38] sm:$0xf] }
 0x207   : > { %1772 = vmatmul.bf16.gmra.mxu0 %v1672_v30  ;;  %v2942_v62 = vor.u32 %v2941_v20, %v2938_v15  ;;  %v2145_v30 = vsel %vm5297_vm8, %v2140_v18, %v2144_v63  ;;  %v2955_v28 = vrot.slane %v2953_v26, 5  ;;  %v2553_v18 = vpack.c.b16 %v2540_v4, %v2539_v9 }
 0x208   : > { %v5669_v37 = vunpack.c.l.b16 %v2145_v30  ;;  %v2181_v20 = vor.u32 %v2180_v25, %v2177_v23  ;;  %v2484_v26 = vrot.slane %v5591_v34, 5  ;;  %v2481_v25 = vsel %vm5385_vm11, %v4395_v32, %v2480_v16 }
 0x209   : > { %2628 = vmatmul.bf16.gmra.mxu3 %v2552_v36  ;;  %v2943_v35 = vrot.slane %v2942_v62, 4  ;;  %v2159_v36 = vsel %vm5297_vm8, %v2154_v13, %v2158_v47  ;;  %v2956_v24 = vor.u32 %v2955_v28, %v2952_v7  ;;  %v2012_v13 = vld [vmem:[#allocation2 + $0x78] sm:$0xf]  ;;  %v2883_v62 = vld [vmem:[#allocation2 + $0x30] sm:$0xf] }
 0x20a   : > { %v2270_v19 = vunpack.c.l.b16 %v2159_v36  ;;  %v2014_v36 = vld [vmem:[#allocation2 + $0x80] sm:$0xf]  ;;  %v2189_v9 = vshrl.u32 %v2012_v13, 16  ;;  %v2192_v38 = vshll.u32 %v2012_v13, 16  ;;  %v2964_v17 = vshrl.u32 %v2883_v62, 16 }
 0x20b   : > { %v5659_v12 = vpop.f32.mrf.mxu1  ;;  %v2948_v15 = vsel %vm5297_vm8, %v2943_v35, %v2947_v51  ;;  %v2957_v63 = vrot.slane %v2956_v24, 4  ;;  %v2182_v42 = vrot.slane %v2181_v20, 4  ;;  %v2203_v28 = vshrl.u32 %v2014_v36, 16 }
 0x20c   : > { %v1482_v27 = vpop.f32.mrf.mxu3  ;;  %v1339_v0 = vpop.f32.mrf.mxu0  ;;  %v3150_v29 = vunpack.c.l.b16 %v2948_v15  ;;  %v2281_v34 = vpack.c.b16 %v2270_v19, %v5669_v37  ;;  %v2206_v14 = vshll.u32 %v2014_v36, 16  ;;  %v2194_v15 = vrot.slane %v2192_v38, 5 }
 0x20d   : > { %v5651_v57 = vadd.f32 %v1482_v27, %v1337_v33  ;;  %v2959_v33 = vshll.u32 %v5647_v60, 16  ;;  %v2966_v24 = vrot.slane %v2964_v17, 4  ;;  %v2973_v37 = vshll.u32 %v5688_v22, 16 }
 0x20e   : > { %2364 = vmatmul.bf16.gmra.mxu2 %v2280_v6  ;;  %v2413_v6 = vld [vmem:[#allocation2 + $0x40] sm:$0xe]  ;;  %v2978_v20 = vshrl.u32 %v2885_v3, 16  ;;  %v2205_v32 = vrot.slane %v2203_v28, 4  ;;  %v2208_v16 = vrot.slane %v2206_v14, 5 }
 0x20f   : > { %v2961_v2 = vrot.slane %v2959_v33, 5  ;;  %v4396_v49 = vrot.slane %v2413_v6, 9  ;;  %v2186_v33 = vrot.slane %v2184_v59, 5  ;;  %v2541_v6 = vunpack.c.l.b16 %v2481_v25 }
 0x210   : > { %v2981_v59 = vshll.u32 %v2885_v3, 16  ;;  %v2975_v36 = vrot.slane %v2973_v37, 5 }
 0x211   : > { %v5665_v1 = vpop.f32.mrf.mxu2  ;;  %v2962_v51 = vsel %vm5297_vm8, %v2957_v63, %v2961_v2  ;;  %v2485_v58 = vsel %vm5385_vm11, %v4396_v49, %v2484_v26  ;;  %v2967_v2 = vshll.u32 %v2883_v62, 16  ;;  %v948_v63 = vld [vmem:[#allocation2 + $0x94] sm:$0x1]  ;;  %v4770_v49 = vld [vmem:[#allocation7 + $0x208] sm:$0xff]  ;;  %v4443_v26 = vld [vmem:[#allocation2 + $0x20] sm:$0xf] }
 0x212   : > { %v3151_v30 = vunpack.c.l.b16 %v2962_v51  ;;  %v2980_v51 = vrot.slane %v2978_v20, 4  ;;  %3508 = vmatpush.bf16.msra.mxu2 %v4770_v49 }
 0x213   : > { %v5682_v7 = vpop.f32.mrf.mxu1 }
 0x214   : > { %v1484_v47 = vpop.f32.mrf.mxu3  ;;  %v1738_v39 = vpop.f32.mrf.mxu0  ;;  %v3165_v4 = vpack.c.b16 %v3151_v30, %v3150_v29  ;;  %v2969_v29 = vrot.slane %v2967_v2, 5  ;;  %v5715_v30 = vld [vmem:[#allocation2 + $0x84] sm:$0x1] }
 0x215   : > { %v5676_v27 = vadd.f32 %v1484_v47, %v1339_v0  ;;  %v1778_v35 = vadd.f32 %v1738_v39, %v5617_v21  ;;  %v815_v21 = vrot.slane %v5562_v54, 4  ;;  %v2191_v54 = vrot.slane %v2189_v9, 4 }
 0x216   : > { %3241 = vmatmul.bf16.gmra.mxu1 %v3165_v4  ;;  %v2212_v14 = vshll.u32 %v5715_v30, 16 }
 0x217   : > { %v5686_v0 = vadd.f32 %v5634_v44, %v1778_v35  ;;  %2818 = vmatmul.bf16.vlgmr.msra.gmra.mxu0 %v4440_v40  ;;  %v2173_v44 = vsel %vm5297_vm8, %v5672_v31, %v5674_v61  ;;  %v2187_v40 = vsel %vm5297_vm8, %v2182_v42, %v2186_v33  ;;  %v2542_v31 = vunpack.c.l.b16 %v2485_v58  ;;  %v5710_v61 = vld [vmem:[#allocation2 + $0x7c] sm:$0x1] }
 0x218   : > { %v2983_v35 = vrot.slane %v2981_v59, 5  ;;  %v949_v38 = vsel %vm5257_vm5, %v815_v21, %v948_v63  ;;  %v2195_v42 = vor.u32 %v2194_v15, %v2191_v54  ;;  %v2198_v33 = vshll.u32 %v5710_v61, 16  ;;  %v2887_v15 = vld [vmem:[#allocation2 + $0x40] sm:$0xf] }
 0x219   : > { %v5691_v23 = vpop.f32.mrf.mxu2  ;;  %2633 = vmatmul.bf16.gmra.mxu3 %v2553_v18  ;;  %v5705_v18 = vld [vmem:[#allocation2 + $0x3c] sm:$0x1]  ;;  %950 = vst [vmem:[#allocation2 + $0x94] sm:$0x1] %v949_v38  ;;  %v2271_v3 = vunpack.c.l.b16 %v2173_v44  ;;  %v2209_v58 = vor.u32 %v2208_v16, %v2205_v32  ;;  %v2272_v2 = vunpack.c.l.b16 %v2187_v40  ;;  %v2415_v63 = vld [vmem:[#allocation2 + $0x60] sm:$0xe] }
 0x21a   : > { %v2987_v9 = vshll.u32 %v5705_v18, 16  ;;  %v2984_v4 = vor.u32 %v2983_v35, %v2980_v51  ;;  %v2196_v20 = vrot.slane %v2195_v42, 4  ;;  %v2200_v59 = vrot.slane %v2198_v33, 5  ;;  %v5744_v38 = vld [vmem:[#allocation2 + $0x44] sm:$0x1] }
 0x21b   : > { %v5713_v39 = vpop.f32.mrf.mxu1  ;;  %v2488_v40 = vrot.slane %v5626_v45, 5  ;;  %v2210_v49 = vrot.slane %v2209_v58, 4  ;;  %v2214_v51 = vrot.slane %v2212_v14, 5  ;;  %v2992_v35 = vshrl.u32 %v2887_v15, 16  ;;  %v2016_v45 = vld [vmem:[#allocation2 + $0x88] sm:$0xf] }
 0x21c   : > { %v1487_v19 = vpop.f32.mrf.mxu3  ;;  %v1740_v47 = vpop.f32.mrf.mxu0  ;;  %v2989_v28 = vrot.slane %v2987_v9, 5  ;;  %v2985_v21 = vrot.slane %v2984_v4, 4  ;;  %v2282_v33 = vpack.c.b16 %v2272_v2, %v2271_v3  ;;  %v2217_v58 = vshrl.u32 %v2016_v45, 16  ;;  %v5757_v3 = vld [vmem:[#allocation2 + $0x4c] sm:$0x1] }
 0x21d   : > { %v5708_v13 = vadd.f32 %v1487_v19, %v5615_v56  ;;  %v1779_v62 = vadd.f32 %v1740_v47, %v5632_v52  ;;  %v2970_v56 = vor.u32 %v2969_v29, %v2966_v24  ;;  %v4746_v52 = vld [vmem:[#allocation2 + $0x24] sm:$0xf0]  ;;  %v2414_v24 = vld [vmem:[#allocation2 + $0x58] sm:$0xe]  ;;  %v2994_v4 = vrot.slane %v2992_v35, 4 }
 0x21e   : > { %2369 = vmatmul.bf16.gmra.mxu2 %v2281_v34  ;;  %v4444_v37 = vor.u32 %v4746_v52, %v4443_v26  ;;  %v2990_v47 = vsel %vm5297_vm8, %v2985_v21, %v2989_v28  ;;  %v4398_v26 = vrot.slane %v2415_v63, 9  ;;  %v3001_v14 = vshll.u32 %v5744_v38, 16 }
 0x21f   : > { %v5721_v17 = vadd.f32 %v5659_v12, %v1779_v62  ;;  %v2971_v25 = vrot.slane %v2970_v56, 4  ;;  %v2554_v12 = vpack.c.b16 %v2542_v31, %v2541_v6  ;;  %v4397_v62 = vrot.slane %v2414_v24, 9 }
 0x220   : > { %v3153_v6 = vunpack.c.l.b16 %v2990_v47  ;;  %v2492_v56 = vrot.slane %v5628_v48, 5  ;;  %v2215_v48 = vsel %vm5297_vm8, %v2210_v49, %v2214_v51  ;;  %v3003_v63 = vrot.slane %v3001_v14, 5  ;;  %v4447_v51 = vld [vmem:[#allocation2 + $0x30] sm:$0xf] }
 0x221   : > { %v5724_v34 = vpop.f32.mrf.mxu2  ;;  %v2976_v54 = vsel %vm5297_vm8, %v2971_v25, %v2975_v36  ;;  %v2489_v42 = vsel %vm5385_vm11, %v4397_v62, %v2488_v40  ;;  %v2995_v25 = vshll.u32 %v2887_v15, 16  ;;  %v2219_v35 = vrot.slane %v2217_v58, 4  ;;  %v2891_v58 = vld [vmem:[#allocation2 + $0x60] sm:$0xf] }
 0x222   : > { %v3152_v44 = vunpack.c.l.b16 %v2976_v54  ;;  %v2220_v54 = vshll.u32 %v2016_v45, 16  ;;  %v3343_v45 = vrot.slane %v5597_v50, 5  ;;  %v3020_v50 = vshrl.u32 %v2891_v58, 16 }
 0x223   : > { %v5736_v16 = vpop.f32.mrf.mxu1  ;;  %v2997_v2 = vrot.slane %v2995_v25, 5 }
 0x224   : > { %v1489_v19 = vpop.f32.mrf.mxu3  ;;  %v1743_v29 = vpop.f32.mrf.mxu0  ;;  %v3166_v36 = vpack.c.b16 %v3153_v6, %v3152_v44 }
 0x225   : > { %v5732_v32 = vadd.f32 %v1489_v19, %v5638_v46  ;;  %v1780_v31 = vadd.f32 %v1743_v29, %v5651_v57  ;;  %v2201_v46 = vsel %vm5297_vm8, %v2196_v20, %v2200_v59  ;;  %v2889_v57 = vld [vmem:[#allocation2 + $0x48] sm:$0xf]  ;;  %v4769_v29 = vld [vmem:[#allocation7 + $0x200] sm:$0xff]  ;;  %v2998_v62 = vor.u32 %v2997_v2, %v2994_v4  ;;  %v5781_v2 = vld [vmem:[#allocation2 + $0x94] sm:$0x1] }
 0x226   : > { %3246 = vmatmul.bf16.gmra.mxu1 %v3166_v36  ;;  %v5752_v28 = vunpack.c.l.b16 %v2201_v46  ;;  %v3006_v24 = vshrl.u32 %v2889_v57, 16  ;;  %v3009_v6 = vshll.u32 %v2889_v57, 16  ;;  %v2222_v36 = vrot.slane %v2220_v54, 5  ;;  %3509 = vmatpush.bf16.msra.mxu2 %v4769_v29 }
 0x227   : > { %v5740_v9 = vadd.f32 %v5682_v7, %v1780_v31  ;;  %2823 = vmatmul.bf16.gmra.mxu0 %v4444_v37  ;;  %v2018_v7 = vld [vmem:[#allocation2 + $0x90] sm:$0xf]  ;;  %v2543_v37 = vunpack.c.l.b16 %v2489_v42  ;;  %v5765_v31 = vunpack.c.l.b16 %v2215_v48  ;;  %v3347_v42 = vrot.slane %v5611_v43, 5 }
 0x228   : > { %v2231_v15 = vshrl.u32 %v2018_v7, 16  ;;  %v2234_v59 = vshll.u32 %v2018_v7, 16  ;;  %v3008_v40 = vrot.slane %v3006_v24, 4  ;;  %v3011_v46 = vrot.slane %v3009_v6, 5 }
 0x229   : > { %v5746_v52 = vpop.f32.mrf.mxu2  ;;  %2638 = vmatmul.bf16.gmra.mxu3 %v2554_v12  ;;  %v2493_v12 = vsel %vm5385_vm11, %v4398_v26, %v2492_v56  ;;  %v4747_v56 = vld [vmem:[#allocation2 + $0x34] sm:$0xf0]  ;;  %v2283_v14 = vpack.c.b16 %v5765_v31, %v5752_v28 }
 0x22a   : > { %v2544_v49 = vunpack.c.l.b16 %v2493_v12  ;;  %v2233_v48 = vrot.slane %v2231_v15, 4  ;;  %v2236_v7 = vrot.slane %v2234_v59, 5  ;;  %v4448_v24 = vor.u32 %v4747_v56, %v4447_v51  ;;  %v2416_v59 = vld [vmem:[#allocation2 + $0x68] sm:$0xe] }
 0x22b   : > { %v5763_v44 = vpop.f32.mrf.mxu1  ;;  %v3023_v12 = vshll.u32 %v2891_v58, 16  ;;  %v2240_v56 = vshll.u32 %v5781_v2, 16  ;;  %v2500_v58 = vrot.slane %v5662_v5, 5 }
 0x22c   : > { %v1492_v21 = vpop.f32.mrf.mxu3  ;;  %v1745_v20 = vpop.f32.mrf.mxu0  ;;  %v2555_v54 = vpack.c.b16 %v2544_v49, %v2543_v37  ;;  %v2237_v51 = vor.u32 %v2236_v7, %v2233_v48  ;;  %v2417_v37 = vld [vmem:[#allocation2 + $0x70] sm:$0xe] }
 0x22d   : > { %v5760_v19 = vadd.f32 %v1492_v21, %v5665_v1  ;;  %v1781_v47 = vadd.f32 %v1745_v20, %v5676_v27  ;;  %v3015_v1 = vshll.u32 %v5757_v3, 16  ;;  %v2999_v27 = vrot.slane %v2998_v62, 4  ;;  %v2893_v21 = vld [vmem:[#allocation2 + $0x68] sm:$0xf] }
 0x22e   : > { %2374 = vmatmul.bf16.gmra.mxu2 %v2282_v33  ;;  %v5775_v33 = vld [vmem:[#allocation2 + $0x8c] sm:$0x1]  ;;  %v2223_v20 = vor.u32 %v2222_v36, %v2219_v35  ;;  %v3025_v28 = vrot.slane %v3023_v12, 5  ;;  %v3293_v35 = vld [vmem:[#allocation2 + $0x10] sm:$0xe]  ;;  %v4399_v36 = vrot.slane %v2416_v59, 9 }
 0x22f   : > { %v5769_v26 = vadd.f32 %v5713_v39, %v1781_v47  ;;  %v3004_v4 = vsel %vm5297_vm8, %v2999_v27, %v3003_v63  ;;  %v3012_v39 = vor.u32 %v3011_v46, %v3008_v40  ;;  %v3017_v25 = vrot.slane %v3015_v1, 5  ;;  %v3294_v46 = vld [vmem:[#allocation2 + $0x18] sm:$0xe]  ;;  %v5800_v12 = vld [vmem:[#allocation2 + $0x64] sm:$0x1] }
 0x230   : > { %v2226_v15 = vshll.u32 %v5775_v33, 16  ;;  %v3154_v62 = vunpack.c.l.b16 %v3004_v4  ;;  %v3022_v40 = vrot.slane %v3020_v50, 4  ;;  %v3034_v1 = vshrl.u32 %v2893_v21, 16 }
 0x231   : > { %v5773_v57 = vpop.f32.mrf.mxu2  ;;  %v3013_v47 = vrot.slane %v3012_v39, 4  ;;  %v4534_v39 = vrot.slane %v3294_v46, 9  ;;  %v3037_v48 = vshll.u32 %v2893_v21, 16  ;;  %v2224_v59 = vrot.slane %v2223_v20, 4 }
 0x233   : > { %v5788_v31 = vpop.f32.mrf.mxu1  ;;  %v3018_v49 = vsel %vm5297_vm8, %v3013_v47, %v3017_v25  ;;  %v4400_v25 = vrot.slane %v2417_v37, 9  ;;  %v2228_v47 = vrot.slane %v2226_v15, 5  ;;  %v3348_v21 = vsel %vm5385_vm11, %v4534_v39, %v3347_v42 }
 0x234   : > { %v1494_v43 = vpop.f32.mrf.mxu3  ;;  %v1748_v29 = vpop.f32.mrf.mxu0  ;;  %v3155_v27 = vunpack.c.l.b16 %v3018_v49  ;;  %v3029_v37 = vshll.u32 %v5800_v12, 16  ;;  %v3039_v49 = vrot.slane %v3037_v48, 5  ;;  %v4451_v48 = vld [vmem:[#allocation2 + $0x40] sm:$0xf] }
 0x235   : > { %v5785_v63 = vadd.f32 %v1494_v43, %v5691_v23  ;;  %v1782_v6 = vadd.f32 %v1748_v29, %v5708_v13  ;;  %v2496_v23 = vrot.slane %v5653_v41, 5  ;;  %v4533_v13 = vrot.slane %v3293_v35, 9  ;;  %v5802_v43 = vld [vmem:[#allocation2 + $0x6c] sm:$0x1] }
 0x236   : > { %v3167_v50 = vpack.c.b16 %v3155_v27, %v3154_v62  ;;  %v3026_v41 = vor.u32 %v3025_v28, %v3022_v40  ;;  %v2238_v29 = vrot.slane %v2237_v51, 4  ;;  %v3423_v62 = vunpack.c.l.b16 %v3348_v21 }
 0x237   : > { %v5795_v4 = vadd.f32 %v5736_v16, %v1782_v6  ;;  %2828 = vmatmul.bf16.gmra.mxu0 %v4448_v24  ;;  %v3344_v16 = vsel %vm5385_vm11, %v4533_v13, %v3343_v45  ;;  %v3036_v24 = vrot.slane %v3034_v1, 4  ;;  %v3043_v40 = vshll.u32 %v5802_v43, 16 }
 0x238   : > { %3251 = vmatmul.bf16.gmra.mxu1 %v3167_v50  ;;  %v3027_v6 = vrot.slane %v3026_v41, 4  ;;  %v2242_v45 = vrot.slane %v2240_v56, 5  ;;  %v2497_v28 = vsel %vm5385_vm11, %v4399_v36, %v2496_v23  ;;  %v2501_v42 = vsel %vm5385_vm11, %v4400_v25, %v2500_v58  ;;  %v4748_v25 = vld [vmem:[#allocation2 + $0x44] sm:$0xf0]  ;;  %v2895_v50 = vld [vmem:[#allocation2 + $0x70] sm:$0xf] }
 0x239   : > { %v5797_v7 = vpop.f32.mrf.mxu2  ;;  %2643 = vmatmul.bf16.gmra.mxu3 %v2555_v54  ;;  %v3422_v54 = vunpack.c.l.b16 %v3344_v16  ;;  %v3031_v27 = vrot.slane %v3029_v37, 5  ;;  %v3040_v46 = vor.u32 %v3039_v49, %v3036_v24  ;;  %v3045_v13 = vrot.slane %v3043_v40, 5  ;;  %v2418_v41 = vld [vmem:[#allocation2 + $0x78] sm:$0xe] }
 0x23a   : > { %v2546_v39 = vunpack.c.l.b16 %v2501_v42  ;;  %v2243_v58 = vsel %vm5297_vm8, %v2238_v29, %v2242_v45  ;;  %v3048_v21 = vshrl.u32 %v2895_v50, 16  ;;  %v4401_v42 = vrot.slane %v2418_v41, 9 }
 0x23b   : > { %v5818_v35 = vpop.f32.mrf.mxu1  ;;  %v5820_v1 = vpack.c.b16 %v3423_v62, %v3422_v54  ;;  %v3032_v56 = vsel %vm5297_vm8, %v3027_v6, %v3031_v27  ;;  %v3041_v36 = vrot.slane %v3040_v46, 4  ;;  %v3051_v54 = vshll.u32 %v2895_v50, 16  ;;  %v3295_v27 = vld [vmem:[#allocation2 + $0x20] sm:$0xe] }
 0x23c   : > { %v1497_v5 = vpop.f32.mrf.mxu3  ;;  %v1750_v15 = vpop.f32.mrf.mxu0  ;;  %v3156_v16 = vunpack.c.l.b16 %v3032_v56  ;;  %v4452_v62 = vor.u32 %v4748_v25, %v4451_v48  ;;  %v3050_v29 = vrot.slane %v3048_v21, 4  ;;  %v2508_v56 = vrot.slane %v5715_v30, 5  ;;  %v5847_v25 = vld [vmem:[#allocation2 + $0x74] sm:$0x1] }
 0x23d   : > { %v5811_v20 = vadd.f32 %v1497_v5, %v5724_v34  ;;  %v1783_v51 = vadd.f32 %v1750_v15, %v5732_v32  ;;  %v2545_v32 = vunpack.c.l.b16 %v2497_v28  ;;  %v3053_v15 = vrot.slane %v3051_v54, 5 }
 0x23e   : > { %2379 = vmatmul.bf16.gmra.mxu2 %v2283_v14  ;;  %v2229_v14 = vsel %vm5297_vm8, %v2224_v59, %v2228_v47  ;;  %v2419_v59 = vld [vmem:[#allocation2 + $0x80] sm:$0xe]  ;;  %v2897_v47 = vld [vmem:[#allocation2 + $0x78] sm:$0xf]  ;;  %v2276_v28 = vunpack.c.l.b16 %v2243_v58  ;;  %v3355_v58 = vrot.slane %v5647_v60, 5 }
 0x23f   : > { %v5823_v34 = vadd.f32 %v5763_v44, %v1783_v51  ;;  %v3046_v44 = vsel %vm5297_vm8, %v3041_v36, %v3045_v13  ;;  %v2275_v5 = vunpack.c.l.b16 %v2229_v14  ;;  %v2556_v40 = vpack.c.b16 %v2546_v39, %v2545_v32  ;;  %v3296_v14 = vld [vmem:[#allocation2 + $0x28] sm:$0xe] }
 0x240   : > { %v3157_v24 = vunpack.c.l.b16 %v3046_v44  ;;  %v2504_v51 = vrot.slane %v5710_v61, 5  ;;  %v4402_v13 = vrot.slane %v2419_v59, 9  ;;  %v4535_v32 = vrot.slane %v3295_v27, 9  ;;  %v4749_v27 = vld [vmem:[#allocation2 + $0x64] sm:$0xf0] }
 0x241   : > { %v5827_v23 = vpop.f32.mrf.mxu2  ;;  %v4536_v39 = vrot.slane %v3296_v14, 9  ;;  %v3054_v44 = vor.u32 %v3053_v15, %v3050_v29  ;;  %v3065_v30 = vshll.u32 %v2897_v47, 16  ;;  %v2284_v50 = vpack.c.b16 %v2276_v28, %v2275_v5 }
 0x242   : > { %v3168_v36 = vpack.c.b16 %v3157_v24, %v3156_v16  ;;  %v2505_v41 = vsel %vm5385_vm11, %v4401_v42, %v2504_v51  ;;  %v5856_v16 = vld [vmem:[#allocation2 + $0x7c] sm:$0x1]  ;;  %v2509_v24 = vsel %vm5385_vm11, %v4402_v13, %v2508_v56  ;;  %v4455_v42 = vld [vmem:[#allocation2 + $0x60] sm:$0xf]  ;;  %v5870_v13 = vld [vmem:[#allocation2 + $0x88] sm:$0xe] }
 0x243   : > { %v5840_v46 = vpop.f32.mrf.mxu1  ;;  %v3356_v60 = vsel %vm5385_vm11, %v4536_v39, %v3355_v58  ;;  %v3055_v54 = vrot.slane %v3054_v44, 4  ;;  %v3071_v29 = vshll.u32 %v5856_v16, 16  ;;  %v2548_v28 = vunpack.c.l.b16 %v2509_v24 }
 0x244   : > { %v1499_v6 = vpop.f32.mrf.mxu3  ;;  %v1753_v49 = vpop.f32.mrf.mxu0  ;;  %v3425_v5 = vunpack.c.l.b16 %v3356_v60  ;;  %v4456_v58 = vor.u32 %v4749_v27, %v4455_v42  ;;  %v4403_v44 = vrot.slane %v5870_v13, 9  ;;  %v3298_v42 = vld [vmem:[#allocation2 + $0x38] sm:$0xe]  ;;  %v5889_v27 = vld [vmem:[#allocation2 + $0x84] sm:$0x1] }
 0x245   : > { %v5836_v37 = vadd.f32 %v1499_v6, %v5746_v52  ;;  %v1784_v45 = vadd.f32 %v1753_v49, %v5760_v19  ;;  %v3062_v52 = vshrl.u32 %v2897_v47, 16  ;;  %v3351_v19 = vrot.slane %v5641_v11, 5 }
 0x246   : > { %v3057_v11 = vshll.u32 %v5847_v25, 16 }
 0x247   : > { %v5844_v48 = vadd.f32 %v5788_v31, %v1784_v45  ;;  %2833 = vmatmul.bf16.gmra.mxu0 %v4452_v62  ;;  %v3352_v31 = vsel %vm5385_vm11, %v4535_v32, %v3351_v19  ;;  %v3064_v59 = vrot.slane %v3062_v52, 4  ;;  %v2547_v45 = vunpack.c.l.b16 %v2505_v41  ;;  %v2901_v41 = vld [vmem:[#allocation2 + $0x88] sm:$0xf] }
 0x248   : > { %3256 = vmatmul.bf16.gmra.mxu1 %v3168_v36  ;;  %v3424_v21 = vunpack.c.l.b16 %v3352_v31  ;;  %v3059_v62 = vrot.slane %v3057_v11, 5  ;;  %v3073_v36 = vrot.slane %v3071_v29, 5 }
 0x249   : > { %v5849_v61 = vpop.f32.mrf.mxu2  ;;  %2648 = vmatmul.bf16.gmra.mxu3 %v2556_v40  ;;  %v3067_v40 = vrot.slane %v3065_v30, 5  ;;  %v2557_v39 = vpack.c.b16 %v2548_v28, %v2547_v45  ;;  %v3297_v28 = vld [vmem:[#allocation2 + $0x30] sm:$0xe] }
 0x24a   : > { %v5868_v51 = vpack.c.b16 %v3425_v5, %v3424_v21  ;;  %v3060_v56 = vsel %vm5297_vm8, %v3055_v54, %v3059_v62  ;;  %v2512_v21 = vrot.slane %v5775_v33, 5  ;;  %v3093_v5 = vshll.u32 %v2901_v41, 16 }
 0x24b   : > { %v5879_v32 = vpop.f32.mrf.mxu1  ;;  %v3158_v30 = vunpack.c.l.b16 %v3060_v56  ;;  %v4537_v13 = vrot.slane %v3297_v28, 9  ;;  %v3359_v33 = vrot.slane %v5688_v22, 5  ;;  %v4538_v56 = vrot.slane %v3298_v42, 9 }
 0x24c   : > { %v1502_v6 = vpop.f32.mrf.mxu3  ;;  %v1755_v49 = vpop.f32.mrf.mxu0 }
 0x24d   : > { %v5864_v47 = vadd.f32 %v1502_v6, %v5773_v57  ;;  %v1785_v15 = vadd.f32 %v1755_v49, %v5785_v63  ;;  %v3068_v57 = vor.u32 %v3067_v40, %v3064_v59  ;;  %v2421_v63 = vld [vmem:[#allocation2 + $0x90] sm:$0xe]  ;;  %v3360_v22 = vsel %vm5385_vm11, %v4537_v13, %v3359_v33  ;;  %v4750_v13 = vld [vmem:[#allocation2 + $0x74] sm:$0xf0] }
 0x24e   : > { %2384 = vmatmul.bf16.gmra.mxu2 %v2284_v50  ;;  %v2899_v50 = vld [vmem:[#allocation2 + $0x80] sm:$0xf]  ;;  %v4404_v54 = vrot.slane %v2421_v63, 9 }
 0x24f   : > { %v5875_v14 = vadd.f32 %v5818_v35, %v1785_v15  ;;  %v3069_v19 = vrot.slane %v3068_v57, 4  ;;  %v3076_v11 = vshrl.u32 %v2899_v50, 16  ;;  %v3079_v24 = vshll.u32 %v2899_v50, 16 }
 0x250   : > { %v3090_v35 = vshrl.u32 %v2901_v41, 16  ;;  %v3363_v57 = vrot.slane %v5705_v18, 5  ;;  %v2516_v50 = vrot.slane %v5781_v2, 5 }
 0x251   : > { %v5877_v52 = vpop.f32.mrf.mxu2  ;;  %v3074_v31 = vsel %vm5297_vm8, %v3069_v19, %v3073_v36  ;;  %v3078_v49 = vrot.slane %v3076_v11, 4  ;;  %v3081_v40 = vrot.slane %v3079_v24, 5  ;;  %v5893_v36 = vld [vmem:[#allocation2 + $0x8c] sm:$0x1]  ;;  %v3095_v19 = vrot.slane %v3093_v5, 5 }
 0x252   : > { %v3159_v6 = vunpack.c.l.b16 %v3074_v31  ;;  %v3092_v29 = vrot.slane %v3090_v35, 4  ;;  %v3364_v18 = vsel %vm5385_vm11, %v4538_v56, %v3363_v57  ;;  %v3099_v41 = vshll.u32 %v5893_v36, 16  ;;  %v2905_v56 = vld [vmem:[#allocation2 + $0x98] sm:$0xf] }
 0x253   : > { %v3082_v63 = vor.u32 %v3081_v40, %v3078_v49  ;;  %v3427_v31 = vunpack.c.l.b16 %v3364_v18  ;;  %v2517_v49 = vsel %vm5385_vm11, %v4404_v54, %v2516_v50 }
 0x254   : > { %v1504_v60 = vpop.f32.mrf.mxu3  ;;  %v1758_v59 = vpop.f32.mrf.mxu0  ;;  %v3169_v45 = vpack.c.b16 %v3159_v6, %v3158_v30  ;;  %v3096_v35 = vor.u32 %v3095_v19, %v3092_v29  ;;  %v2550_v42 = vunpack.c.l.b16 %v2517_v49  ;;  %v3367_v49 = vrot.slane %v5744_v38, 5 }
 0x255   : > { %v5886_v62 = vadd.f32 %v1504_v60, %v5797_v7  ;;  %v1786_v15 = vadd.f32 %v1758_v59, %v5811_v20  ;;  %v3085_v20 = vshll.u32 %v5889_v27, 16  ;;  %v3083_v11 = vrot.slane %v3082_v63, 4 }
 0x256   : > { %v3101_v60 = vrot.slane %v3099_v41, 5  ;;  %v2513_v59 = vsel %vm5385_vm11, %v4403_v44, %v2512_v21  ;;  %v3097_v40 = vrot.slane %v3096_v35, 4  ;;  %v4459_v21 = vld [vmem:[#allocation2 + $0x70] sm:$0xf] }
 0x257   : > { %v5896_v7 = vadd.f32 %v5840_v46, %v1786_v15  ;;  %2838 = vmatmul.bf16.gmra.mxu0 %v4456_v58  ;;  %v3426_v46 = vunpack.c.l.b16 %v3360_v22  ;;  %v1957_v58 = vpop.f32.mrf.mxu1  ;;  %v3087_v24 = vrot.slane %v3085_v20, 5  ;;  %v2549_v28 = vunpack.c.l.b16 %v2513_v59 }
 0x258   : > { %3261 = vmatmul.bf16.gmra.mxu1 %v3169_v45  ;;  %v3102_v45 = vsel %vm5297_vm8, %v3097_v40, %v3101_v60  ;;  %v3118_v20 = vshrl.u32 %v2905_v56, 16  ;;  %v4460_v22 = vor.u32 %v4750_v13, %v4459_v21  ;;  %v3299_v60 = vld [vmem:[#allocation2 + $0x40] sm:$0xe] }
 0x259   : > { %v5899_v30 = vpop.f32.mrf.mxu2  ;;  %2653 = vmatmul.bf16.gmra.mxu3 %v2557_v39  ;;  %v5907_v39 = vpack.c.b16 %v3427_v31, %v3426_v46  ;;  %v3088_v29 = vsel %vm5297_vm8, %v3083_v11, %v3087_v24  ;;  %v3161_v33 = vunpack.c.l.b16 %v3102_v45  ;;  %v2558_v50 = vpack.c.b16 %v2550_v42, %v2549_v28 }
 0x25a   : > { %v4539_v59 = vrot.slane %v3299_v60, 9 }
 0x25c   : > { %v1507_v6 = vpop.f32.mrf.mxu3  ;;  %v1760_v5 = vpop.f32.mrf.mxu0 }
 0x25d   : > { %v5910_v2 = vadd.f32 %v1507_v6, %v5827_v23  ;;  %v1787_v15 = vadd.f32 %v1760_v5, %v5836_v37  ;;  %v2903_v37 = vld [vmem:[#allocation2 + $0x90] sm:$0xf]  ;;  %v3300_v6 = vld [vmem:[#allocation2 + $0x48] sm:$0xe]  ;;  %v5932_v5 = vld [vmem:[#allocation2 + $0x94] sm:$0x1] }
 0x25e   : > { %3510 = vmatmul.bf16.vlgmr.msra.gmra.mxu2 %v5820_v1  ;;  %v3160_v1 = vunpack.c.l.b16 %v3088_v29  ;;  %v3104_v57 = vshrl.u32 %v2903_v37, 16  ;;  %v3107_v63 = vshll.u32 %v2903_v37, 16  ;;  %v4540_v40 = vrot.slane %v3300_v6, 9 }
 0x25f   : > { %v5923_v23 = vadd.f32 %v5879_v32, %v1787_v15  ;;  %v3121_v32 = vshll.u32 %v2905_v56, 16  ;;  %v1959_v46 = vpop.f32.mrf.mxu1  ;;  %v3371_v15 = vrot.slane %v5757_v3, 5  ;;  %v3113_v28 = vshll.u32 %v5932_v5, 16 }
 0x260   : > { %v3106_v31 = vrot.slane %v3104_v57, 4  ;;  %v3109_v11 = vrot.slane %v3107_v63, 5  ;;  %v3170_v35 = vpack.c.b16 %v3161_v33, %v3160_v1 }
 0x261   : > { %v2350_v44 = vpop.f32.mrf.mxu2  ;;  %v3372_v38 = vsel %vm5385_vm11, %v4540_v40, %v3371_v15  ;;  %v3115_v33 = vrot.slane %v3113_v28, 5  ;;  %v3302_v15 = vld [vmem:[#allocation2 + $0x68] sm:$0xe] }
 0x262   : > { %v5926_v54 = vadd.f32 %v2350_v44, %v5686_v0  ;;  %v3120_v0 = vrot.slane %v3118_v20, 4  ;;  %v3110_v45 = vor.u32 %v3109_v11, %v3106_v31  ;;  %v3368_v44 = vsel %vm5385_vm11, %v4539_v59, %v3367_v49 }
 0x263   : > { %v3429_v13 = vunpack.c.l.b16 %v3372_v38  ;;  %v4542_v28 = vrot.slane %v3302_v15, 9  ;;  %v3305_v15 = vld [vmem:[#allocation2 + $0x80] sm:$0xe] }
 0x264   : > { %v1509_v19 = vpop.f32.mrf.mxu3  ;;  %v1763_v41 = vpop.f32.mrf.mxu0  ;;  %v3111_v1 = vrot.slane %v3110_v45, 4  ;;  %v3375_v45 = vrot.slane %v5800_v12, 5 }
 0x265   : > { %v5929_v18 = vadd.f32 %v1509_v19, %v5849_v61  ;;  %v1788_v24 = vadd.f32 %v1763_v41, %v5864_v47  ;;  %v5936_v61 = vld [vmem:[#allocation2 + $0x9c] sm:$0x1]  ;;  %v3123_v47 = vrot.slane %v3121_v32, 5 }
 0x266   : > { %v3127_v21 = vshll.u32 %v5936_v61, 16  ;;  %v3116_v32 = vsel %vm5297_vm8, %v3111_v1, %v3115_v33 }
 0x267   : > { %v5938_v29 = vadd.f32 %v1957_v58, %v1788_v24  ;;  %2843 = vmatmul.bf16.gmra.mxu0 %v4460_v22  ;;  %v3428_v58 = vunpack.c.l.b16 %v3368_v44  ;;  %v3124_v37 = vor.u32 %v3123_v47, %v3120_v0  ;;  %v4463_v0 = vld [vmem:[#allocation2 + $0x80] sm:$0xf]  ;;  %v4751_v24 = vld [vmem:[#allocation2 + $0x84] sm:$0xf0]  ;;  %v3379_v47 = vrot.slane %v5802_v43, 5 }
 0x268   : > { %3266 = vmatmul.bf16.gmra.mxu1 %v3170_v35  ;;  %v3129_v56 = vrot.slane %v3127_v21, 5  ;;  %v3162_v35 = vunpack.c.l.b16 %v3116_v32  ;;  %v4464_v6 = vor.u32 %v4751_v24, %v4463_v0  ;;  %v3304_v32 = vld [vmem:[#allocation2 + $0x78] sm:$0xe] }
 0x269   : > { %v2352_v42 = vpop.f32.mrf.mxu2  ;;  %2658 = vmatmul.bf16.gmra.mxu3 %v2558_v50  ;;  %v5949_v63 = vpack.c.b16 %v3429_v13, %v3428_v58  ;;  %v3125_v50 = vrot.slane %v3124_v37, 4  ;;  %v4467_v37 = vld [vmem:[#allocation2 + $0x90] sm:$0xf] }
 0x26a   : > { %v5947_v3 = vadd.f32 %v2352_v42, %v5721_v17  ;;  %v1962_v17 = vpop.f32.mrf.mxu1 }
 0x26b   : > { %v3130_v41 = vsel %vm5297_vm8, %v3125_v50, %v3129_v56  ;;  %v4752_v56 = vld [vmem:[#allocation2 + $0x94] sm:$0xf0] }
 0x26c   : > { %v1512_v57 = vpop.f32.mrf.mxu3  ;;  %v1765_v19 = vpop.f32.mrf.mxu0  ;;  %v3163_v60 = vunpack.c.l.b16 %v3130_v41 }
 0x26d   : > { %v1513_v20 = vadd.f32 %v1512_v57, %v5877_v52  ;;  %v1789_v22 = vadd.f32 %v1765_v19, %v5886_v62 }
 0x26e   : > { %3515 = vmatmul.bf16.gmra.mxu2 %v5868_v51  ;;  %v3171_v40 = vpack.c.b16 %v3163_v60, %v3162_v35 }
 0x26f   : > { %v5958_v31 = vadd.f32 %v1959_v46, %v1789_v22  ;;  %v4541_v46 = vrot.slane %v3301_v10, 9 }
 0x271   : > { %v2355_v11 = vpop.f32.mrf.mxu2 }
 0x272   : > { %v5961_v52 = vadd.f32 %v2355_v11, %v5740_v9  ;;  %v1964_v44 = vpop.f32.mrf.mxu1  ;;  %v3383_v11 = vrot.slane %v5847_v25, 5 }
 0x274   : > { %v1514_v51 = vpop.f32.mrf.mxu3  ;;  %v1768_v59 = vpop.f32.mrf.mxu0 }
 0x275   : > { %v1515_v62 = vadd.f32 %v1514_v51, %v5899_v30  ;;  %v1790_v49 = vadd.f32 %v1768_v59, %v5910_v2  ;;  %v3376_v30 = vsel %vm5385_vm11, %v4541_v46, %v3375_v45  ;;  %v3380_v2 = vsel %vm5385_vm11, %v4542_v28, %v3379_v47  ;;  %v3306_v46 = vld [vmem:[#allocation2 + $0x88] sm:$0xe] }
 0x276   : > { %v3430_v21 = vunpack.c.l.b16 %v3376_v30  ;;  %v3431_v58 = vunpack.c.l.b16 %v3380_v2  ;;  %v4545_v45 = vrot.slane %v3305_v15, 9  ;;  %v4546_v28 = vrot.slane %v3306_v46, 9 }
 0x277   : > { %v5967_v9 = vadd.f32 %v1962_v17, %v1790_v49  ;;  %2848 = vmatmul.bf16.gmra.mxu0 %v4464_v6  ;;  %v3303_v17 = vld [vmem:[#allocation2 + $0x70] sm:$0xe]  ;;  %v3395_v47 = vrot.slane %v5893_v36, 5  ;;  %v3308_v36 = vld [vmem:[#allocation2 + $0x98] sm:$0xe] }
 0x278   : > { %3271 = vmatmul.bf16.gmra.mxu1 %v3171_v40  ;;  %v3442_v12 = vpack.c.b16 %v3431_v58, %v3430_v21  ;;  %v4543_v41 = vrot.slane %v3303_v17, 9  ;;  %v3307_v58 = vld [vmem:[#allocation2 + $0x90] sm:$0xe] }
 0x279   : > { %v2357_v42 = vpop.f32.mrf.mxu2 }
 0x27a   : > { %v5974_v38 = vadd.f32 %v2357_v42, %v5769_v26  ;;  %v1967_v19 = vpop.f32.mrf.mxu1  ;;  %v4468_v26 = vor.u32 %v4752_v56, %v4467_v37  ;;  %v3403_v37 = vrot.slane %v5936_v61, 5 }
 0x27c   : > { %v1770_v13 = vpop.f32.mrf.mxu0  ;;  %v2624_v61 = vpop.f32.mrf.mxu3 }
 0x27d   : > { %v1791_v43 = vadd.f32 %v1770_v13, %v5929_v18  ;;  %v3387_v18 = vrot.slane %v5856_v16, 5  ;;  %v4547_v13 = vrot.slane %v3307_v58, 9 }
 0x27e   : > { %3520 = vmatmul.bf16.gmra.mxu2 %v5907_v39  ;;  %v4544_v39 = vrot.slane %v3304_v32, 9 }
 0x27f   : > { %v5978_v1 = vadd.f32 %v1964_v44, %v1791_v43  ;;  %v3399_v43 = vrot.slane %v5932_v5, 5 }
 0x280   : > { %v3388_v35 = vsel %vm5385_vm11, %v4544_v39, %v3387_v18  ;;  %v5007_v18 = vmov 0  }
 0x281   : > { %v2360_v33 = vpop.f32.mrf.mxu2  ;;  %v3433_v51 = vunpack.c.l.b16 %v3388_v35  ;;  %3605 = vst [vmem:[%s5133_s6 + $0x8] sm:$0xf] %v5007_v18 }
 0x282   : > { %v5981_v57 = vadd.f32 %v2360_v33, %v5795_v4  ;;  %v3384_v4 = vsel %vm5385_vm11, %v4543_v41, %v3383_v11  ;;  %v1969_v59 = vpop.f32.mrf.mxu1  ;;  %v4548_v33 = vrot.slane %v3308_v36, 9  ;;  %3606 = vst [vmem:[%s5133_s6 + $0xc] sm:$0x1] %v5007_v18 }
 0x283   : > { %v3432_v60 = vunpack.c.l.b16 %v3384_v4  ;;  %3625 = vst [vmem:[%s5133_s6 + $0x58] sm:$0xf] %v5007_v18 }
 0x284   : > { %v1773_v50 = vpop.f32.mrf.mxu0  ;;  %3626 = vst [vmem:[%s5133_s6 + $0x5c] sm:$0x1] %v5007_v18 }
 0x285   : > { %v1792_v22 = vadd.f32 %v1773_v50, %v1513_v20  ;;  %v3443_v6 = vpack.c.b16 %v3433_v51, %v3432_v60  ;;  %3603 = vst [vmem:[%s5133_s6] sm:$0xf] %v5007_v18 }
 0x286   : > { %3604 = vst [vmem:[%s5133_s6 + $0x4] sm:$0x1] %v5007_v18 }
 0x287   : > { %v5985_v0 = vadd.f32 %v1967_v19, %v1792_v22  ;;  %2853 = vmatmul.bf16.gmra.mxu0 %v4468_v26  ;;  %v3404_v19 = vsel %vm5385_vm11, %v4548_v33, %v3403_v37  ;;  %3607 = vst [vmem:[%s5133_s6 + $0x10] sm:$0xf] %v5007_v18 }
 0x288   : > { %v3437_v26 = vunpack.c.l.b16 %v3404_v19  ;;  %3608 = vst [vmem:[%s5133_s6 + $0x14] sm:$0x1] %v5007_v18 }
 0x289   : > { %v2362_v24 = vpop.f32.mrf.mxu2  ;;  %3609 = vst [vmem:[%s5133_s6 + $0x18] sm:$0xf] %v5007_v18  ;;  %v4583_v19 = vld [vmem:[%s5133_s6 + $0xc] sm:$0x1] }
 0x28a   : > { %v5992_v20 = vadd.f32 %v2362_v24, %v5823_v34  ;;  %v3391_v34 = vrot.slane %v5889_v27, 5  ;;  %v3237_v32 = vpop.f32.mrf.mxu1  ;;  %3610 = vst [vmem:[%s5133_s6 + $0x1c] sm:$0x1] %v5007_v18 }
 0x28b   : > { %3611 = vst [vmem:[%s5133_s6 + $0x20] sm:$0xf] %v5007_v18 }
 0x28c   : > { %v1775_v25 = vpop.f32.mrf.mxu0  ;;  %v3392_v44 = vsel %vm5385_vm11, %v4545_v45, %v3391_v34  ;;  %3612 = vst [vmem:[%s5133_s6 + $0x24] sm:$0x1] %v5007_v18 }
 0x28d   : > { %v1793_v16 = vadd.f32 %v1775_v25, %v1515_v62  ;;  %3613 = vst [vmem:[%s5133_s6 + $0x28] sm:$0xf] %v5007_v18 }
 0x28e   : > { %3525 = vmatmul.bf16.gmra.mxu2 %v5949_v63  ;;  %v3396_v63 = vsel %vm5385_vm11, %v4546_v28, %v3395_v47  ;;  %3614 = vst [vmem:[%s5133_s6 + $0x2c] sm:$0x1] %v5007_v18 }
 0x28f   : > { %v5995_v49 = vadd.f32 %v1969_v59, %v1793_v16  ;;  %v3435_v30 = vunpack.c.l.b16 %v3396_v63  ;;  %3615 = vst [vmem:[%s5133_s6 + $0x30] sm:$0xf] %v5007_v18  ;;  %v2664_v59 = vadd.f32 %v2624_v61, %v5926_v54 }
 0x290   : > { %3616 = vst [vmem:[%s5133_s6 + $0x34] sm:$0x1] %v5007_v18 }
 0x291   : > { %v2365_v40 = vpop.f32.mrf.mxu2  ;;  %3617 = vst [vmem:[%s5133_s6 + $0x38] sm:$0xf] %v5007_v18 }
 0x292   : > { %v5998_v10 = vadd.f32 %v2365_v40, %v5844_v48  ;;  %v3434_v48 = vunpack.c.l.b16 %v3392_v44  ;;  %3618 = vst [vmem:[%s5133_s6 + $0x3c] sm:$0x1] %v5007_v18 }
 0x293   : > { %3619 = vst [vmem:[%s5133_s6 + $0x40] sm:$0xf] %v5007_v18 }
 0x294   : > { %v3444_v2 = vpack.c.b16 %v3435_v30, %v3434_v48  ;;  %3620 = vst [vmem:[%s5133_s6 + $0x44] sm:$0x1] %v5007_v18 }
 0x295   : > { %3621 = vst [vmem:[%s5133_s6 + $0x48] sm:$0xf] %v5007_v18 }
 0x296   : > { %3622 = vst [vmem:[%s5133_s6 + $0x4c] sm:$0x1] %v5007_v18 }
 0x297   : > { %3623 = vst [vmem:[%s5133_s6 + $0x50] sm:$0xf] %v5007_v18 }
 0x298   : > { %3624 = vst [vmem:[%s5133_s6 + $0x54] sm:$0x1] %v5007_v18 }
 0x299   : > { %v2367_v42 = vpop.f32.mrf.mxu2  ;;  %3627 = vst [vmem:[%s5133_s6 + $0x60] sm:$0xf] %v5007_v18 }
 0x29a   : > { %v6007_v62 = vadd.f32 %v2367_v42, %v5875_v14  ;;  %v3400_v14 = vsel %vm5385_vm11, %v4547_v13, %v3399_v43  ;;  %3628 = vst [vmem:[%s5133_s6 + $0x64] sm:$0x1] %v5007_v18 }
 0x29b   : > { %3629 = vst [vmem:[%s5133_s6 + $0x68] sm:$0xf] %v5007_v18 }
 0x29c   : > { %3630 = vst [vmem:[%s5133_s6 + $0x6c] sm:$0x1] %v5007_v18 }
 0x29d   : > { %3631 = vst [vmem:[%s5133_s6 + $0x70] sm:$0xf] %v5007_v18 }
 0x29e   : > { %3530 = vmatmul.bf16.gmra.mxu2 %v3442_v12  ;;  %3632 = vst [vmem:[%s5133_s6 + $0x74] sm:$0x1] %v5007_v18 }
 0x29f   : > { %3633 = vst [vmem:[%s5133_s6 + $0x78] sm:$0xf] %v5007_v18 }
 0x2a0   : > { %3634 = vst [vmem:[%s5133_s6 + $0x7c] sm:$0x1] %v5007_v18 }
 0x2a1   : > { %v2370_v21 = vpop.f32.mrf.mxu2  ;;  %3635 = vst [vmem:[%s5133_s6 + $0x80] sm:$0xf] %v5007_v18 }
 0x2a2   : > { %v6010_v27 = vadd.f32 %v2370_v21, %v5896_v7  ;;  %v3436_v7 = vunpack.c.l.b16 %v3400_v14  ;;  %3636 = vst [vmem:[%s5133_s6 + $0x84] sm:$0x1] %v5007_v18 }
 0x2a3   : > { %3637 = vst [vmem:[%s5133_s6 + $0x88] sm:$0xf] %v5007_v18 }
 0x2a4   : > { %v3445_v50 = vpack.c.b16 %v3437_v26, %v3436_v7  ;;  %3638 = vst [vmem:[%s5133_s6 + $0x8c] sm:$0x1] %v5007_v18 }
 0x2a5   : > { %3639 = vst [vmem:[%s5133_s6 + $0x90] sm:$0xf] %v5007_v18 }
 0x2a6   : > { %3640 = vst [vmem:[%s5133_s6 + $0x94] sm:$0x1] %v5007_v18 }
 0x2a7   : > { %3641 = vst [vmem:[%s5133_s6 + $0x98] sm:$0xf] %v5007_v18 }
 0x2a8   : > { %3642 = vst [vmem:[%s5133_s6 + $0x9c] sm:$0x1] %v5007_v18 }
 0x2a9   : > { %v2372_v56 = vpop.f32.mrf.mxu2 }
 0x2aa   : > { %v6019_v12 = vadd.f32 %v2372_v56, %v5923_v23  ;;  %v2819_v23 = vpop.f32.mrf.mxu0 }
 0x2ab   : > { %v2859_v40 = vadd.f32 %v2819_v23, %v2664_v59 }
 0x2ad   : > { %v3277_v54 = vadd.f32 %v3237_v32, %v2859_v40 }
 0x2ae   : > { %3535 = vmatmul.bf16.gmra.mxu2 %v3443_v6 }
 0x2b1   : > { %v2375_v5 = vpop.f32.mrf.mxu2 }
 0x2b2   : > { %v6022_v22 = vadd.f32 %v2375_v5, %v5938_v29  ;;  %v2626_v29 = vpop.f32.mrf.mxu3  ;;  %v2821_v39 = vpop.f32.mrf.mxu0 }
 0x2b3   : > { %v2665_v34 = vadd.f32 %v2626_v29, %v5947_v3 }
 0x2b5   : > { %v2860_v42 = vadd.f32 %v2821_v39, %v2665_v34 }
 0x2b9   : > { %v2377_v17 = vpop.f32.mrf.mxu2 }
 0x2ba   : > { %v6025_v55 = vadd.f32 %v2377_v17, %v5958_v31  ;;  %v3239_v31 = vpop.f32.mrf.mxu1 }
 0x2bb   : > { %v3278_v48 = vadd.f32 %v3239_v31, %v2860_v42 }
 0x2be   : > { %3540 = vmatmul.bf16.gmra.mxu2 %v3444_v2 }
 0x2c1   : > { %v2380_v41 = vpop.f32.mrf.mxu2 }
 0x2c2   : > { %v6028_v11 = vadd.f32 %v2380_v41, %v5967_v9  ;;  %v2629_v9 = vpop.f32.mrf.mxu3  ;;  %v6060_v51 = vpop.f32.mrf.mxu1 }
 0x2c3   : > { %v2666_v21 = vadd.f32 %v2629_v9, %v5961_v52  ;;  %v4581_v52 = vld [vmem:[%s5133_s6 + $0x8] sm:$0xf] }
 0x2c9   : > { %v2382_v24 = vpop.f32.mrf.mxu2 }
 0x2ca   : > { %v6037_v4 = vadd.f32 %v2382_v24, %v5978_v1  ;;  %v2824_v1 = vpop.f32.mrf.mxu0  ;;  %v6070_v6 = vpop.f32.mrf.mxu3 }
 0x2cb   : > { %v6090_v15 = vpop.f32.mrf.mxu1  ;;  %v2861_v43 = vadd.f32 %v2824_v1, %v2666_v21  ;;  %v2667_v29 = vadd.f32 %v6070_v6, %v5974_v38 }
 0x2cd   : > { %v3279_v5 = vadd.f32 %v6060_v51, %v2861_v43  ;;  %v4585_v51 = vld [vmem:[%s5133_s6 + $0x10] sm:$0xf] }
 0x2ce   : > { %3545 = vmatmul.bf16.gmra.mxu2 %v3445_v50 }
 0x2d1   : > { %v2385_v35 = vpop.f32.mrf.mxu2 }
 0x2d2   : > { %v6056_v60 = vadd.f32 %v2385_v35, %v5985_v0  ;;  %v6076_v0 = vpop.f32.mrf.mxu0  ;;  %v6105_v46 = vpop.f32.mrf.mxu3 }
 0x2d3   : > { %v6123_v3 = vpop.f32.mrf.mxu1  ;;  %v2862_v31 = vadd.f32 %v6076_v0, %v2667_v29  ;;  %v2668_v42 = vadd.f32 %v6105_v46, %v5981_v57  ;;  %v4593_v29 = vld [vmem:[%s5133_s6 + $0x20] sm:$0xf] }
 0x2d5   : > { %v3280_v38 = vadd.f32 %v6090_v15, %v2862_v31 }
 0x2d9   : > { %v2387_v25 = vpop.f32.mrf.mxu2 }
 0x2da   : > { %v6082_v16 = vadd.f32 %v2387_v25, %v5995_v49  ;;  %v6101_v49 = vld [vmem:[%s6325_s4] ss:$0 sm:$0xff]  ;;  %v6112_v47 = vpop.f32.mrf.mxu0  ;;  %v6134_v13 = vpop.f32.mrf.mxu3  ;;  %v4587_v25 = vld [vmem:[%s5133_s6 + $0x14] sm:$0x1] }
 0x2db   : > { %v3249_v32 = vpop.f32.mrf.mxu1  ;;  %v2863_v15 = vadd.f32 %v6112_v47, %v2668_v42 }
 0x2dd   : > { %v3281_v57 = vadd.f32 %v6123_v3, %v2863_v15 }
 0x2e1   : > { %v3511_v45 = vpop.f32.mrf.mxu2 }
 0x2e2   : > { %v3551_v28 = vadd.f32 %v3511_v45, %v3277_v54  ;;  %v2831_v14 = vpop.f32.mrf.mxu0  ;;  %v2639_v35 = vpop.f32.mrf.mxu3 }
 0x2e4   : > { %v3571_v44 = vadd.f32 %v6101_v49, %v3551_v28 }
 0x2e6   : > { %v3587_v63 = vmax.f32 %v3571_v44, 0.0 }
 0x2e8   : > { %v3643_v30 = vpack.c.bf16 %v3587_v63, %v3587_v63 }
 0x2e9   : > { %v3513_v2 = vpop.f32.mrf.mxu2 }
 0x2ea   : > { %v3660_v58 = vshrl.u32 %v3643_v30, 16  ;;  %v3552_v36 = vadd.f32 %v3513_v2, %v3278_v48  ;;  %v3663_v37 = vshll.u32 %v3643_v30, 16  ;;  %v2834_v45 = vpop.f32.mrf.mxu0  ;;  %v3252_v48 = vpop.f32.mrf.mxu1 }
 0x2ec   : > { %v3662_v33 = vrot.slane %v3660_v58, 7  ;;  %v3572_v56 = vadd.f32 %v6101_v49, %v3552_v36  ;;  %v4589_v58 = vld [vmem:[%s5133_s6 + $0x18] sm:$0xf]  ;;  %v4591_v36 = vld [vmem:[%s5133_s6 + $0x1c] sm:$0x1] }
 0x2ee   : > { %v3665_v7 = vor.u32 %v3663_v37, %v3662_v33  ;;  %v3666_v26 = vrot.slane %v3662_v33, 4  ;;  %v3588_v50 = vmax.f32 %v3572_v56, 0.0  ;;  %v2641_v56 = vpop.f32.mrf.mxu3 }
 0x2f0   : > { %v3821_v61 = vsel %vm5253_vm4, %v3665_v7, %v4581_v52  ;;  %v3824_v17 = vsel %vm5257_vm5, %v3666_v26, %v4583_v19  ;;  %v3644_v23 = vpack.c.bf16 %v3588_v50, %v3588_v50  ;;  %v2669_v26 = vadd.f32 %v6134_v13, %v5992_v20 }
 0x2f1   : > { %4582 = vst [vmem:[%s5133_s6 + $0x8] sm:$0xf] %v3821_v61  ;;  %v3516_v41 = vpop.f32.mrf.mxu2 }
 0x2f2   : > { %4584 = vst [vmem:[%s5133_s6 + $0xc] sm:$0x1] %v3824_v17  ;;  %v3668_v39 = vshrl.u32 %v3644_v23, 16  ;;  %v3553_v18 = vadd.f32 %v3516_v41, %v3279_v5  ;;  %v3671_v9 = vshll.u32 %v3644_v23, 16  ;;  %v2836_v19 = vpop.f32.mrf.mxu0  ;;  %v2864_v3 = vadd.f32 %v2831_v14, %v2669_v26  ;;  %v3254_v41 = vpop.f32.mrf.mxu1 }
 0x2f4   : > { %v3670_v24 = vrot.slane %v3668_v39, 7  ;;  %v3573_v1 = vadd.f32 %v6101_v49, %v3553_v18  ;;  %v4595_v39 = vld [vmem:[%s5133_s6 + $0x24] sm:$0x1] }
 0x2f6   : > { %v3673_v59 = vor.u32 %v3671_v9, %v3670_v24  ;;  %v3674_v40 = vrot.slane %v3670_v24, 4  ;;  %v3589_v54 = vmax.f32 %v3573_v1, 0.0  ;;  %v3282_v9 = vadd.f32 %v3249_v32, %v2864_v3  ;;  %v2644_v1 = vpop.f32.mrf.mxu3 }
 0x2f8   : > { %v3827_v6 = vsel %vm5253_vm4, %v3673_v59, %v4585_v51  ;;  %v3830_v0 = vsel %vm5257_vm5, %v3674_v40, %v4587_v25  ;;  %v3645_v34 = vpack.c.bf16 %v3589_v54, %v3589_v54  ;;  %v2670_v25 = vadd.f32 %v2639_v35, %v5998_v10 }
 0x2f9   : > { %4586 = vst [vmem:[%s5133_s6 + $0x10] sm:$0xf] %v3827_v6  ;;  %v3518_v28 = vpop.f32.mrf.mxu2 }
 0x2fa   : > { %4588 = vst [vmem:[%s5133_s6 + $0x14] sm:$0x1] %v3830_v0  ;;  %v3676_v44 = vshrl.u32 %v3645_v34, 16  ;;  %v3554_v63 = vadd.f32 %v3518_v28, %v3280_v38  ;;  %v3679_v2 = vshll.u32 %v3645_v34, 16  ;;  %v2839_v54 = vpop.f32.mrf.mxu0  ;;  %v2865_v32 = vadd.f32 %v2834_v45, %v2670_v25  ;;  %v4597_v34 = vld [vmem:[%s5133_s6 + $0x28] sm:$0xf]  ;;  %v3257_v15 = vpop.f32.mrf.mxu1 }
 0x2fb   : > { %v4599_v28 = vld [vmem:[%s5133_s6 + $0x2c] sm:$0x1] }
 0x2fc   : > { %v3678_v30 = vrot.slane %v3676_v44, 7  ;;  %v3574_v21 = vadd.f32 %v6101_v49, %v3554_v63 }
 0x2fe   : > { %v3681_v43 = vor.u32 %v3679_v2, %v3678_v30  ;;  %v3682_v33 = vrot.slane %v3678_v30, 4  ;;  %v3590_v37 = vmax.f32 %v3574_v21, 0.0  ;;  %v3283_v30 = vadd.f32 %v3252_v48, %v2865_v32 }
 0x2ff   : > { %v2671_v21 = vadd.f32 %v2641_v56, %v6007_v62 }
 0x300   : > { %v3833_v46 = vsel %vm5253_vm4, %v3681_v43, %v4589_v58  ;;  %v3836_v47 = vsel %vm5257_vm5, %v3682_v33, %v4591_v36  ;;  %v3646_v52 = vpack.c.bf16 %v3590_v37, %v3590_v37  ;;  %v2646_v43 = vpop.f32.mrf.mxu3 }
 0x301   : > { %4590 = vst [vmem:[%s5133_s6 + $0x18] sm:$0xf] %v3833_v46  ;;  %v3521_v7 = vpop.f32.mrf.mxu2  ;;  %v2866_v33 = vadd.f32 %v2836_v19, %v2671_v21  ;;  %v2673_v32 = vadd.f32 %v2646_v43, %v6019_v12 }
 0x302   : > { %4592 = vst [vmem:[%s5133_s6 + $0x1c] sm:$0x1] %v3836_v47  ;;  %v3684_v50 = vshrl.u32 %v3646_v52, 16  ;;  %v3555_v5 = vadd.f32 %v3521_v7, %v3281_v57  ;;  %v3687_v17 = vshll.u32 %v3646_v52, 16  ;;  %v2841_v46 = vpop.f32.mrf.mxu0  ;;  %v4601_v47 = vld [vmem:[%s5133_s6 + $0x30] sm:$0xf]  ;;  %v3259_v3 = vpop.f32.mrf.mxu1 }
 0x303   : > { %v4603_v52 = vld [vmem:[%s5133_s6 + $0x34] sm:$0x1] }
 0x304   : > { %v3686_v61 = vrot.slane %v3684_v50, 7  ;;  %v3575_v23 = vadd.f32 %v6101_v49, %v3555_v5  ;;  %v3284_v5 = vadd.f32 %v3254_v41, %v2866_v33 }
 0x306   : > { %v3689_v18 = vor.u32 %v3687_v17, %v3686_v61  ;;  %v3690_v31 = vrot.slane %v3686_v61, 4  ;;  %v3591_v24 = vmax.f32 %v3575_v23, 0.0  ;;  %v2672_v17 = vadd.f32 %v2644_v1, %v6010_v27 }
 0x308   : > { %v3839_v20 = vsel %vm5253_vm4, %v3689_v18, %v4593_v29  ;;  %v3842_v13 = vsel %vm5257_vm5, %v3690_v31, %v4595_v39  ;;  %v3647_v14 = vpack.c.bf16 %v3591_v24, %v3591_v24  ;;  %v2867_v39 = vadd.f32 %v2839_v54, %v2672_v17  ;;  %v2649_v24 = vpop.f32.mrf.mxu3 }
 0x309   : > { %4594 = vst [vmem:[%s5133_s6 + $0x20] sm:$0xf] %v3839_v20  ;;  %v3523_v51 = vpop.f32.mrf.mxu2  ;;  %v4607_v20 = vld [vmem:[%s5133_s6 + $0x3c] sm:$0x1]  ;;  %v2674_v33 = vadd.f32 %v2649_v24, %v6022_v22 }
 0x30a   : > { %4596 = vst [vmem:[%s5133_s6 + $0x24] sm:$0x1] %v3842_v13  ;;  %v3692_v59 = vshrl.u32 %v3647_v14, 16  ;;  %v3556_v40 = vadd.f32 %v3523_v51, %v3282_v9  ;;  %v3695_v6 = vshll.u32 %v3647_v14, 16  ;;  %v4605_v9 = vld [vmem:[%s5133_s6 + $0x38] sm:$0xf]  ;;  %v2844_v25 = vpop.f32.mrf.mxu0 }
 0x30c   : > { %v3694_v38 = vrot.slane %v3692_v59, 7  ;;  %v3576_v0 = vadd.f32 %v6101_v49, %v3556_v40  ;;  %v3285_v59 = vadd.f32 %v3257_v15, %v2867_v39  ;;  %v4611_v15 = vld [vmem:[%s5133_s6 + $0x44] sm:$0x1] }
 0x30e   : > { %v3697_v42 = vor.u32 %v3695_v6, %v3694_v38  ;;  %v3698_v44 = vrot.slane %v3694_v38, 4  ;;  %v3592_v63 = vmax.f32 %v3576_v0, 0.0  ;;  %v3262_v0 = vpop.f32.mrf.mxu1 }
 0x310   : > { %v3845_v10 = vsel %vm5253_vm4, %v3697_v42, %v4597_v34  ;;  %v3848_v35 = vsel %vm5257_vm5, %v3698_v44, %v4599_v28  ;;  %v3648_v45 = vpack.c.bf16 %v3592_v63, %v3592_v63  ;;  %v2868_v34 = vadd.f32 %v2841_v46, %v2673_v32  ;;  %v4609_v63 = vld [vmem:[%s5133_s6 + $0x40] sm:$0xf] }
 0x311   : > { %4598 = vst [vmem:[%s5133_s6 + $0x28] sm:$0xf] %v3845_v10  ;;  %v3526_v2 = vpop.f32.mrf.mxu2 }
 0x312   : > { %4600 = vst [vmem:[%s5133_s6 + $0x2c] sm:$0x1] %v3848_v35  ;;  %v3700_v58 = vshrl.u32 %v3648_v45, 16  ;;  %v3557_v36 = vadd.f32 %v3526_v2, %v3283_v30  ;;  %v3703_v37 = vshll.u32 %v3648_v45, 16  ;;  %v2651_v45 = vpop.f32.mrf.mxu3  ;;  %v3286_v2 = vadd.f32 %v3259_v3, %v2868_v34 }
 0x314   : > { %v3702_v48 = vrot.slane %v3700_v58, 7  ;;  %v3577_v57 = vadd.f32 %v6101_v49, %v3557_v36  ;;  %v2846_v36 = vpop.f32.mrf.mxu0 }
 0x316   : > { %v3705_v7 = vor.u32 %v3703_v37, %v3702_v48  ;;  %v3706_v26 = vrot.slane %v3702_v48, 4  ;;  %v3593_v50 = vmax.f32 %v3577_v57, 0.0  ;;  %v2869_v57 = vadd.f32 %v2844_v25, %v2674_v33 }
 0x318   : > { %v3851_v62 = vsel %vm5253_vm4, %v3705_v7, %v4601_v47  ;;  %v3854_v56 = vsel %vm5257_vm5, %v3706_v26, %v4603_v52  ;;  %v3649_v19 = vpack.c.bf16 %v3593_v50, %v3593_v50  ;;  %v3264_v7 = vpop.f32.mrf.mxu1 }
 0x319   : > { %4602 = vst [vmem:[%s5133_s6 + $0x30] sm:$0xf] %v3851_v62  ;;  %v3528_v61 = vpop.f32.mrf.mxu2  ;;  %v4613_v62 = vld [vmem:[%s5133_s6 + $0x58] sm:$0xf] }
 0x31a   : > { %4604 = vst [vmem:[%s5133_s6 + $0x34] sm:$0x1] %v3854_v56  ;;  %v3708_v23 = vshrl.u32 %v3649_v19, 16  ;;  %v3558_v29 = vadd.f32 %v3528_v61, %v3284_v5  ;;  %v3711_v18 = vshll.u32 %v3649_v19, 16  ;;  %v4615_v56 = vld [vmem:[%s5133_s6 + $0x5c] sm:$0x1]  ;;  %v3287_v19 = vadd.f32 %v3262_v0, %v2869_v57  ;;  %v2654_v17 = vpop.f32.mrf.mxu3 }
 0x31c   : > { %v3710_v41 = vrot.slane %v3708_v23, 7  ;;  %v3578_v31 = vadd.f32 %v6101_v49, %v3558_v29  ;;  %v2675_v29 = vadd.f32 %v2651_v45, %v6025_v55  ;;  %v4621_v45 = vld [vmem:[%s5133_s6 + $0x68] sm:$0xf] }
 0x31e   : > { %v3713_v13 = vor.u32 %v3711_v18, %v3710_v41  ;;  %v3714_v14 = vrot.slane %v3710_v41, 4  ;;  %v3594_v51 = vmax.f32 %v3578_v31, 0.0  ;;  %v2849_v18 = vpop.f32.mrf.mxu0  ;;  %v2870_v31 = vadd.f32 %v2846_v36, %v2675_v29 }
 0x320   : > { %v3857_v27 = vsel %vm5253_vm4, %v3713_v13, %v4605_v9  ;;  %v3860_v1 = vsel %vm5257_vm5, %v3714_v14, %v4607_v20  ;;  %v3650_v40 = vpack.c.bf16 %v3594_v51, %v3594_v51  ;;  %v3267_v25 = vpop.f32.mrf.mxu1 }
 0x321   : > { %4606 = vst [vmem:[%s5133_s6 + $0x38] sm:$0xf] %v3857_v27  ;;  %v3531_v54 = vpop.f32.mrf.mxu2  ;;  %v4619_v27 = vld [vmem:[%s5133_s6 + $0x64] sm:$0x1] }
 0x322   : > { %4608 = vst [vmem:[%s5133_s6 + $0x3c] sm:$0x1] %v3860_v1  ;;  %v3716_v38 = vshrl.u32 %v3650_v40, 16  ;;  %v3559_v6 = vadd.f32 %v3531_v54, %v3285_v59  ;;  %v3719_v42 = vshll.u32 %v3650_v40, 16  ;;  %v4617_v59 = vld [vmem:[%s5133_s6 + $0x60] sm:$0xf]  ;;  %v3288_v1 = vadd.f32 %v3264_v7, %v2870_v31  ;;  %v2656_v34 = vpop.f32.mrf.mxu3 }
 0x323   : > { %v2677_v33 = vadd.f32 %v2656_v34, %v6037_v4 }
 0x324   : > { %v3718_v28 = vrot.slane %v3716_v38, 7  ;;  %v3579_v44 = vadd.f32 %v6101_v49, %v3559_v6  ;;  %v2676_v38 = vadd.f32 %v2654_v17, %v6028_v11 }
 0x326   : > { %v3721_v30 = vor.u32 %v3719_v42, %v3718_v28  ;;  %v3722_v10 = vrot.slane %v3718_v28, 4  ;;  %v3595_v35 = vmax.f32 %v3579_v44, 0.0  ;;  %v2871_v28 = vadd.f32 %v2849_v18, %v2676_v38 }
 0x328   : > { %v3863_v12 = vsel %vm5253_vm4, %v3721_v30, %v4609_v63  ;;  %v3866_v21 = vsel %vm5257_vm5, %v3722_v10, %v4611_v15  ;;  %v3651_v58 = vpack.c.bf16 %v3595_v35, %v3595_v35  ;;  %v2851_v15 = vpop.f32.mrf.mxu0  ;;  %v3269_v36 = vpop.f32.mrf.mxu1 }
 0x329   : > { %4610 = vst [vmem:[%s5133_s6 + $0x40] sm:$0xf] %v3863_v12  ;;  %v3533_v43 = vpop.f32.mrf.mxu2  ;;  %v3289_v12 = vadd.f32 %v3267_v25, %v2871_v28  ;;  %v2872_v57 = vadd.f32 %v2851_v15, %v2677_v33  ;;  %v4629_v25 = vld [vmem:[%s5133_s6 + $0x78] sm:$0xf] }
 0x32a   : > { %4612 = vst [vmem:[%s5133_s6 + $0x44] sm:$0x1] %v3866_v21  ;;  %v3724_v48 = vshrl.u32 %v3651_v58, 16  ;;  %v3560_v37 = vadd.f32 %v3533_v43, %v3286_v2  ;;  %v3727_v47 = vshll.u32 %v3651_v58, 16  ;;  %v4623_v2 = vld [vmem:[%s5133_s6 + $0x6c] sm:$0x1]  ;;  %v2659_v7 = vpop.f32.mrf.mxu3 }
 0x32c   : > { %v3726_v46 = vrot.slane %v3724_v48, 7  ;;  %v3580_v52 = vadd.f32 %v6101_v49, %v3560_v37 }
 0x32e   : > { %v3729_v26 = vor.u32 %v3727_v47, %v3726_v46  ;;  %v3730_v50 = vrot.slane %v3726_v46, 4  ;;  %v3596_v5 = vmax.f32 %v3580_v52, 0.0 }
 0x330   : > { %v3869_v22 = vsel %vm5253_vm4, %v3729_v26, %v4613_v62  ;;  %v3872_v3 = vsel %vm5257_vm5, %v3730_v50, %v4615_v56  ;;  %v3652_v61 = vpack.c.bf16 %v3596_v5, %v3596_v5  ;;  %v2854_v62 = vpop.f32.mrf.mxu0  ;;  %v4625_v56 = vld [vmem:[%s5133_s6 + $0x70] sm:$0xf] }
 0x331   : > { %4614 = vst [vmem:[%s5133_s6 + $0x58] sm:$0xf] %v3869_v22  ;;  %v3536_v23 = vpop.f32.mrf.mxu2  ;;  %v3290_v22 = vadd.f32 %v3269_v36, %v2872_v57 }
 0x332   : > { %4616 = vst [vmem:[%s5133_s6 + $0x5c] sm:$0x1] %v3872_v3  ;;  %v3732_v39 = vshrl.u32 %v3652_v61, 16  ;;  %v3561_v41 = vadd.f32 %v3536_v23, %v3287_v19  ;;  %v3735_v9 = vshll.u32 %v3652_v61, 16  ;;  %v4627_v19 = vld [vmem:[%s5133_s6 + $0x74] sm:$0x1]  ;;  %v2678_v23 = vadd.f32 %v2659_v7, %v6056_v60 }
 0x334   : > { %v3734_v24 = vrot.slane %v3732_v39, 7  ;;  %v3581_v20 = vadd.f32 %v6101_v49, %v3561_v41  ;;  %v3272_v41 = vpop.f32.mrf.mxu1  ;;  %v2873_v18 = vadd.f32 %v2854_v62, %v2678_v23 }
 0x336   : > { %v3737_v13 = vor.u32 %v3735_v9, %v3734_v24  ;;  %v3738_v14 = vrot.slane %v3734_v24, 4  ;;  %v3597_v51 = vmax.f32 %v3581_v20, 0.0 }
 0x338   : > { %v3875_v55 = vsel %vm5253_vm4, %v3737_v13, %v4617_v59  ;;  %v3878_v40 = vsel %vm5257_vm5, %v3738_v14, %v4619_v27  ;;  %v3653_v54 = vpack.c.bf16 %v3597_v51, %v3597_v51  ;;  %v2661_v51 = vpop.f32.mrf.mxu3  ;;  %v4631_v59 = vld [vmem:[%s5133_s6 + $0x7c] sm:$0x1]  ;;  %v3291_v27 = vadd.f32 %v3272_v41, %v2873_v18 }
 0x339   : > { %4618 = vst [vmem:[%s5133_s6 + $0x60] sm:$0xf] %v3875_v55  ;;  %v3538_v32 = vpop.f32.mrf.mxu2 }
 0x33a   : > { %4620 = vst [vmem:[%s5133_s6 + $0x64] sm:$0x1] %v3878_v40  ;;  %v3740_v6 = vshrl.u32 %v3653_v54, 16  ;;  %v3562_v0 = vadd.f32 %v3538_v32, %v3288_v1  ;;  %v3743_v44 = vshll.u32 %v3653_v54, 16  ;;  %v2856_v40 = vpop.f32.mrf.mxu0  ;;  %v2679_v32 = vadd.f32 %v2661_v51, %v6082_v16 }
 0x33c   : > { %v3742_v42 = vrot.slane %v3740_v6, 7  ;;  %v3582_v63 = vadd.f32 %v6101_v49, %v3562_v0  ;;  %v2874_v0 = vadd.f32 %v2856_v40, %v2679_v32 }
 0x33e   : > { %v3745_v30 = vor.u32 %v3743_v44, %v3742_v42  ;;  %v3746_v10 = vrot.slane %v3742_v42, 4  ;;  %v3598_v35 = vmax.f32 %v3582_v63, 0.0  ;;  %v3274_v44 = vpop.f32.mrf.mxu1 }
 0x340   : > { %v3881_v11 = vsel %vm5253_vm4, %v3745_v30, %v4621_v45  ;;  %v3884_v21 = vsel %vm5257_vm5, %v3746_v10, %v4623_v2  ;;  %v3654_v58 = vpack.c.bf16 %v3598_v35, %v3598_v35  ;;  %v4633_v10 = vld [vmem:[%s5133_s6 + $0x80] sm:$0xf]  ;;  %v4635_v35 = vld [vmem:[%s5133_s6 + $0x84] sm:$0x1]  ;;  %v3292_v45 = vadd.f32 %v3274_v44, %v2874_v0 }
 0x341   : > { %4622 = vst [vmem:[%s5133_s6 + $0x68] sm:$0xf] %v3881_v11  ;;  %v3541_v43 = vpop.f32.mrf.mxu2 }
 0x342   : > { %4624 = vst [vmem:[%s5133_s6 + $0x6c] sm:$0x1] %v3884_v21  ;;  %v3748_v48 = vshrl.u32 %v3654_v58, 16  ;;  %v3563_v37 = vadd.f32 %v3541_v43, %v3289_v12  ;;  %v3751_v47 = vshll.u32 %v3654_v58, 16 }
 0x344   : > { %v3750_v46 = vrot.slane %v3748_v48, 7  ;;  %v3583_v52 = vadd.f32 %v6101_v49, %v3563_v37 }
 0x346   : > { %v3753_v26 = vor.u32 %v3751_v47, %v3750_v46  ;;  %v3754_v50 = vrot.slane %v3750_v46, 4  ;;  %v3599_v5 = vmax.f32 %v3583_v52, 0.0  ;;  %v4637_v46 = vld [vmem:[%s5133_s6 + $0x88] sm:$0xf]  ;;  %v4639_v47 = vld [vmem:[%s5133_s6 + $0x8c] sm:$0x1] }
 0x348   : > { %v3887_v4 = vsel %vm5253_vm4, %v3753_v26, %v4625_v56  ;;  %v3890_v3 = vsel %vm5257_vm5, %v3754_v50, %v4627_v19  ;;  %v3655_v61 = vpack.c.bf16 %v3599_v5, %v3599_v5  ;;  %v4641_v19 = vld [vmem:[%s5133_s6 + $0x90] sm:$0xf] }
 0x349   : > { %4626 = vst [vmem:[%s5133_s6 + $0x70] sm:$0xf] %v3887_v4  ;;  %v3543_v17 = vpop.f32.mrf.mxu2 }
 0x34a   : > { %4628 = vst [vmem:[%s5133_s6 + $0x74] sm:$0x1] %v3890_v3  ;;  %v3756_v29 = vshrl.u32 %v3655_v61, 16  ;;  %v3564_v39 = vadd.f32 %v3543_v17, %v3290_v22  ;;  %v3759_v24 = vshll.u32 %v3655_v61, 16  ;;  %v4643_v22 = vld [vmem:[%s5133_s6 + $0x94] sm:$0x1] }
 0x34c   : > { %v3758_v31 = vrot.slane %v3756_v29, 7  ;;  %v3584_v9 = vadd.f32 %v6101_v49, %v3564_v39 }
 0x34e   : > { %v3761_v20 = vor.u32 %v3759_v24, %v3758_v31  ;;  %v3762_v13 = vrot.slane %v3758_v31, 4  ;;  %v3600_v14 = vmax.f32 %v3584_v9, 0.0 }
 0x350   : > { %v3893_v60 = vsel %vm5253_vm4, %v3761_v20, %v4629_v25  ;;  %v3896_v1 = vsel %vm5257_vm5, %v3762_v13, %v4631_v59  ;;  %v3656_v55 = vpack.c.bf16 %v3600_v14, %v3600_v14 }
 0x351   : > { %4630 = vst [vmem:[%s5133_s6 + $0x78] sm:$0xf] %v3893_v60  ;;  %v3546_v54 = vpop.f32.mrf.mxu2 }
 0x352   : > { %4632 = vst [vmem:[%s5133_s6 + $0x7c] sm:$0x1] %v3896_v1  ;;  %v3764_v38 = vshrl.u32 %v3656_v55, 16  ;;  %v3565_v6 = vadd.f32 %v3546_v54, %v3291_v27  ;;  %v3767_v28 = vshll.u32 %v3656_v55, 16 }
 0x354   : > { %v3766_v34 = vrot.slane %v3764_v38, 7  ;;  %v3585_v42 = vadd.f32 %v6101_v49, %v3565_v6 }
 0x356   : > { %v3769_v63 = vor.u32 %v3767_v28, %v3766_v34  ;;  %v3770_v15 = vrot.slane %v3766_v34, 4  ;;  %v3601_v30 = vmax.f32 %v3585_v42, 0.0 }
 0x358   : > { %v3899_v16 = vsel %vm5253_vm4, %v3769_v63, %v4633_v10  ;;  %v3902_v2 = vsel %vm5257_vm5, %v3770_v15, %v4635_v35  ;;  %v3657_v12 = vpack.c.bf16 %v3601_v30, %v3601_v30 }
 0x359   : > { %4634 = vst [vmem:[%s5133_s6 + $0x80] sm:$0xf] %v3899_v16  ;;  %v3548_v11 = vpop.f32.mrf.mxu2 }
 0x35a   : > { %4636 = vst [vmem:[%s5133_s6 + $0x84] sm:$0x1] %v3902_v2  ;;  %v3772_v21 = vshrl.u32 %v3657_v12, 16  ;;  %v3566_v58 = vadd.f32 %v3548_v11, %v3292_v45  ;;  %v3775_v43 = vshll.u32 %v3657_v12, 16 }
 0x35c   : > { %v3774_v36 = vrot.slane %v3772_v21, 7  ;;  %v3586_v33 = vadd.f32 %v6101_v49, %v3566_v58 }
 0x35e   : > { %v3777_v48 = vor.u32 %v3775_v43, %v3774_v36  ;;  %v3778_v37 = vrot.slane %v3774_v36, 4  ;;  %v3602_v57 = vmax.f32 %v3586_v33, 0.0 }
 0x360   : > { %v3905_v52 = vsel %vm5253_vm4, %v3777_v48, %v4637_v46  ;;  %v3908_v7 = vsel %vm5257_vm5, %v3778_v37, %v4639_v47  ;;  %v3658_v26 = vpack.c.bf16 %v3602_v57, %v3602_v57 }
 0x361   : > { %4638 = vst [vmem:[%s5133_s6 + $0x88] sm:$0xf] %v3905_v52 }
 0x362   : > { %4640 = vst [vmem:[%s5133_s6 + $0x8c] sm:$0x1] %v3908_v7  ;;  %v3780_v50 = vshrl.u32 %v3658_v26, 16  ;;  %v3783_v5 = vshll.u32 %v3658_v26, 16 }
 0x364   : > { %v3782_v49 = vrot.slane %v3780_v50, 7 }
 0x366   : > { %v3785_v62 = vor.u32 %v3783_v5, %v3782_v49  ;;  %v3786_v56 = vrot.slane %v3782_v49, 4 }
 0x368   : > { %v3911_v4 = vsel %vm5253_vm4, %v3785_v62, %v4641_v19  ;;  %v3914_v3 = vsel %vm5257_vm5, %v3786_v56, %v4643_v22 }
 0x369   : > { %4642 = vst [vmem:[%s5133_s6 + $0x90] sm:$0xf] %v3911_v4 }
 0x36a   : > { %4644 = vst [vmem:[%s5133_s6 + $0x94] sm:$0x1] %v3914_v3 }
 0x36b PF: > { %p16_p1 = scmp.ge.s32.totalorder %s5085_s12, 4   ;;  %s6338_s18 = smov %s4990_s19 }
 0x36c   : > { %s6339_s19 = smov %s4994_s20  ;;  %s6340_s20 = smov %s5096_s16 }
 0x36d   : > { %s6341_s21 = smov %s5085_s12  ;;  %18 = sbr.rel (!%p16_p1) target bundleno = 4 (0x4), region = 103 }
 0x372   :  { %3940 = vsyncpa [#allocation4], 1 }
 0x373   :  { %3942 = vsyncpa [#allocation4 + $0x1], 1 }
 0x374   :  { %3943 = vsyncpa [#allocation6], 1 }

</bundles_post_ra>
